<compile_context>
chip_gen: v5e
topology: v5e:2x2
jax: 0.10.0
libtpu: 0.0.40
codegen_flags: <defaults>
</compile_context>

<pallas_src>
import functools

import jax
import jax.numpy as jnp
from jax.experimental import pallas as pl
from jax.experimental.pallas import tpu as pltpu

K = 7            # kernel_size
PAD = K // 2     # padding = 3


def _round_up(v, m):
    return (v + m - 1) // m * m


def _spatial_attention_kernel(w_ref, b_ref, mask_ref, x_ref, o_ref, *, H, W, Nb):
    # x_ref:    (Nb, C, H*W) VMEM
    # o_ref:    (Nb, H*W)    VMEM
    # mask_ref: (K,  H*W)    VMEM  -- per-kx column-validity masks (0/1 float)
    # w_ref:    (2*K*K,)     SMEM, b_ref: (1,) SMEM
    HW = H * W
    margin = PAD * W + PAD                      # max |flat offset| of any conv tap
    d0 = _round_up(margin, 128)                 # lane-tile-aligned front zero pad
    back = _round_up(HW + margin, 128) - HW     # back zero pad (>= margin)

    x = x_ref[...].astype(jnp.float32)          # (Nb, C, HW), lane-dense
    max_map = jnp.max(x, axis=1)                # (Nb, HW)
    avg_map = jnp.mean(x, axis=1)               # (Nb, HW)

    # Zero-padded flat slabs (values, stay vreg-resident; aligned concatenation).
    zf = jnp.zeros((Nb, d0), jnp.float32)
    zb = jnp.zeros((Nb, back), jnp.float32)
    slabs = (
        jnp.concatenate([zf, max_map, zb], axis=-1),   # conv input channel 0: max
        jnp.concatenate([zf, avg_map, zb], axis=-1),   # conv input channel 1: mean
    )

    # 7x7 conv, 2 -> 1 channels. Each tap is a static shifted slice of the padded
    # slab; taps sharing the same kx are accumulated first so the column mask is
    # applied only K times instead of per tap (98 FMAs + 7 mask multiplies).
    acc = jnp.full((Nb, HW), b_ref[0], dtype=jnp.float32)
    for kx in range(K):
        part = None
        for c in range(2):
            slab = slabs[c]
            for ky in range(K):
                start = d0 + (ky - PAD) * W + (kx - PAD)
                win = slab[:, start:start + HW]            # vreg-resident shifted view
                t = w_ref[(c * K + ky) * K + kx] * win
                part = t if part is None else part + t
        acc = acc + mask_ref[kx:kx + 1, :] * part          # zero taps that crossed a row

    o_ref[...] = jax.nn.sigmoid(acc).astype(o_ref.dtype)   # lane-dense full-block store


def _pick_block_n(N, C, HW, vmem_budget_bytes=8 << 20):
    """Largest batch fold Nb that divides N and respects a rough VMEM budget."""
    per_elem = 4 * (3 * C * HW + 8 * HW)            # f32: dbl-buffered block + live values
    cap = max(1, vmem_budget_bytes // per_elem)
    if N <= cap:
        return N
    divisors = [d for d in range(1, int(cap) + 1) if N % d == 0]
    mult8 = [d for d in divisors if d % 8 == 0]     # keep output sublane dim friendly
    return (mult8 or divisors)[-1]


def spatial_attention(x, weight, bias):
    """x: (N, C, H, W) f32, weight: (1, 2, K, K) f32, bias: (1,) f32 -> (N, 1, H, W) f32."""
    N, C, H, W = x.shape
    HW = H * W
    Nb = _pick_block_n(N, C, HW)
    assert N % Nb == 0

    x_flat = x.reshape(N, C, HW)                         # free reshape of contiguous NCHW
    w_flat = weight.reshape(-1).astype(jnp.float32)      # (2*K*K,)
    b = bias.reshape(1).astype(jnp.float32)              # (1,)

    # Column-validity masks: in the flattened H*W layout a horizontal tap shift of
    # (kx - PAD) wraps across the W boundary; these masks zero the wrapped lanes.
    col = jnp.arange(HW, dtype=jnp.int32) % W                            # (HW,)
    off = jnp.arange(K, dtype=jnp.int32)[:, None] - PAD                  # (K, 1)
    col_mask = ((col[None, :] + off >= 0) &
                (col[None, :] + off < W)).astype(jnp.float32)            # (K, HW)

    kernel = functools.partial(_spatial_attention_kernel, H=H, W=W, Nb=Nb)
    out_flat = pl.pallas_call(
        kernel,
        out_shape=jax.ShapeDtypeStruct((N, HW), x.dtype),
        grid_spec=pltpu.PrefetchScalarGridSpec(
            num_scalar_prefetch=0,
            grid=(N // Nb,),
            in_specs=[
                pl.BlockSpec(memory_space=pltpu.SMEM),             # conv weights (flat)
                pl.BlockSpec(memory_space=pltpu.SMEM),             # conv bias
                pl.BlockSpec((K, HW), lambda n: (0, 0)),           # column masks
                pl.BlockSpec((Nb, C, HW), lambda n: (n, 0, 0)),    # x, Nb batch elems
            ],
            out_specs=pl.BlockSpec((Nb, HW), lambda n: (n, 0)),
        ),
        compiler_params=pltpu.CompilerParams(
            dimension_semantics=("parallel",),                     # batch elems independent
        ),
    )(w_flat, b, col_mask, x_flat)

    return out_flat.reshape(N, 1, H, W)


def spatial_attention_ref(x, weight, bias):
    """Pure-JAX reference matching the PyTorch forward."""
    max_r = jnp.max(x, axis=1, keepdims=True)
    avg_r = jnp.mean(x, axis=1, keepdims=True)
    r = jnp.concatenate([max_r, avg_r], axis=1)          # (N, 2, H, W)
    out = jax.lax.conv_general_dilated(
        r, weight, window_strides=(1, 1),
        padding=((PAD, PAD), (PAD, PAD)),
        dimension_numbers=("NCHW", "OIHW", "NCHW"),
    )
    out = out + bias.reshape(1, 1, 1, 1)
    return jax.nn.sigmoid(out)


if __name__ == "__main__":
    key = jax.random.PRNGKey(0)
    kx, kw, kb = jax.random.split(key, 3)

    N, C, H, W = 2, 4, 16, 16
    x = jax.random.normal(kx, (N, C, H, W), dtype=jnp.float32)

    # Deterministic Conv2d(2, 1, 7, padding=3) params (PyTorch-style uniform init bound).
    fan_in = 2 * K * K
    bound = 1.0 / (fan_in ** 0.5)
    weight = jax.random.uniform(kw, (1, 2, K, K), jnp.float32, -bound, bound)
    bias = jax.random.uniform(kb, (1,), jnp.float32, -bound, bound)

    out = spatial_attention(x, weight, bias)
    out = jax.block_until_ready(out)

    ref = spatial_attention_ref(x, weight, bias)
    assert out.shape == (N, 1, H, W), out.shape
    assert jnp.allclose(out, ref, atol=1e-5, rtol=1e-5), float(jnp.max(jnp.abs(out - ref)))

    print("KERNEL_OK")
</pallas_src>

<mosaic_0001>
module attributes {stable_mosaic.version = 11 : i64} {
  func.func @_spatial_attention_kernel(%arg0: i32, %arg1: memref<98xf32, #tpu.memory_space<smem>>, %arg2: memref<1xf32, #tpu.memory_space<smem>>, %arg3: memref<7x256xf32, #tpu.memory_space<vmem>>, %arg4: memref<2x4x256xf32, #tpu.memory_space<vmem>>, %arg5: memref<2x256xf32, #tpu.memory_space<vmem>>) attributes {dimension_semantics = [#tpu.dimension_semantics<parallel>], iteration_bounds = array<i64: 1>, scalar_prefetch = 0 : i64, scratch_operands = 0 : i64, tpu.core_type = #tpu.core_type<tc>, window_params = [{transform_indices = @transform_0, window_bounds = array<i64: 98>}, {transform_indices = @transform_1, window_bounds = array<i64: 1>}, {pipeline_mode = #tpu.pipeline_mode<synchronous>, transform_indices = @transform_2, window_bounds = array<i64: 7, 256>}, {transform_indices = @transform_3, window_bounds = array<i64: 2, 4, 256>}, {transform_indices = @transform_4, window_bounds = array<i64: 2, 256>}]} {
    %c0 = arith.constant 0 : index
    %c0_0 = arith.constant 0 : index
    %c0_1 = arith.constant 0 : index
    %0 = vector.load %arg4[%c0, %c0_0, %c0_1] : memref<2x4x256xf32, #tpu.memory_space<vmem>>, vector<2x4x256xf32>
    %cst = arith.constant dense<0xFF800000> : vector<2x256xf32>
    %1 = vector.multi_reduction <maximumf>, %0, %cst [1] : vector<2x4x256xf32> to vector<2x256xf32>
    %cst_2 = arith.constant dense<0.000000e+00> : vector<2x256xf32>
    %2 = vector.multi_reduction <add>, %0, %cst_2 [1] : vector<2x4x256xf32> to vector<2x256xf32>
    %cst_3 = arith.constant 4.000000e+00 : f32
    %3 = vector.broadcast %cst_3 : f32 to vector<2x256xf32>
    %4 = arith.divf %2, %3 : vector<2x256xf32>
    %cst_4 = arith.constant 0.000000e+00 : f32
    %5 = vector.broadcast %cst_4 : f32 to vector<2x128xf32>
    %cst_5 = arith.constant 0.000000e+00 : f32
    %6 = vector.broadcast %cst_5 : f32 to vector<2x128xf32>
    %7 = tpu.concatenate %5, %1, %6 in 1 : vector<2x128xf32>, vector<2x256xf32>, vector<2x128xf32> -> vector<2x512xf32>
    %8 = tpu.concatenate %5, %4, %6 in 1 : vector<2x128xf32>, vector<2x256xf32>, vector<2x128xf32> -> vector<2x512xf32>
    %c0_6 = arith.constant 0 : index
    %9 = memref.load %arg2[%c0_6] : memref<1xf32, #tpu.memory_space<smem>>
    %10 = vector.broadcast %9 : f32 to vector<2x256xf32>
    %11 = vector.extract_strided_slice %7 {offsets = [0, 77], sizes = [2, 256], strides = [1, 1]} : vector<2x512xf32> to vector<2x256xf32>
    %c0_7 = arith.constant 0 : index
    %12 = memref.load %arg1[%c0_7] : memref<98xf32, #tpu.memory_space<smem>>
    %13 = vector.broadcast %12 : f32 to vector<2x256xf32>
    %14 = arith.mulf %13, %11 : vector<2x256xf32>
    %15 = vector.extract_strided_slice %7 {offsets = [0, 93], sizes = [2, 256], strides = [1, 1]} : vector<2x512xf32> to vector<2x256xf32>
    %c7 = arith.constant 7 : index
    %16 = memref.load %arg1[%c7] : memref<98xf32, #tpu.memory_space<smem>>
    %17 = vector.broadcast %16 : f32 to vector<2x256xf32>
    %18 = arith.mulf %17, %15 : vector<2x256xf32>
    %19 = arith.addf %14, %18 : vector<2x256xf32>
    %20 = vector.extract_strided_slice %7 {offsets = [0, 109], sizes = [2, 256], strides = [1, 1]} : vector<2x512xf32> to vector<2x256xf32>
    %c14 = arith.constant 14 : index
    %21 = memref.load %arg1[%c14] : memref<98xf32, #tpu.memory_space<smem>>
    %22 = vector.broadcast %21 : f32 to vector<2x256xf32>
    %23 = arith.mulf %22, %20 : vector<2x256xf32>
    %24 = arith.addf %19, %23 : vector<2x256xf32>
    %25 = vector.extract_strided_slice %7 {offsets = [0, 125], sizes = [2, 256], strides = [1, 1]} : vector<2x512xf32> to vector<2x256xf32>
    %c21 = arith.constant 21 : index
    %26 = memref.load %arg1[%c21] : memref<98xf32, #tpu.memory_space<smem>>
    %27 = vector.broadcast %26 : f32 to vector<2x256xf32>
    %28 = arith.mulf %27, %25 : vector<2x256xf32>
    %29 = arith.addf %24, %28 : vector<2x256xf32>
    %30 = vector.extract_strided_slice %7 {offsets = [0, 141], sizes = [2, 256], strides = [1, 1]} : vector<2x512xf32> to vector<2x256xf32>
    %c28 = arith.constant 28 : index
    %31 = memref.load %arg1[%c28] : memref<98xf32, #tpu.memory_space<smem>>
    %32 = vector.broadcast %31 : f32 to vector<2x256xf32>
    %33 = arith.mulf %32, %30 : vector<2x256xf32>
    %34 = arith.addf %29, %33 : vector<2x256xf32>
    %35 = vector.extract_strided_slice %7 {offsets = [0, 157], sizes = [2, 256], strides = [1, 1]} : vector<2x512xf32> to vector<2x256xf32>
    %c35 = arith.constant 35 : index
    %36 = memref.load %arg1[%c35] : memref<98xf32, #tpu.memory_space<smem>>
    %37 = vector.broadcast %36 : f32 to vector<2x256xf32>
    %38 = arith.mulf %37, %35 : vector<2x256xf32>
    %39 = arith.addf %34, %38 : vector<2x256xf32>
    %40 = vector.extract_strided_slice %7 {offsets = [0, 173], sizes = [2, 256], strides = [1, 1]} : vector<2x512xf32> to vector<2x256xf32>
    %c42 = arith.constant 42 : index
    %41 = memref.load %arg1[%c42] : memref<98xf32, #tpu.memory_space<smem>>
    %42 = vector.broadcast %41 : f32 to vector<2x256xf32>
    %43 = arith.mulf %42, %40 : vector<2x256xf32>
    %44 = arith.addf %39, %43 : vector<2x256xf32>
    %45 = vector.extract_strided_slice %8 {offsets = [0, 77], sizes = [2, 256], strides = [1, 1]} : vector<2x512xf32> to vector<2x256xf32>
    %c49 = arith.constant 49 : index
    %46 = memref.load %arg1[%c49] : memref<98xf32, #tpu.memory_space<smem>>
    %47 = vector.broadcast %46 : f32 to vector<2x256xf32>
    %48 = arith.mulf %47, %45 : vector<2x256xf32>
    %49 = arith.addf %44, %48 : vector<2x256xf32>
    %50 = vector.extract_strided_slice %8 {offsets = [0, 93], sizes = [2, 256], strides = [1, 1]} : vector<2x512xf32> to vector<2x256xf32>
    %c56 = arith.constant 56 : index
    %51 = memref.load %arg1[%c56] : memref<98xf32, #tpu.memory_space<smem>>
    %52 = vector.broadcast %51 : f32 to vector<2x256xf32>
    %53 = arith.mulf %52, %50 : vector<2x256xf32>
    %54 = arith.addf %49, %53 : vector<2x256xf32>
    %55 = vector.extract_strided_slice %8 {offsets = [0, 109], sizes = [2, 256], strides = [1, 1]} : vector<2x512xf32> to vector<2x256xf32>
    %c63 = arith.constant 63 : index
    %56 = memref.load %arg1[%c63] : memref<98xf32, #tpu.memory_space<smem>>
    %57 = vector.broadcast %56 : f32 to vector<2x256xf32>
    %58 = arith.mulf %57, %55 : vector<2x256xf32>
    %59 = arith.addf %54, %58 : vector<2x256xf32>
    %60 = vector.extract_strided_slice %8 {offsets = [0, 125], sizes = [2, 256], strides = [1, 1]} : vector<2x512xf32> to vector<2x256xf32>
    %c70 = arith.constant 70 : index
    %61 = memref.load %arg1[%c70] : memref<98xf32, #tpu.memory_space<smem>>
    %62 = vector.broadcast %61 : f32 to vector<2x256xf32>
    %63 = arith.mulf %62, %60 : vector<2x256xf32>
    %64 = arith.addf %59, %63 : vector<2x256xf32>
    %65 = vector.extract_strided_slice %8 {offsets = [0, 141], sizes = [2, 256], strides = [1, 1]} : vector<2x512xf32> to vector<2x256xf32>
    %c77 = arith.constant 77 : index
    %66 = memref.load %arg1[%c77] : memref<98xf32, #tpu.memory_space<smem>>
    %67 = vector.broadcast %66 : f32 to vector<2x256xf32>
    %68 = arith.mulf %67, %65 : vector<2x256xf32>
    %69 = arith.addf %64, %68 : vector<2x256xf32>
    %70 = vector.extract_strided_slice %8 {offsets = [0, 157], sizes = [2, 256], strides = [1, 1]} : vector<2x512xf32> to vector<2x256xf32>
    %c84 = arith.constant 84 : index
    %71 = memref.load %arg1[%c84] : memref<98xf32, #tpu.memory_space<smem>>
    %72 = vector.broadcast %71 : f32 to vector<2x256xf32>
    %73 = arith.mulf %72, %70 : vector<2x256xf32>
    %74 = arith.addf %69, %73 : vector<2x256xf32>
    %75 = vector.extract_strided_slice %8 {offsets = [0, 173], sizes = [2, 256], strides = [1, 1]} : vector<2x512xf32> to vector<2x256xf32>
    %c91 = arith.constant 91 : index
    %76 = memref.load %arg1[%c91] : memref<98xf32, #tpu.memory_space<smem>>
    %77 = vector.broadcast %76 : f32 to vector<2x256xf32>
    %78 = arith.mulf %77, %75 : vector<2x256xf32>
    %79 = arith.addf %74, %78 : vector<2x256xf32>
    %c0_8 = arith.constant 0 : index
    %c0_9 = arith.constant 0 : index
    %80 = vector.load %arg3[%c0_8, %c0_9] : memref<7x256xf32, #tpu.memory_space<vmem>>, vector<1x256xf32>
    %81 = vector.broadcast %80 : vector<1x256xf32> to vector<2x256xf32>
    %82 = arith.mulf %81, %79 : vector<2x256xf32>
    %83 = arith.addf %10, %82 : vector<2x256xf32>
    %84 = vector.extract_strided_slice %7 {offsets = [0, 78], sizes = [2, 256], strides = [1, 1]} : vector<2x512xf32> to vector<2x256xf32>
    %c1 = arith.constant 1 : index
    %85 = memref.load %arg1[%c1] : memref<98xf32, #tpu.memory_space<smem>>
    %86 = vector.broadcast %85 : f32 to vector<2x256xf32>
    %87 = arith.mulf %86, %84 : vector<2x256xf32>
    %88 = vector.extract_strided_slice %7 {offsets = [0, 94], sizes = [2, 256], strides = [1, 1]} : vector<2x512xf32> to vector<2x256xf32>
    %c8 = arith.constant 8 : index
    %89 = memref.load %arg1[%c8] : memref<98xf32, #tpu.memory_space<smem>>
    %90 = vector.broadcast %89 : f32 to vector<2x256xf32>
    %91 = arith.mulf %90, %88 : vector<2x256xf32>
    %92 = arith.addf %87, %91 : vector<2x256xf32>
    %93 = vector.extract_strided_slice %7 {offsets = [0, 110], sizes = [2, 256], strides = [1, 1]} : vector<2x512xf32> to vector<2x256xf32>
    %c15 = arith.constant 15 : index
    %94 = memref.load %arg1[%c15] : memref<98xf32, #tpu.memory_space<smem>>
    %95 = vector.broadcast %94 : f32 to vector<2x256xf32>
    %96 = arith.mulf %95, %93 : vector<2x256xf32>
    %97 = arith.addf %92, %96 : vector<2x256xf32>
    %98 = vector.extract_strided_slice %7 {offsets = [0, 126], sizes = [2, 256], strides = [1, 1]} : vector<2x512xf32> to vector<2x256xf32>
    %c22 = arith.constant 22 : index
    %99 = memref.load %arg1[%c22] : memref<98xf32, #tpu.memory_space<smem>>
    %100 = vector.broadcast %99 : f32 to vector<2x256xf32>
    %101 = arith.mulf %100, %98 : vector<2x256xf32>
    %102 = arith.addf %97, %101 : vector<2x256xf32>
    %103 = vector.extract_strided_slice %7 {offsets = [0, 142], sizes = [2, 256], strides = [1, 1]} : vector<2x512xf32> to vector<2x256xf32>
    %c29 = arith.constant 29 : index
    %104 = memref.load %arg1[%c29] : memref<98xf32, #tpu.memory_space<smem>>
    %105 = vector.broadcast %104 : f32 to vector<2x256xf32>
    %106 = arith.mulf %105, %103 : vector<2x256xf32>
    %107 = arith.addf %102, %106 : vector<2x256xf32>
    %108 = vector.extract_strided_slice %7 {offsets = [0, 158], sizes = [2, 256], strides = [1, 1]} : vector<2x512xf32> to vector<2x256xf32>
    %c36 = arith.constant 36 : index
    %109 = memref.load %arg1[%c36] : memref<98xf32, #tpu.memory_space<smem>>
    %110 = vector.broadcast %109 : f32 to vector<2x256xf32>
    %111 = arith.mulf %110, %108 : vector<2x256xf32>
    %112 = arith.addf %107, %111 : vector<2x256xf32>
    %113 = vector.extract_strided_slice %7 {offsets = [0, 174], sizes = [2, 256], strides = [1, 1]} : vector<2x512xf32> to vector<2x256xf32>
    %c43 = arith.constant 43 : index
    %114 = memref.load %arg1[%c43] : memref<98xf32, #tpu.memory_space<smem>>
    %115 = vector.broadcast %114 : f32 to vector<2x256xf32>
    %116 = arith.mulf %115, %113 : vector<2x256xf32>
    %117 = arith.addf %112, %116 : vector<2x256xf32>
    %118 = vector.extract_strided_slice %8 {offsets = [0, 78], sizes = [2, 256], strides = [1, 1]} : vector<2x512xf32> to vector<2x256xf32>
    %c50 = arith.constant 50 : index
    %119 = memref.load %arg1[%c50] : memref<98xf32, #tpu.memory_space<smem>>
    %120 = vector.broadcast %119 : f32 to vector<2x256xf32>
    %121 = arith.mulf %120, %118 : vector<2x256xf32>
    %122 = arith.addf %117, %121 : vector<2x256xf32>
    %123 = vector.extract_strided_slice %8 {offsets = [0, 94], sizes = [2, 256], strides = [1, 1]} : vector<2x512xf32> to vector<2x256xf32>
    %c57 = arith.constant 57 : index
    %124 = memref.load %arg1[%c57] : memref<98xf32, #tpu.memory_space<smem>>
    %125 = vector.broadcast %124 : f32 to vector<2x256xf32>
    %126 = arith.mulf %125, %123 : vector<2x256xf32>
    %127 = arith.addf %122, %126 : vector<2x256xf32>
    %128 = vector.extract_strided_slice %8 {offsets = [0, 110], sizes = [2, 256], strides = [1, 1]} : vector<2x512xf32> to vector<2x256xf32>
    %c64 = arith.constant 64 : index
    %129 = memref.load %arg1[%c64] : memref<98xf32, #tpu.memory_space<smem>>
    %130 = vector.broadcast %129 : f32 to vector<2x256xf32>
    %131 = arith.mulf %130, %128 : vector<2x256xf32>
    %132 = arith.addf %127, %131 : vector<2x256xf32>
    %133 = vector.extract_strided_slice %8 {offsets = [0, 126], sizes = [2, 256], strides = [1, 1]} : vector<2x512xf32> to vector<2x256xf32>
    %c71 = arith.constant 71 : index
    %134 = memref.load %arg1[%c71] : memref<98xf32, #tpu.memory_space<smem>>
    %135 = vector.broadcast %134 : f32 to vector<2x256xf32>
    %136 = arith.mulf %135, %133 : vector<2x256xf32>
    %137 = arith.addf %132, %136 : vector<2x256xf32>
    %138 = vector.extract_strided_slice %8 {offsets = [0, 142], sizes = [2, 256], strides = [1, 1]} : vector<2x512xf32> to vector<2x256xf32>
    %c78 = arith.constant 78 : index
    %139 = memref.load %arg1[%c78] : memref<98xf32, #tpu.memory_space<smem>>
    %140 = vector.broadcast %139 : f32 to vector<2x256xf32>
    %141 = arith.mulf %140, %138 : vector<2x256xf32>
    %142 = arith.addf %137, %141 : vector<2x256xf32>
    %143 = vector.extract_strided_slice %8 {offsets = [0, 158], sizes = [2, 256], strides = [1, 1]} : vector<2x512xf32> to vector<2x256xf32>
    %c85 = arith.constant 85 : index
    %144 = memref.load %arg1[%c85] : memref<98xf32, #tpu.memory_space<smem>>
    %145 = vector.broadcast %144 : f32 to vector<2x256xf32>
    %146 = arith.mulf %145, %143 : vector<2x256xf32>
    %147 = arith.addf %142, %146 : vector<2x256xf32>
    %148 = vector.extract_strided_slice %8 {offsets = [0, 174], sizes = [2, 256], strides = [1, 1]} : vector<2x512xf32> to vector<2x256xf32>
    %c92 = arith.constant 92 : index
    %149 = memref.load %arg1[%c92] : memref<98xf32, #tpu.memory_space<smem>>
    %150 = vector.broadcast %149 : f32 to vector<2x256xf32>
    %151 = arith.mulf %150, %148 : vector<2x256xf32>
    %152 = arith.addf %147, %151 : vector<2x256xf32>
    %c1_10 = arith.constant 1 : index
    %c0_11 = arith.constant 0 : index
    %153 = vector.load %arg3[%c1_10, %c0_11] : memref<7x256xf32, #tpu.memory_space<vmem>>, vector<1x256xf32>
    %154 = vector.broadcast %153 : vector<1x256xf32> to vector<2x256xf32>
    %155 = arith.mulf %154, %152 : vector<2x256xf32>
    %156 = arith.addf %83, %155 : vector<2x256xf32>
    %157 = vector.extract_strided_slice %7 {offsets = [0, 79], sizes = [2, 256], strides = [1, 1]} : vector<2x512xf32> to vector<2x256xf32>
    %c2 = arith.constant 2 : index
    %158 = memref.load %arg1[%c2] : memref<98xf32, #tpu.memory_space<smem>>
    %159 = vector.broadcast %158 : f32 to vector<2x256xf32>
    %160 = arith.mulf %159, %157 : vector<2x256xf32>
    %161 = vector.extract_strided_slice %7 {offsets = [0, 95], sizes = [2, 256], strides = [1, 1]} : vector<2x512xf32> to vector<2x256xf32>
    %c9 = arith.constant 9 : index
    %162 = memref.load %arg1[%c9] : memref<98xf32, #tpu.memory_space<smem>>
    %163 = vector.broadcast %162 : f32 to vector<2x256xf32>
    %164 = arith.mulf %163, %161 : vector<2x256xf32>
    %165 = arith.addf %160, %164 : vector<2x256xf32>
    %166 = vector.extract_strided_slice %7 {offsets = [0, 111], sizes = [2, 256], strides = [1, 1]} : vector<2x512xf32> to vector<2x256xf32>
    %c16 = arith.constant 16 : index
    %167 = memref.load %arg1[%c16] : memref<98xf32, #tpu.memory_space<smem>>
    %168 = vector.broadcast %167 : f32 to vector<2x256xf32>
    %169 = arith.mulf %168, %166 : vector<2x256xf32>
    %170 = arith.addf %165, %169 : vector<2x256xf32>
    %171 = vector.extract_strided_slice %7 {offsets = [0, 127], sizes = [2, 256], strides = [1, 1]} : vector<2x512xf32> to vector<2x256xf32>
    %c23 = arith.constant 23 : index
    %172 = memref.load %arg1[%c23] : memref<98xf32, #tpu.memory_space<smem>>
    %173 = vector.broadcast %172 : f32 to vector<2x256xf32>
    %174 = arith.mulf %173, %171 : vector<2x256xf32>
    %175 = arith.addf %170, %174 : vector<2x256xf32>
    %176 = vector.extract_strided_slice %7 {offsets = [0, 143], sizes = [2, 256], strides = [1, 1]} : vector<2x512xf32> to vector<2x256xf32>
    %c30 = arith.constant 30 : index
    %177 = memref.load %arg1[%c30] : memref<98xf32, #tpu.memory_space<smem>>
    %178 = vector.broadcast %177 : f32 to vector<2x256xf32>
    %179 = arith.mulf %178, %176 : vector<2x256xf32>
    %180 = arith.addf %175, %179 : vector<2x256xf32>
    %181 = vector.extract_strided_slice %7 {offsets = [0, 159], sizes = [2, 256], strides = [1, 1]} : vector<2x512xf32> to vector<2x256xf32>
    %c37 = arith.constant 37 : index
    %182 = memref.load %arg1[%c37] : memref<98xf32, #tpu.memory_space<smem>>
    %183 = vector.broadcast %182 : f32 to vector<2x256xf32>
    %184 = arith.mulf %183, %181 : vector<2x256xf32>
    %185 = arith.addf %180, %184 : vector<2x256xf32>
    %186 = vector.extract_strided_slice %7 {offsets = [0, 175], sizes = [2, 256], strides = [1, 1]} : vector<2x512xf32> to vector<2x256xf32>
    %c44 = arith.constant 44 : index
    %187 = memref.load %arg1[%c44] : memref<98xf32, #tpu.memory_space<smem>>
    %188 = vector.broadcast %187 : f32 to vector<2x256xf32>
    %189 = arith.mulf %188, %186 : vector<2x256xf32>
    %190 = arith.addf %185, %189 : vector<2x256xf32>
    %191 = vector.extract_strided_slice %8 {offsets = [0, 79], sizes = [2, 256], strides = [1, 1]} : vector<2x512xf32> to vector<2x256xf32>
    %c51 = arith.constant 51 : index
    %192 = memref.load %arg1[%c51] : memref<98xf32, #tpu.memory_space<smem>>
    %193 = vector.broadcast %192 : f32 to vector<2x256xf32>
    %194 = arith.mulf %193, %191 : vector<2x256xf32>
    %195 = arith.addf %190, %194 : vector<2x256xf32>
    %196 = vector.extract_strided_slice %8 {offsets = [0, 95], sizes = [2, 256], strides = [1, 1]} : vector<2x512xf32> to vector<2x256xf32>
    %c58 = arith.constant 58 : index
    %197 = memref.load %arg1[%c58] : memref<98xf32, #tpu.memory_space<smem>>
    %198 = vector.broadcast %197 : f32 to vector<2x256xf32>
    %199 = arith.mulf %198, %196 : vector<2x256xf32>
    %200 = arith.addf %195, %199 : vector<2x256xf32>
    %201 = vector.extract_strided_slice %8 {offsets = [0, 111], sizes = [2, 256], strides = [1, 1]} : vector<2x512xf32> to vector<2x256xf32>
    %c65 = arith.constant 65 : index
    %202 = memref.load %arg1[%c65] : memref<98xf32, #tpu.memory_space<smem>>
    %203 = vector.broadcast %202 : f32 to vector<2x256xf32>
    %204 = arith.mulf %203, %201 : vector<2x256xf32>
    %205 = arith.addf %200, %204 : vector<2x256xf32>
    %206 = vector.extract_strided_slice %8 {offsets = [0, 127], sizes = [2, 256], strides = [1, 1]} : vector<2x512xf32> to vector<2x256xf32>
    %c72 = arith.constant 72 : index
    %207 = memref.load %arg1[%c72] : memref<98xf32, #tpu.memory_space<smem>>
    %208 = vector.broadcast %207 : f32 to vector<2x256xf32>
    %209 = arith.mulf %208, %206 : vector<2x256xf32>
    %210 = arith.addf %205, %209 : vector<2x256xf32>
    %211 = vector.extract_strided_slice %8 {offsets = [0, 143], sizes = [2, 256], strides = [1, 1]} : vector<2x512xf32> to vector<2x256xf32>
    %c79 = arith.constant 79 : index
    %212 = memref.load %arg1[%c79] : memref<98xf32, #tpu.memory_space<smem>>
    %213 = vector.broadcast %212 : f32 to vector<2x256xf32>
    %214 = arith.mulf %213, %211 : vector<2x256xf32>
    %215 = arith.addf %210, %214 : vector<2x256xf32>
    %216 = vector.extract_strided_slice %8 {offsets = [0, 159], sizes = [2, 256], strides = [1, 1]} : vector<2x512xf32> to vector<2x256xf32>
    %c86 = arith.constant 86 : index
    %217 = memref.load %arg1[%c86] : memref<98xf32, #tpu.memory_space<smem>>
    %218 = vector.broadcast %217 : f32 to vector<2x256xf32>
    %219 = arith.mulf %218, %216 : vector<2x256xf32>
    %220 = arith.addf %215, %219 : vector<2x256xf32>
    %221 = vector.extract_strided_slice %8 {offsets = [0, 175], sizes = [2, 256], strides = [1, 1]} : vector<2x512xf32> to vector<2x256xf32>
    %c93 = arith.constant 93 : index
    %222 = memref.load %arg1[%c93] : memref<98xf32, #tpu.memory_space<smem>>
    %223 = vector.broadcast %222 : f32 to vector<2x256xf32>
    %224 = arith.mulf %223, %221 : vector<2x256xf32>
    %225 = arith.addf %220, %224 : vector<2x256xf32>
    %c2_12 = arith.constant 2 : index
    %c0_13 = arith.constant 0 : index
    %226 = vector.load %arg3[%c2_12, %c0_13] : memref<7x256xf32, #tpu.memory_space<vmem>>, vector<1x256xf32>
    %227 = vector.broadcast %226 : vector<1x256xf32> to vector<2x256xf32>
    %228 = arith.mulf %227, %225 : vector<2x256xf32>
    %229 = arith.addf %156, %228 : vector<2x256xf32>
    %230 = vector.extract_strided_slice %7 {offsets = [0, 80], sizes = [2, 256], strides = [1, 1]} : vector<2x512xf32> to vector<2x256xf32>
    %c3 = arith.constant 3 : index
    %231 = memref.load %arg1[%c3] : memref<98xf32, #tpu.memory_space<smem>>
    %232 = vector.broadcast %231 : f32 to vector<2x256xf32>
    %233 = arith.mulf %232, %230 : vector<2x256xf32>
    %234 = vector.extract_strided_slice %7 {offsets = [0, 96], sizes = [2, 256], strides = [1, 1]} : vector<2x512xf32> to vector<2x256xf32>
    %c10 = arith.constant 10 : index
    %235 = memref.load %arg1[%c10] : memref<98xf32, #tpu.memory_space<smem>>
    %236 = vector.broadcast %235 : f32 to vector<2x256xf32>
    %237 = arith.mulf %236, %234 : vector<2x256xf32>
    %238 = arith.addf %233, %237 : vector<2x256xf32>
    %239 = vector.extract_strided_slice %7 {offsets = [0, 112], sizes = [2, 256], strides = [1, 1]} : vector<2x512xf32> to vector<2x256xf32>
    %c17 = arith.constant 17 : index
    %240 = memref.load %arg1[%c17] : memref<98xf32, #tpu.memory_space<smem>>
    %241 = vector.broadcast %240 : f32 to vector<2x256xf32>
    %242 = arith.mulf %241, %239 : vector<2x256xf32>
    %243 = arith.addf %238, %242 : vector<2x256xf32>
    %244 = vector.extract_strided_slice %7 {offsets = [0, 128], sizes = [2, 256], strides = [1, 1]} : vector<2x512xf32> to vector<2x256xf32>
    %c24 = arith.constant 24 : index
    %245 = memref.load %arg1[%c24] : memref<98xf32, #tpu.memory_space<smem>>
    %246 = vector.broadcast %245 : f32 to vector<2x256xf32>
    %247 = arith.mulf %246, %244 : vector<2x256xf32>
    %248 = arith.addf %243, %247 : vector<2x256xf32>
    %249 = vector.extract_strided_slice %7 {offsets = [0, 144], sizes = [2, 256], strides = [1, 1]} : vector<2x512xf32> to vector<2x256xf32>
    %c31 = arith.constant 31 : index
    %250 = memref.load %arg1[%c31] : memref<98xf32, #tpu.memory_space<smem>>
    %251 = vector.broadcast %250 : f32 to vector<2x256xf32>
    %252 = arith.mulf %251, %249 : vector<2x256xf32>
    %253 = arith.addf %248, %252 : vector<2x256xf32>
    %254 = vector.extract_strided_slice %7 {offsets = [0, 160], sizes = [2, 256], strides = [1, 1]} : vector<2x512xf32> to vector<2x256xf32>
    %c38 = arith.constant 38 : index
    %255 = memref.load %arg1[%c38] : memref<98xf32, #tpu.memory_space<smem>>
    %256 = vector.broadcast %255 : f32 to vector<2x256xf32>
    %257 = arith.mulf %256, %254 : vector<2x256xf32>
    %258 = arith.addf %253, %257 : vector<2x256xf32>
    %259 = vector.extract_strided_slice %7 {offsets = [0, 176], sizes = [2, 256], strides = [1, 1]} : vector<2x512xf32> to vector<2x256xf32>
    %c45 = arith.constant 45 : index
    %260 = memref.load %arg1[%c45] : memref<98xf32, #tpu.memory_space<smem>>
    %261 = vector.broadcast %260 : f32 to vector<2x256xf32>
    %262 = arith.mulf %261, %259 : vector<2x256xf32>
    %263 = arith.addf %258, %262 : vector<2x256xf32>
    %264 = vector.extract_strided_slice %8 {offsets = [0, 80], sizes = [2, 256], strides = [1, 1]} : vector<2x512xf32> to vector<2x256xf32>
    %c52 = arith.constant 52 : index
    %265 = memref.load %arg1[%c52] : memref<98xf32, #tpu.memory_space<smem>>
    %266 = vector.broadcast %265 : f32 to vector<2x256xf32>
    %267 = arith.mulf %266, %264 : vector<2x256xf32>
    %268 = arith.addf %263, %267 : vector<2x256xf32>
    %269 = vector.extract_strided_slice %8 {offsets = [0, 96], sizes = [2, 256], strides = [1, 1]} : vector<2x512xf32> to vector<2x256xf32>
    %c59 = arith.constant 59 : index
    %270 = memref.load %arg1[%c59] : memref<98xf32, #tpu.memory_space<smem>>
    %271 = vector.broadcast %270 : f32 to vector<2x256xf32>
    %272 = arith.mulf %271, %269 : vector<2x256xf32>
    %273 = arith.addf %268, %272 : vector<2x256xf32>
    %274 = vector.extract_strided_slice %8 {offsets = [0, 112], sizes = [2, 256], strides = [1, 1]} : vector<2x512xf32> to vector<2x256xf32>
    %c66 = arith.constant 66 : index
    %275 = memref.load %arg1[%c66] : memref<98xf32, #tpu.memory_space<smem>>
    %276 = vector.broadcast %275 : f32 to vector<2x256xf32>
    %277 = arith.mulf %276, %274 : vector<2x256xf32>
    %278 = arith.addf %273, %277 : vector<2x256xf32>
    %279 = vector.extract_strided_slice %8 {offsets = [0, 128], sizes = [2, 256], strides = [1, 1]} : vector<2x512xf32> to vector<2x256xf32>
    %c73 = arith.constant 73 : index
    %280 = memref.load %arg1[%c73] : memref<98xf32, #tpu.memory_space<smem>>
    %281 = vector.broadcast %280 : f32 to vector<2x256xf32>
    %282 = arith.mulf %281, %279 : vector<2x256xf32>
    %283 = arith.addf %278, %282 : vector<2x256xf32>
    %284 = vector.extract_strided_slice %8 {offsets = [0, 144], sizes = [2, 256], strides = [1, 1]} : vector<2x512xf32> to vector<2x256xf32>
    %c80 = arith.constant 80 : index
    %285 = memref.load %arg1[%c80] : memref<98xf32, #tpu.memory_space<smem>>
    %286 = vector.broadcast %285 : f32 to vector<2x256xf32>
    %287 = arith.mulf %286, %284 : vector<2x256xf32>
    %288 = arith.addf %283, %287 : vector<2x256xf32>
    %289 = vector.extract_strided_slice %8 {offsets = [0, 160], sizes = [2, 256], strides = [1, 1]} : vector<2x512xf32> to vector<2x256xf32>
    %c87 = arith.constant 87 : index
    %290 = memref.load %arg1[%c87] : memref<98xf32, #tpu.memory_space<smem>>
    %291 = vector.broadcast %290 : f32 to vector<2x256xf32>
    %292 = arith.mulf %291, %289 : vector<2x256xf32>
    %293 = arith.addf %288, %292 : vector<2x256xf32>
    %294 = vector.extract_strided_slice %8 {offsets = [0, 176], sizes = [2, 256], strides = [1, 1]} : vector<2x512xf32> to vector<2x256xf32>
    %c94 = arith.constant 94 : index
    %295 = memref.load %arg1[%c94] : memref<98xf32, #tpu.memory_space<smem>>
    %296 = vector.broadcast %295 : f32 to vector<2x256xf32>
    %297 = arith.mulf %296, %294 : vector<2x256xf32>
    %298 = arith.addf %293, %297 : vector<2x256xf32>
    %c3_14 = arith.constant 3 : index
    %c0_15 = arith.constant 0 : index
    %299 = vector.load %arg3[%c3_14, %c0_15] : memref<7x256xf32, #tpu.memory_space<vmem>>, vector<1x256xf32>
    %300 = vector.broadcast %299 : vector<1x256xf32> to vector<2x256xf32>
    %301 = arith.mulf %300, %298 : vector<2x256xf32>
    %302 = arith.addf %229, %301 : vector<2x256xf32>
    %303 = vector.extract_strided_slice %7 {offsets = [0, 81], sizes = [2, 256], strides = [1, 1]} : vector<2x512xf32> to vector<2x256xf32>
    %c4 = arith.constant 4 : index
    %304 = memref.load %arg1[%c4] : memref<98xf32, #tpu.memory_space<smem>>
    %305 = vector.broadcast %304 : f32 to vector<2x256xf32>
    %306 = arith.mulf %305, %303 : vector<2x256xf32>
    %307 = vector.extract_strided_slice %7 {offsets = [0, 97], sizes = [2, 256], strides = [1, 1]} : vector<2x512xf32> to vector<2x256xf32>
    %c11 = arith.constant 11 : index
    %308 = memref.load %arg1[%c11] : memref<98xf32, #tpu.memory_space<smem>>
    %309 = vector.broadcast %308 : f32 to vector<2x256xf32>
    %310 = arith.mulf %309, %307 : vector<2x256xf32>
    %311 = arith.addf %306, %310 : vector<2x256xf32>
    %312 = vector.extract_strided_slice %7 {offsets = [0, 113], sizes = [2, 256], strides = [1, 1]} : vector<2x512xf32> to vector<2x256xf32>
    %c18 = arith.constant 18 : index
    %313 = memref.load %arg1[%c18] : memref<98xf32, #tpu.memory_space<smem>>
    %314 = vector.broadcast %313 : f32 to vector<2x256xf32>
    %315 = arith.mulf %314, %312 : vector<2x256xf32>
    %316 = arith.addf %311, %315 : vector<2x256xf32>
    %317 = vector.extract_strided_slice %7 {offsets = [0, 129], sizes = [2, 256], strides = [1, 1]} : vector<2x512xf32> to vector<2x256xf32>
    %c25 = arith.constant 25 : index
    %318 = memref.load %arg1[%c25] : memref<98xf32, #tpu.memory_space<smem>>
    %319 = vector.broadcast %318 : f32 to vector<2x256xf32>
    %320 = arith.mulf %319, %317 : vector<2x256xf32>
    %321 = arith.addf %316, %320 : vector<2x256xf32>
    %322 = vector.extract_strided_slice %7 {offsets = [0, 145], sizes = [2, 256], strides = [1, 1]} : vector<2x512xf32> to vector<2x256xf32>
    %c32 = arith.constant 32 : index
    %323 = memref.load %arg1[%c32] : memref<98xf32, #tpu.memory_space<smem>>
    %324 = vector.broadcast %323 : f32 to vector<2x256xf32>
    %325 = arith.mulf %324, %322 : vector<2x256xf32>
    %326 = arith.addf %321, %325 : vector<2x256xf32>
    %327 = vector.extract_strided_slice %7 {offsets = [0, 161], sizes = [2, 256], strides = [1, 1]} : vector<2x512xf32> to vector<2x256xf32>
    %c39 = arith.constant 39 : index
    %328 = memref.load %arg1[%c39] : memref<98xf32, #tpu.memory_space<smem>>
    %329 = vector.broadcast %328 : f32 to vector<2x256xf32>
    %330 = arith.mulf %329, %327 : vector<2x256xf32>
    %331 = arith.addf %326, %330 : vector<2x256xf32>
    %332 = vector.extract_strided_slice %7 {offsets = [0, 177], sizes = [2, 256], strides = [1, 1]} : vector<2x512xf32> to vector<2x256xf32>
    %c46 = arith.constant 46 : index
    %333 = memref.load %arg1[%c46] : memref<98xf32, #tpu.memory_space<smem>>
    %334 = vector.broadcast %333 : f32 to vector<2x256xf32>
    %335 = arith.mulf %334, %332 : vector<2x256xf32>
    %336 = arith.addf %331, %335 : vector<2x256xf32>
    %337 = vector.extract_strided_slice %8 {offsets = [0, 81], sizes = [2, 256], strides = [1, 1]} : vector<2x512xf32> to vector<2x256xf32>
    %c53 = arith.constant 53 : index
    %338 = memref.load %arg1[%c53] : memref<98xf32, #tpu.memory_space<smem>>
    %339 = vector.broadcast %338 : f32 to vector<2x256xf32>
    %340 = arith.mulf %339, %337 : vector<2x256xf32>
    %341 = arith.addf %336, %340 : vector<2x256xf32>
    %342 = vector.extract_strided_slice %8 {offsets = [0, 97], sizes = [2, 256], strides = [1, 1]} : vector<2x512xf32> to vector<2x256xf32>
    %c60 = arith.constant 60 : index
    %343 = memref.load %arg1[%c60] : memref<98xf32, #tpu.memory_space<smem>>
    %344 = vector.broadcast %343 : f32 to vector<2x256xf32>
    %345 = arith.mulf %344, %342 : vector<2x256xf32>
    %346 = arith.addf %341, %345 : vector<2x256xf32>
    %347 = vector.extract_strided_slice %8 {offsets = [0, 113], sizes = [2, 256], strides = [1, 1]} : vector<2x512xf32> to vector<2x256xf32>
    %c67 = arith.constant 67 : index
    %348 = memref.load %arg1[%c67] : memref<98xf32, #tpu.memory_space<smem>>
    %349 = vector.broadcast %348 : f32 to vector<2x256xf32>
    %350 = arith.mulf %349, %347 : vector<2x256xf32>
    %351 = arith.addf %346, %350 : vector<2x256xf32>
    %352 = vector.extract_strided_slice %8 {offsets = [0, 129], sizes = [2, 256], strides = [1, 1]} : vector<2x512xf32> to vector<2x256xf32>
    %c74 = arith.constant 74 : index
    %353 = memref.load %arg1[%c74] : memref<98xf32, #tpu.memory_space<smem>>
    %354 = vector.broadcast %353 : f32 to vector<2x256xf32>
    %355 = arith.mulf %354, %352 : vector<2x256xf32>
    %356 = arith.addf %351, %355 : vector<2x256xf32>
    %357 = vector.extract_strided_slice %8 {offsets = [0, 145], sizes = [2, 256], strides = [1, 1]} : vector<2x512xf32> to vector<2x256xf32>
    %c81 = arith.constant 81 : index
    %358 = memref.load %arg1[%c81] : memref<98xf32, #tpu.memory_space<smem>>
    %359 = vector.broadcast %358 : f32 to vector<2x256xf32>
    %360 = arith.mulf %359, %357 : vector<2x256xf32>
    %361 = arith.addf %356, %360 : vector<2x256xf32>
    %362 = vector.extract_strided_slice %8 {offsets = [0, 161], sizes = [2, 256], strides = [1, 1]} : vector<2x512xf32> to vector<2x256xf32>
    %c88 = arith.constant 88 : index
    %363 = memref.load %arg1[%c88] : memref<98xf32, #tpu.memory_space<smem>>
    %364 = vector.broadcast %363 : f32 to vector<2x256xf32>
    %365 = arith.mulf %364, %362 : vector<2x256xf32>
    %366 = arith.addf %361, %365 : vector<2x256xf32>
    %367 = vector.extract_strided_slice %8 {offsets = [0, 177], sizes = [2, 256], strides = [1, 1]} : vector<2x512xf32> to vector<2x256xf32>
    %c95 = arith.constant 95 : index
    %368 = memref.load %arg1[%c95] : memref<98xf32, #tpu.memory_space<smem>>
    %369 = vector.broadcast %368 : f32 to vector<2x256xf32>
    %370 = arith.mulf %369, %367 : vector<2x256xf32>
    %371 = arith.addf %366, %370 : vector<2x256xf32>
    %c4_16 = arith.constant 4 : index
    %c0_17 = arith.constant 0 : index
    %372 = vector.load %arg3[%c4_16, %c0_17] : memref<7x256xf32, #tpu.memory_space<vmem>>, vector<1x256xf32>
    %373 = vector.broadcast %372 : vector<1x256xf32> to vector<2x256xf32>
    %374 = arith.mulf %373, %371 : vector<2x256xf32>
    %375 = arith.addf %302, %374 : vector<2x256xf32>
    %376 = vector.extract_strided_slice %7 {offsets = [0, 82], sizes = [2, 256], strides = [1, 1]} : vector<2x512xf32> to vector<2x256xf32>
    %c5 = arith.constant 5 : index
    %377 = memref.load %arg1[%c5] : memref<98xf32, #tpu.memory_space<smem>>
    %378 = vector.broadcast %377 : f32 to vector<2x256xf32>
    %379 = arith.mulf %378, %376 : vector<2x256xf32>
    %380 = vector.extract_strided_slice %7 {offsets = [0, 98], sizes = [2, 256], strides = [1, 1]} : vector<2x512xf32> to vector<2x256xf32>
    %c12 = arith.constant 12 : index
    %381 = memref.load %arg1[%c12] : memref<98xf32, #tpu.memory_space<smem>>
    %382 = vector.broadcast %381 : f32 to vector<2x256xf32>
    %383 = arith.mulf %382, %380 : vector<2x256xf32>
    %384 = arith.addf %379, %383 : vector<2x256xf32>
    %385 = vector.extract_strided_slice %7 {offsets = [0, 114], sizes = [2, 256], strides = [1, 1]} : vector<2x512xf32> to vector<2x256xf32>
    %c19 = arith.constant 19 : index
    %386 = memref.load %arg1[%c19] : memref<98xf32, #tpu.memory_space<smem>>
    %387 = vector.broadcast %386 : f32 to vector<2x256xf32>
    %388 = arith.mulf %387, %385 : vector<2x256xf32>
    %389 = arith.addf %384, %388 : vector<2x256xf32>
    %390 = vector.extract_strided_slice %7 {offsets = [0, 130], sizes = [2, 256], strides = [1, 1]} : vector<2x512xf32> to vector<2x256xf32>
    %c26 = arith.constant 26 : index
    %391 = memref.load %arg1[%c26] : memref<98xf32, #tpu.memory_space<smem>>
    %392 = vector.broadcast %391 : f32 to vector<2x256xf32>
    %393 = arith.mulf %392, %390 : vector<2x256xf32>
    %394 = arith.addf %389, %393 : vector<2x256xf32>
    %395 = vector.extract_strided_slice %7 {offsets = [0, 146], sizes = [2, 256], strides = [1, 1]} : vector<2x512xf32> to vector<2x256xf32>
    %c33 = arith.constant 33 : index
    %396 = memref.load %arg1[%c33] : memref<98xf32, #tpu.memory_space<smem>>
    %397 = vector.broadcast %396 : f32 to vector<2x256xf32>
    %398 = arith.mulf %397, %395 : vector<2x256xf32>
    %399 = arith.addf %394, %398 : vector<2x256xf32>
    %400 = vector.extract_strided_slice %7 {offsets = [0, 162], sizes = [2, 256], strides = [1, 1]} : vector<2x512xf32> to vector<2x256xf32>
    %c40 = arith.constant 40 : index
    %401 = memref.load %arg1[%c40] : memref<98xf32, #tpu.memory_space<smem>>
    %402 = vector.broadcast %401 : f32 to vector<2x256xf32>
    %403 = arith.mulf %402, %400 : vector<2x256xf32>
    %404 = arith.addf %399, %403 : vector<2x256xf32>
    %405 = vector.extract_strided_slice %7 {offsets = [0, 178], sizes = [2, 256], strides = [1, 1]} : vector<2x512xf32> to vector<2x256xf32>
    %c47 = arith.constant 47 : index
    %406 = memref.load %arg1[%c47] : memref<98xf32, #tpu.memory_space<smem>>
    %407 = vector.broadcast %406 : f32 to vector<2x256xf32>
    %408 = arith.mulf %407, %405 : vector<2x256xf32>
    %409 = arith.addf %404, %408 : vector<2x256xf32>
    %410 = vector.extract_strided_slice %8 {offsets = [0, 82], sizes = [2, 256], strides = [1, 1]} : vector<2x512xf32> to vector<2x256xf32>
    %c54 = arith.constant 54 : index
    %411 = memref.load %arg1[%c54] : memref<98xf32, #tpu.memory_space<smem>>
    %412 = vector.broadcast %411 : f32 to vector<2x256xf32>
    %413 = arith.mulf %412, %410 : vector<2x256xf32>
    %414 = arith.addf %409, %413 : vector<2x256xf32>
    %415 = vector.extract_strided_slice %8 {offsets = [0, 98], sizes = [2, 256], strides = [1, 1]} : vector<2x512xf32> to vector<2x256xf32>
    %c61 = arith.constant 61 : index
    %416 = memref.load %arg1[%c61] : memref<98xf32, #tpu.memory_space<smem>>
    %417 = vector.broadcast %416 : f32 to vector<2x256xf32>
    %418 = arith.mulf %417, %415 : vector<2x256xf32>
    %419 = arith.addf %414, %418 : vector<2x256xf32>
    %420 = vector.extract_strided_slice %8 {offsets = [0, 114], sizes = [2, 256], strides = [1, 1]} : vector<2x512xf32> to vector<2x256xf32>
    %c68 = arith.constant 68 : index
    %421 = memref.load %arg1[%c68] : memref<98xf32, #tpu.memory_space<smem>>
    %422 = vector.broadcast %421 : f32 to vector<2x256xf32>
    %423 = arith.mulf %422, %420 : vector<2x256xf32>
    %424 = arith.addf %419, %423 : vector<2x256xf32>
    %425 = vector.extract_strided_slice %8 {offsets = [0, 130], sizes = [2, 256], strides = [1, 1]} : vector<2x512xf32> to vector<2x256xf32>
    %c75 = arith.constant 75 : index
    %426 = memref.load %arg1[%c75] : memref<98xf32, #tpu.memory_space<smem>>
    %427 = vector.broadcast %426 : f32 to vector<2x256xf32>
    %428 = arith.mulf %427, %425 : vector<2x256xf32>
    %429 = arith.addf %424, %428 : vector<2x256xf32>
    %430 = vector.extract_strided_slice %8 {offsets = [0, 146], sizes = [2, 256], strides = [1, 1]} : vector<2x512xf32> to vector<2x256xf32>
    %c82 = arith.constant 82 : index
    %431 = memref.load %arg1[%c82] : memref<98xf32, #tpu.memory_space<smem>>
    %432 = vector.broadcast %431 : f32 to vector<2x256xf32>
    %433 = arith.mulf %432, %430 : vector<2x256xf32>
    %434 = arith.addf %429, %433 : vector<2x256xf32>
    %435 = vector.extract_strided_slice %8 {offsets = [0, 162], sizes = [2, 256], strides = [1, 1]} : vector<2x512xf32> to vector<2x256xf32>
    %c89 = arith.constant 89 : index
    %436 = memref.load %arg1[%c89] : memref<98xf32, #tpu.memory_space<smem>>
    %437 = vector.broadcast %436 : f32 to vector<2x256xf32>
    %438 = arith.mulf %437, %435 : vector<2x256xf32>
    %439 = arith.addf %434, %438 : vector<2x256xf32>
    %440 = vector.extract_strided_slice %8 {offsets = [0, 178], sizes = [2, 256], strides = [1, 1]} : vector<2x512xf32> to vector<2x256xf32>
    %c96 = arith.constant 96 : index
    %441 = memref.load %arg1[%c96] : memref<98xf32, #tpu.memory_space<smem>>
    %442 = vector.broadcast %441 : f32 to vector<2x256xf32>
    %443 = arith.mulf %442, %440 : vector<2x256xf32>
    %444 = arith.addf %439, %443 : vector<2x256xf32>
    %c5_18 = arith.constant 5 : index
    %c0_19 = arith.constant 0 : index
    %445 = vector.load %arg3[%c5_18, %c0_19] : memref<7x256xf32, #tpu.memory_space<vmem>>, vector<1x256xf32>
    %446 = vector.broadcast %445 : vector<1x256xf32> to vector<2x256xf32>
    %447 = arith.mulf %446, %444 : vector<2x256xf32>
    %448 = arith.addf %375, %447 : vector<2x256xf32>
    %449 = vector.extract_strided_slice %7 {offsets = [0, 83], sizes = [2, 256], strides = [1, 1]} : vector<2x512xf32> to vector<2x256xf32>
    %c6 = arith.constant 6 : index
    %450 = memref.load %arg1[%c6] : memref<98xf32, #tpu.memory_space<smem>>
    %451 = vector.broadcast %450 : f32 to vector<2x256xf32>
    %452 = arith.mulf %451, %449 : vector<2x256xf32>
    %453 = vector.extract_strided_slice %7 {offsets = [0, 99], sizes = [2, 256], strides = [1, 1]} : vector<2x512xf32> to vector<2x256xf32>
    %c13 = arith.constant 13 : index
    %454 = memref.load %arg1[%c13] : memref<98xf32, #tpu.memory_space<smem>>
    %455 = vector.broadcast %454 : f32 to vector<2x256xf32>
    %456 = arith.mulf %455, %453 : vector<2x256xf32>
    %457 = arith.addf %452, %456 : vector<2x256xf32>
    %458 = vector.extract_strided_slice %7 {offsets = [0, 115], sizes = [2, 256], strides = [1, 1]} : vector<2x512xf32> to vector<2x256xf32>
    %c20 = arith.constant 20 : index
    %459 = memref.load %arg1[%c20] : memref<98xf32, #tpu.memory_space<smem>>
    %460 = vector.broadcast %459 : f32 to vector<2x256xf32>
    %461 = arith.mulf %460, %458 : vector<2x256xf32>
    %462 = arith.addf %457, %461 : vector<2x256xf32>
    %463 = vector.extract_strided_slice %7 {offsets = [0, 131], sizes = [2, 256], strides = [1, 1]} : vector<2x512xf32> to vector<2x256xf32>
    %c27 = arith.constant 27 : index
    %464 = memref.load %arg1[%c27] : memref<98xf32, #tpu.memory_space<smem>>
    %465 = vector.broadcast %464 : f32 to vector<2x256xf32>
    %466 = arith.mulf %465, %463 : vector<2x256xf32>
    %467 = arith.addf %462, %466 : vector<2x256xf32>
    %468 = vector.extract_strided_slice %7 {offsets = [0, 147], sizes = [2, 256], strides = [1, 1]} : vector<2x512xf32> to vector<2x256xf32>
    %c34 = arith.constant 34 : index
    %469 = memref.load %arg1[%c34] : memref<98xf32, #tpu.memory_space<smem>>
    %470 = vector.broadcast %469 : f32 to vector<2x256xf32>
    %471 = arith.mulf %470, %468 : vector<2x256xf32>
    %472 = arith.addf %467, %471 : vector<2x256xf32>
    %473 = vector.extract_strided_slice %7 {offsets = [0, 163], sizes = [2, 256], strides = [1, 1]} : vector<2x512xf32> to vector<2x256xf32>
    %c41 = arith.constant 41 : index
    %474 = memref.load %arg1[%c41] : memref<98xf32, #tpu.memory_space<smem>>
    %475 = vector.broadcast %474 : f32 to vector<2x256xf32>
    %476 = arith.mulf %475, %473 : vector<2x256xf32>
    %477 = arith.addf %472, %476 : vector<2x256xf32>
    %478 = vector.extract_strided_slice %7 {offsets = [0, 179], sizes = [2, 256], strides = [1, 1]} : vector<2x512xf32> to vector<2x256xf32>
    %c48 = arith.constant 48 : index
    %479 = memref.load %arg1[%c48] : memref<98xf32, #tpu.memory_space<smem>>
    %480 = vector.broadcast %479 : f32 to vector<2x256xf32>
    %481 = arith.mulf %480, %478 : vector<2x256xf32>
    %482 = arith.addf %477, %481 : vector<2x256xf32>
    %483 = vector.extract_strided_slice %8 {offsets = [0, 83], sizes = [2, 256], strides = [1, 1]} : vector<2x512xf32> to vector<2x256xf32>
    %c55 = arith.constant 55 : index
    %484 = memref.load %arg1[%c55] : memref<98xf32, #tpu.memory_space<smem>>
    %485 = vector.broadcast %484 : f32 to vector<2x256xf32>
    %486 = arith.mulf %485, %483 : vector<2x256xf32>
    %487 = arith.addf %482, %486 : vector<2x256xf32>
    %488 = vector.extract_strided_slice %8 {offsets = [0, 99], sizes = [2, 256], strides = [1, 1]} : vector<2x512xf32> to vector<2x256xf32>
    %c62 = arith.constant 62 : index
    %489 = memref.load %arg1[%c62] : memref<98xf32, #tpu.memory_space<smem>>
    %490 = vector.broadcast %489 : f32 to vector<2x256xf32>
    %491 = arith.mulf %490, %488 : vector<2x256xf32>
    %492 = arith.addf %487, %491 : vector<2x256xf32>
    %493 = vector.extract_strided_slice %8 {offsets = [0, 115], sizes = [2, 256], strides = [1, 1]} : vector<2x512xf32> to vector<2x256xf32>
    %c69 = arith.constant 69 : index
    %494 = memref.load %arg1[%c69] : memref<98xf32, #tpu.memory_space<smem>>
    %495 = vector.broadcast %494 : f32 to vector<2x256xf32>
    %496 = arith.mulf %495, %493 : vector<2x256xf32>
    %497 = arith.addf %492, %496 : vector<2x256xf32>
    %498 = vector.extract_strided_slice %8 {offsets = [0, 131], sizes = [2, 256], strides = [1, 1]} : vector<2x512xf32> to vector<2x256xf32>
    %c76 = arith.constant 76 : index
    %499 = memref.load %arg1[%c76] : memref<98xf32, #tpu.memory_space<smem>>
    %500 = vector.broadcast %499 : f32 to vector<2x256xf32>
    %501 = arith.mulf %500, %498 : vector<2x256xf32>
    %502 = arith.addf %497, %501 : vector<2x256xf32>
    %503 = vector.extract_strided_slice %8 {offsets = [0, 147], sizes = [2, 256], strides = [1, 1]} : vector<2x512xf32> to vector<2x256xf32>
    %c83 = arith.constant 83 : index
    %504 = memref.load %arg1[%c83] : memref<98xf32, #tpu.memory_space<smem>>
    %505 = vector.broadcast %504 : f32 to vector<2x256xf32>
    %506 = arith.mulf %505, %503 : vector<2x256xf32>
    %507 = arith.addf %502, %506 : vector<2x256xf32>
    %508 = vector.extract_strided_slice %8 {offsets = [0, 163], sizes = [2, 256], strides = [1, 1]} : vector<2x512xf32> to vector<2x256xf32>
    %c90 = arith.constant 90 : index
    %509 = memref.load %arg1[%c90] : memref<98xf32, #tpu.memory_space<smem>>
    %510 = vector.broadcast %509 : f32 to vector<2x256xf32>
    %511 = arith.mulf %510, %508 : vector<2x256xf32>
    %512 = arith.addf %507, %511 : vector<2x256xf32>
    %513 = vector.extract_strided_slice %8 {offsets = [0, 179], sizes = [2, 256], strides = [1, 1]} : vector<2x512xf32> to vector<2x256xf32>
    %c97 = arith.constant 97 : index
    %514 = memref.load %arg1[%c97] : memref<98xf32, #tpu.memory_space<smem>>
    %515 = vector.broadcast %514 : f32 to vector<2x256xf32>
    %516 = arith.mulf %515, %513 : vector<2x256xf32>
    %517 = arith.addf %512, %516 : vector<2x256xf32>
    %c6_20 = arith.constant 6 : index
    %c0_21 = arith.constant 0 : index
    %518 = vector.load %arg3[%c6_20, %c0_21] : memref<7x256xf32, #tpu.memory_space<vmem>>, vector<1x256xf32>
    %519 = vector.broadcast %518 : vector<1x256xf32> to vector<2x256xf32>
    %520 = arith.mulf %519, %517 : vector<2x256xf32>
    %521 = arith.addf %448, %520 : vector<2x256xf32>
    %522 = arith.negf %521 : vector<2x256xf32>
    %523 = math.exp %522 : vector<2x256xf32>
    %cst_22 = arith.constant 1.000000e+00 : f32
    %524 = vector.broadcast %cst_22 : f32 to vector<2x256xf32>
    %525 = arith.addf %524, %523 : vector<2x256xf32>
    %526 = arith.divf %524, %525 : vector<2x256xf32>
    %c0_23 = arith.constant 0 : index
    %c0_24 = arith.constant 0 : index
    %527 = vector.load %arg5[%c0_23, %c0_24] : memref<2x256xf32, #tpu.memory_space<vmem>>, vector<2x256xf32>
    tpu.vector_store %arg5[%c0_23, %c0_24], %526 {strides = array<i32>} : memref<2x256xf32, #tpu.memory_space<vmem>>, vector<2x256xf32>,
    return
  }
  func.func @transform_0(%arg0: i32) -> i32 {
    %c0_i32 = arith.constant 0 : i32
    %c0_i32_0 = arith.constant 0 : i32
    return %c0_i32 : i32
  }
  func.func @transform_1(%arg0: i32) -> i32 {
    %c0_i32 = arith.constant 0 : i32
    %c0_i32_0 = arith.constant 0 : i32
    return %c0_i32 : i32
  }
  func.func @transform_2(%arg0: i32) -> (i32, i32) {
    %c0_i32 = arith.constant 0 : i32
    %c0_i32_0 = arith.constant 0 : i32
    %c0_i32_1 = arith.constant 0 : i32
    return %c0_i32, %c0_i32_0 : i32, i32
  }
  func.func @transform_3(%arg0: i32) -> (i32, i32, i32) {
    %c0_i32 = arith.constant 0 : i32
    %c0_i32_0 = arith.constant 0 : i32
    %c0_i32_1 = arith.constant 0 : i32
    return %arg0, %c0_i32, %c0_i32_0 : i32, i32, i32
  }
  func.func @transform_4(%arg0: i32) -> (i32, i32) {
    %c0_i32 = arith.constant 0 : i32
    %c0_i32_0 = arith.constant 0 : i32
    return %arg0, %c0_i32 : i32, i32
  }
}

</mosaic_0001>

<bundles_post_ra>
// kernel: tpu_custom_call.1
= control target key start
LH: loop header
LB: loop body
LE: loop exit
PB: predicated region body
PF: predicated region fallthrough
CT: control target
= control target key end

     0   :  { %10 = vsyncpa [#allocation6], 0  ;;  %s3421_s0 = inlined_call_operand.vmem [shape: f32[98], index: 0, kind: input, shape index: {}]   ;;  %s3422_s1 = inlined_call_operand.<no memory space> [shape: f32[1], index: 1, kind: input, shape index: {}]   ;;  %s3423_s2 = inlined_call_operand.hbm [shape: f32[7,256], index: 2, kind: input, shape index: {}]   ;;  %s3424_s3 = inlined_call_operand.hbm [shape: f32[2,4,256], index: 3, kind: input, shape index: {}]   ;;  %s3425_s4 = inlined_call_operand.hbm [shape: f32[2,256], index: 4, kind: output, shape index: {}]  }
   0x1   :  { %11 = vsyncpa [#allocation4], 0 }
   0x2   :  { %12 = vsyncpa [#allocation9], 0 }
   0x3   :  { %13 = vsyncpa [#allocation5], 0  ;;  %s19_s17 = sshll.u32 %s3421_s0, 4  ;;  %s30_s20 = sshll.u32 %s3423_s2, 4  ;;  %s20_s17 = int_to_ptr.vmem [resolvable:$true] %s19_s17  ;;  %s31_s20 = int_to_ptr.hbm [resolvable:$true] %s30_s20 }
   0x4   :  { %s2567_s21 = smov [#allocation3]   ;;  %s2568_s22 = smov [#allocation7]  }
   0x5   :  { %22 = dma.vmem_to_smem %s20_s17, 16, %s2567_s21, [#allocation6]  }
   0x6   :  { %s32_s23 = sshll.u32 %s2568_s22, 4  ;;  %s40_s26 = sshll.u32 %s3424_s3, 4  ;;  %s33_s23 = int_to_ptr.vmem [resolvable:$true] %s32_s23  ;;  %s41_s26 = int_to_ptr.hbm [resolvable:$true] %s40_s26 }
   0x7   :  { %35 = dma.hbm_to_vmem [thread:$0]  %s31_s20, 256, %s33_s23, [#allocation4]  }
   0x8   :  { %s2569_s27 = smov [#allocation8]   ;;  %s2570_s0 = smov 128  }
   0x9   :  { %s42_s28 = sshll.u32 %s2569_s27, 4  ;;  %s2571_s29 = smov 8   ;;  %s43_s28 = int_to_ptr.vmem [resolvable:$true] %s42_s28 }
   0xa   :  { %48 = dma.hbm_to_vmem [thread:$0]  %s41_s26, 256, %s43_s28, [#allocation9], %s2570_s0, %s2570_s0, %s2571_s29  }
   0xb   :  { %2559 = dma.done.wait [#allocation6], 16  }
   0xc   :  { %2560 = vsyncadd [#allocation6], 4294967280 }
   0xd   :  { %2561 = dma.done.wait [#allocation4], 256  }
   0xe   :  { %2562 = vsyncadd [#allocation4], 4294967040 }
   0xf   :  { %2563 = dma.done.wait [#allocation9], 256  }
  0x10   :  { %2564 = vsyncadd [#allocation9], 4294967040 }
  0x11   :  { %61 = sfence }
  0x12   :  { %s2347_s2 = sld [smem:[#allocation3 + $0x7]]  ;;  %v62_v0 = vld [vmem:[#allocation8] sm:$0xff]  ;;  %v63_v1 = vld [vmem:[#allocation8 + $0x8] sm:$0xff]  ;;  %vm77_vm0 = vcmask 1043456   ;;  %s2572_s6 = smov 112   ;;  %vm160_vm1 = vcmask 1041409  }
  0x13   :  { %s2348_s3 = sld [smem:[#allocation3 + $0xe]]  ;;  %66 = vst [vmem:[#allocation1] ss:$2 sm:$0xff] %v62_v0  ;;  %s2573_s7 = smov 96   ;;  %v2576_v49 = vmov 4.0   ;;  %vm194_vm3 = vcmask 916480  }
  0x14   :  { %s2349_s30 = sld [smem:[#allocation3 + $0x15]]  ;;  %70 = vst [vmem:[#allocation1 + $0x10] ss:$2 sm:$0xff] %v63_v1  ;;  %s2574_s8 = smov 64   ;;  %2465 = vrcp.f32 %v2576_v49  ;;  %vm217_vm4 = vcmask 785408   ;;  %vm240_vm5 = vcmask 654336  }
  0x15   :  { %s2350_s5 = sld [smem:[#allocation3 + $0x1c]]  ;;  %s2575_s9 = smov 80   ;;  %vm263_vm6 = vcmask 523264   ;;  %vm286_vm7 = vcmask 392192   ;;  %vm309_vm8 = vcmask 261120   ;;  %vm473_vm9 = vcmask 416768  }
  0x16   :  { %s2351_s10 = sld [smem:[#allocation3 + $0x23]]  ;;  %s2577_s12 = smov 48   ;;  %vm775_vm10 = vcmask 408576   ;;  %vm1077_vm11 = vcmask 400384   ;;  %vm1670_vm12 = vcmask 384000   ;;  %vm1972_vm13 = vcmask 375808  }
  0x17   :  { %s2352_s11 = sld [smem:[#allocation3 + $0x2a]]  ;;  %s2578_s14 = smov 32   ;;  %vm2274_vm14 = vcmask 367616  }
  0x18   :  { %v181_v2 = vstv %s2347_s2  ;;  %s2354_s13 = sld [smem:[#allocation3 + $0x38]]  ;;  %s2579_s2 = smov 51  }
  0x19   :  { %v182_v3 = vmul.f32 0.0, %v181_v2  ;;  %v2620_v4 = vstv %s2348_s3  ;;  %s2355_s15 = sld [smem:[#allocation3 + $0x3f]] }
  0x1a   :  { %v205_v5 = vmul.f32 0.0, %v2620_v4  ;;  %v68_v6 = vld.sshfl [vmem:[#allocation1 + $0x8] sm:$0xff pattern:$0x75316420]  ;;  %v2628_v10 = vstv %s2349_s30  ;;  %v2466_v61 = vpop.eup %2465  ;;  %s2356_s16 = sld [smem:[#allocation3 + $0x46]] }
  0x1b   :  { %188 = vrot.lane.b32.xlu0 %v182_v3, %s2572_s6  ;;  %v72_v7 = vld.sshfl [vmem:[#allocation1 + $0x18] sm:$0xff pattern:$0x75316420]  ;;  %v85_v8 = vsel %vm77_vm0, %v68_v6, -inf  ;;  %v2625_v9 = vstv %s2350_s5  ;;  %v228_v21 = vmul.f32 0.0, %v2628_v10  ;;  %vm150_vm2 = vweird.f32 %v2466_v61  ;;  %s2357_s17 = sld [smem:[#allocation3 + $0x4d]] }
  0x1c   :  { %211 = vrot.lane.b32.xlu1 %v205_v5, %s2573_s7  ;;  %v86_v11 = vrot.slane %v85_v8, 4  ;;  %v99_v12 = vsel %vm77_vm0, %v72_v7, -inf  ;;  %v67_v13 = vld.sshfl [vmem:[#allocation1] sm:$0xff pattern:$0x75316420]  ;;  %v253_v14 = vmul.f32 0.0, %v2625_v9  ;;  %v273_v3 = vstv %s2351_s10 }
  0x1d   :  { %v100_v15 = vrot.slane %v99_v12, 4  ;;  %v71_v16 = vld.sshfl [vmem:[#allocation1 + $0x10] sm:$0xff pattern:$0x75316420]  ;;  %v78_v17 = vsel %vm77_vm0, %v67_v13, -inf  ;;  %s2358_s18 = sld [smem:[#allocation3 + $0x54]] }
  0x1e   :  { %v87_v18 = vmax.f32 %v85_v8, %v86_v11  ;;  %v79_v19 = vrot.slane %v78_v17, 4  ;;  %v92_v20 = vsel %vm77_vm0, %v71_v16, -inf  ;;  %106 = vst [vmem:[#allocation1] ss:$2 sm:$0xff] %v62_v0  ;;  %261 = vrot.lane.b32.xlu2 %v253_v14, %s2574_s8  ;;  %s2359_s19 = sld [smem:[#allocation3 + $0x5b]] }
  0x1f   :  { %v101_v22 = vmax.f32 %v99_v12, %v100_v15  ;;  %v93_v23 = vrot.slane %v92_v20, 4  ;;  %110 = vst [vmem:[#allocation1 + $0x10] ss:$2 sm:$0xff] %v63_v1  ;;  %s2361_s20 = sld [smem:[#allocation3 + $0x8]] }
  0x20   :  { %v88_v24 = vrot.slane %v87_v18, 2  ;;  %v80_v25 = vmax.f32 %v78_v17, %v79_v19  ;;  %v371_v49 = vstv %s2356_s16  ;;  %s2362_s21 = sld [smem:[#allocation3 + $0xf]] }
  0x21   :  { %v102_v26 = vrot.slane %v101_v22, 2  ;;  %v94_v27 = vmax.f32 %v92_v20, %v93_v23  ;;  %s2363_s22 = sld [smem:[#allocation3 + $0x16]] }
  0x22   :  { %v89_v28 = vmax.f32 %v87_v18, %v88_v24  ;;  %v81_v29 = vrot.slane %v80_v25, 2  ;;  %v296_v18 = vstv %s2352_s11  ;;  %v276_v24 = vmul.f32 0.0, %v273_v3  ;;  %s2364_s23 = sld [smem:[#allocation3 + $0x1d]] }
  0x23   :  { %234 = vrot.lane.b32.xlu0 %v228_v21, %s2575_s9  ;;  %v103_v30 = vmax.f32 %v101_v22, %v102_v26  ;;  %v95_v31 = vrot.slane %v94_v27, 2  ;;  %s2365_s24 = sld [smem:[#allocation3 + $0x24]] }
  0x24   :  { %v90_v32 = vrot.slane %v89_v28, 1  ;;  %v82_v33 = vmax.f32 %v80_v25, %v81_v29  ;;  %s2366_s25 = sld [smem:[#allocation3 + $0x2b]] }
  0x25   :  { %v104_v34 = vrot.slane %v103_v30, 1  ;;  %v96_v35 = vmax.f32 %v94_v27, %v95_v31  ;;  %v107_v45 = vld.sshfl [vmem:[#allocation1] sm:$0xff pattern:$0x75316420]  ;;  %v327_v31 = vstv %s2354_s13  ;;  %s2368_s26 = sld [smem:[#allocation3 + $0x39]] }
  0x26   :  { %v91_v36 = vmax.f32 %v89_v28, %v90_v32  ;;  %v83_v37 = vrot.slane %v82_v33, 1  ;;  %v111_v46 = vld.sshfl [vmem:[#allocation1 + $0x10] sm:$0xff pattern:$0x75316420]  ;;  %v117_v52 = vsel %vm77_vm0, %v107_v45, 0.0  ;;  %s2369_s27 = sld [smem:[#allocation3 + $0x40]] }
  0x27   :  { %v105_v38 = vmax.f32 %v103_v30, %v104_v34  ;;  %v97_v39 = vrot.slane %v96_v35, 1  ;;  %v108_v50 = vld.sshfl [vmem:[#allocation1 + $0x8] sm:$0xff pattern:$0x75316420]  ;;  %v131_v53 = vsel %vm77_vm0, %v111_v46, 0.0  ;;  %v118_v57 = vrot.slane %v117_v52, 4 }
  0x28   :  { %v84_v40 = vmax.f32 %v82_v33, %v83_v37  ;;  %v112_v51 = vld.sshfl [vmem:[#allocation1 + $0x18] sm:$0xff pattern:$0x75316420]  ;;  %v124_v55 = vsel %vm77_vm0, %v108_v50, 0.0  ;;  %v132_v58 = vrot.slane %v131_v53, 4  ;;  %v328_v37 = vmul.f32 0.0, %v327_v31 }
  0x29   :  { %v2638_v41 = vsel %vm160_vm1, %v105_v38, %v91_v36  ;;  %v98_v42 = vmax.f32 %v96_v35, %v97_v39  ;;  %v138_v56 = vsel %vm77_vm0, %v112_v51, 0.0  ;;  %v125_v62 = vrot.slane %v124_v55, 4  ;;  %s175_s28 = sld [smem:[#allocation3]] }
  0x2a   :  { %v184_v43 = vmul.f32 %v181_v2, %v2638_v41  ;;  %v207_v60 = vmul.f32 %v2620_v4, %v2638_v41  ;;  %v139_v63 = vrot.slane %v138_v56, 4  ;;  %v119_v0 = vadd.f32 %v118_v57, %v117_v52  ;;  %s2353_s0 = sld [smem:[#allocation3 + $0x31]] }
  0x2b   :  { %v2642_v44 = vsel %vm160_vm1, %v98_v42, %v84_v40  ;;  %v133_v1 = vadd.f32 %v132_v58, %v131_v53  ;;  %v126_v5 = vadd.f32 %v125_v62, %v124_v55  ;;  %v252_v7 = vmul.f32 %v2625_v9, %v2638_v41  ;;  %s2370_s29 = sld [smem:[#allocation3 + $0x47]] }
  0x2c   :  { %192 = vrot.lane.b32.xlu1 %v184_v43, %s2572_s6  ;;  %v183_v47 = vmul.f32 %v181_v2, %v2642_v44  ;;  %v206_v48 = vmul.f32 %v2620_v4, %v2642_v44  ;;  %v229_v54 = vmul.f32 %v2628_v10, %v2642_v44  ;;  %v251_v59 = vmul.f32 %v2625_v9, %v2642_v44  ;;  %s2371_s3 = sld [smem:[#allocation3 + $0x4e]] }
  0x2d   :  { %v146_v2 = vmul.f32 4.0, %v2466_v61  ;;  %v140_v6 = vadd.f32 %v139_v63, %v138_v56  ;;  %v120_v4 = vrot.slane %v119_v0, 2  ;;  %v134_v8 = vrot.slane %v133_v1, 2  ;;  %s2372_s30 = sld [smem:[#allocation3 + $0x55]] }
  0x2e   :  { %190 = vrot.lane.b32.xlu0 %v183_v47, %s2572_s6  ;;  %213 = vrot.lane.b32.xlu2 %v206_v48, %s2573_s7  ;;  %v274_v11 = vmul.f32 %v273_v3, %v2642_v44  ;;  %v230_v12 = vmul.f32 %v2628_v10, %v2638_v41  ;;  %v127_v14 = vrot.slane %v126_v5, 2  ;;  %v275_v21 = vmul.f32 %v273_v3, %v2638_v41  ;;  %s2373_s5 = sld [smem:[#allocation3 + $0x5c]] }
  0x2f   :  { %v147_v13 = vsub.f32 1.0, %v146_v2  ;;  %v141_v15 = vrot.slane %v140_v6, 2  ;;  %v121_v16 = vadd.f32 %v120_v4, %v119_v0  ;;  %v135_v17 = vadd.f32 %v134_v8, %v133_v1  ;;  %s2360_s10 = sld [smem:[#allocation3 + $0x1]] }
  0x30   :  { %v128_v19 = vadd.f32 %v127_v14, %v126_v5  ;;  %v297_v23 = vmul.f32 %v296_v18, %v2642_v44  ;;  %v298_v34 = vmul.f32 %v296_v18, %v2638_v41  ;;  %v299_v38 = vmul.f32 0.0, %v296_v18  ;;  %s2367_s11 = sld [smem:[#allocation3 + $0x32]] }
  0x31   :  { %v148_v9 = vmul.f32 %v2466_v61, %v147_v13  ;;  %v142_v20 = vadd.f32 %v141_v15, %v140_v6  ;;  %v122_v10 = vrot.slane %v121_v16, 1  ;;  %v136_v22 = vrot.slane %v135_v17, 1  ;;  %s2375_s13 = sld [smem:[#allocation3 + $0x9]] }
  0x32   :  { %v129_v26 = vrot.slane %v128_v19, 1  ;;  %v349_v43 = vstv %s2355_s15  ;;  %v372_v51 = vmul.f32 0.0, %v371_v49  ;;  %v393_v53 = vstv %s2357_s17  ;;  %s2580_s15 = smov 50   ;;  %s2376_s16 = sld [smem:[#allocation3 + $0x10]] }
  0x33   :  { %v149_v25 = vadd.f32 %v2466_v61, %v148_v9  ;;  %v143_v27 = vrot.slane %v142_v20, 1  ;;  %v123_v28 = vadd.f32 %v122_v10, %v121_v16  ;;  %v137_v29 = vadd.f32 %v136_v22, %v135_v17  ;;  %s2377_s17 = sld [smem:[#allocation3 + $0x17]] }
  0x34   :  { %236 = vrot.lane.b32.xlu1 %v229_v54, %s2575_s9  ;;  %v130_v32 = vadd.f32 %v129_v26, %v128_v19  ;;  %v350_v47 = vmul.f32 0.0, %v349_v43  ;;  %v415_v57 = vstv %s2358_s18  ;;  %v488_v1 = vstv %s2361_s20  ;;  %s2378_s18 = sld [smem:[#allocation3 + $0x1e]] }
  0x35   :  { %v151_v30 = vsel %vm150_vm2, %v2466_v61, %v149_v25  ;;  %v144_v33 = vadd.f32 %v143_v27, %v142_v20  ;;  %v437_v61 = vstv %s2359_s19  ;;  %v418_v0 = vmul.f32 0.0, %v415_v57  ;;  %s2379_s19 = sld [smem:[#allocation3 + $0x25]] }
  0x36   :  { %257 = vrot.lane.b32.xlu0 %v251_v59, %s2574_s8  ;;  %215 = vrot.lane.b32.xlu2 %v207_v60, %s2573_s7  ;;  %v152_v35 = vmul.f32 %v151_v30, %v123_v28  ;;  %v154_v36 = vmul.f32 %v151_v30, %v137_v29  ;;  %v153_v39 = vmul.f32 %v151_v30, %v130_v32  ;;  %v396_v60 = vmul.f32 0.0, %v393_v53  ;;  %s2380_s20 = sld [smem:[#allocation3 + $0x2c]] }
  0x37   :  { %v155_v40 = vmul.f32 %v151_v30, %v144_v33  ;;  %v489_v3 = vmul.f32 0.0, %v488_v1  ;;  %v440_v5 = vmul.f32 0.0, %v437_v61  ;;  %v510_v6 = vstv %s2362_s21  ;;  %s2382_s21 = sld [smem:[#allocation3 + $0x3a]] }
  0x38   :  { %v2679_v42 = vsel %vm160_vm1, %v154_v36, %v152_v35  ;;  %v490_v4 = vmul.f32 %v488_v1, %v2642_v44  ;;  %v511_v8 = vmul.f32 0.0, %v510_v6  ;;  %v512_v13 = vmul.f32 %v510_v6, %v2642_v44 }
  0x39   :  { %v2684_v45 = vsel %vm160_vm1, %v155_v40, %v153_v39  ;;  %v329_v46 = vmul.f32 %v327_v31, %v2679_v42  ;;  %v351_v50 = vmul.f32 %v349_v43, %v2679_v42  ;;  %v373_v54 = vmul.f32 %v371_v49, %v2679_v42 }
  0x3a   :  { %v330_v48 = vmul.f32 %v327_v31, %v2684_v45  ;;  %v352_v52 = vmul.f32 %v349_v43, %v2684_v45  ;;  %v394_v55 = vmul.f32 %v393_v53, %v2679_v42  ;;  %v374_v56 = vmul.f32 %v371_v49, %v2684_v45 }
  0x3b   :  { %v395_v58 = vmul.f32 %v393_v53, %v2684_v45  ;;  %v416_v59 = vmul.f32 %v415_v57, %v2679_v42  ;;  %v417_v62 = vmul.f32 %v415_v57, %v2684_v45  ;;  %v438_v63 = vmul.f32 %v437_v61, %v2679_v42 }
  0x3c   :  { %259 = vrot.lane.b32.xlu1 %v252_v7, %s2574_s8  ;;  %v439_v2 = vmul.f32 %v437_v61, %v2684_v45  ;;  %v513_v16 = vmul.f32 %v510_v6, %v2638_v41  ;;  %v554_v9 = vstv %s2364_s23  ;;  %v598_v29 = vstv %s2366_s25  ;;  %s2384_s23 = sld [smem:[#allocation3 + $0x48]] }
  0x3d   :  { %v555_v19 = vmul.f32 %v554_v9, %v2642_v44  ;;  %v557_v26 = vmul.f32 0.0, %v554_v9  ;;  %v599_v32 = vmul.f32 %v598_v29, %v2642_v44  ;;  %v628_v35 = vstv %s2368_s26  ;;  %s2386_s25 = sld [smem:[#allocation3 + $0x56]] }
  0x3e   :  { %280 = vrot.lane.b32.xlu0 %v274_v11, %s2577_s12  ;;  %238 = vrot.lane.b32.xlu2 %v230_v12, %s2575_s9  ;;  %v491_v11 = vmul.f32 %v488_v1, %v2638_v41  ;;  %v532_v12 = vstv %s2363_s22  ;;  %v629_v39 = vmul.f32 0.0, %v628_v35  ;;  %v601_v40 = vmul.f32 0.0, %v598_v29  ;;  %s2383_s22 = sld [smem:[#allocation3 + $0x41]] }
  0x3f   :  { %v533_v15 = vmul.f32 0.0, %v532_v12  ;;  %v534_v18 = vmul.f32 %v532_v12, %v2642_v44  ;;  %v535_v20 = vmul.f32 %v532_v12, %v2638_v41  ;;  %s2387_s26 = sld [smem:[#allocation3 + $0x5d]] }
  0x44   :  { %282 = vrot.lane.b32.xlu1 %v275_v21, %s2577_s12 }
  0x46   :  { %303 = vrot.lane.b32.xlu0 %v297_v23, %s2578_s14  ;;  %284 = vrot.lane.b32.xlu2 %v276_v24, %s2577_s12  ;;  %v576_v23 = vstv %s2365_s24  ;;  %v556_v24 = vmul.f32 %v554_v9, %v2638_v41  ;;  %s2385_s24 = sld [smem:[#allocation3 + $0x4f]] }
  0x47   :  { %v577_v25 = vmul.f32 %v576_v23, %v2642_v44  ;;  %v578_v31 = vmul.f32 %v576_v23, %v2638_v41  ;;  %v579_v33 = vmul.f32 0.0, %v576_v23 }
  0x4c   :  { %305 = vrot.lane.b32.xlu1 %v298_v34, %s2578_s14 }
  0x4e   :  { %334 = vrot.lane.b32.xlu0 %v328_v37, %s2572_s6  ;;  %307 = vrot.lane.b32.xlu2 %v299_v38, %s2578_s14  ;;  %v600_v38 = vmul.f32 %v598_v29, %v2638_v41 }
  0x54   :  { %336 = vrot.lane.b32.xlu1 %v329_v46, %s2572_s6  ;;  %v650_v46 = vstv %s2369_s27  ;;  %s2374_s27 = sld [smem:[#allocation3 + $0x2]] }
  0x56   :  { %356 = vrot.lane.b32.xlu0 %v350_v47, %s2573_s7  ;;  %338 = vrot.lane.b32.xlu2 %v330_v48, %s2572_s6  ;;  %v630_v48 = vmul.f32 %v628_v35, %v2679_v42 }
  0x5c   :  { %358 = vrot.lane.b32.xlu1 %v351_v50, %s2573_s7  ;;  %v651_v50 = vmul.f32 0.0, %v650_v46 }
  0x5e   :  { %378 = vrot.lane.b32.xlu0 %v372_v51, %s2575_s9  ;;  %360 = vrot.lane.b32.xlu2 %v352_v52, %s2573_s7  ;;  %v631_v51 = vmul.f32 %v628_v35, %v2684_v45 }
  0x64   :  { %380 = vrot.lane.b32.xlu1 %v373_v54, %s2575_s9  ;;  %v652_v54 = vmul.f32 %v650_v46, %v2679_v42 }
  0x66   :  { %400 = vrot.lane.b32.xlu0 %v394_v55, %s2574_s8  ;;  %382 = vrot.lane.b32.xlu2 %v374_v56, %s2575_s9  ;;  %v653_v55 = vmul.f32 %v650_v46, %v2684_v45 }
  0x6c   :  { %402 = vrot.lane.b32.xlu1 %v395_v58, %s2574_s8 }
  0x6e   :  { %422 = vrot.lane.b32.xlu0 %v416_v59, %s2577_s12  ;;  %404 = vrot.lane.b32.xlu2 %v396_v60, %s2574_s8  ;;  %v176_v59 = vstv %s175_s28  ;;  %s2381_s28 = sld [smem:[#allocation3 + $0x33]] }
  0x6f   :  { %v177_v60 = vmul.f32 0.0, %v176_v59  ;;  %v178_v12 = vmul.f32 %v176_v59, %v2642_v44 }
  0x74   :  { %424 = vrot.lane.b32.xlu1 %v417_v62, %s2577_s12 }
  0x76   :  { %444 = vrot.lane.b32.xlu0 %v438_v63, %s2578_s14  ;;  %426 = vrot.lane.b32.xlu2 %v418_v0, %s2577_s12  ;;  %v179_v0 = vmul.f32 %v176_v59, %v2638_v41 }
  0x78   :  { %v2716_v7 = vpop.permute.xlu2 %261 }
  0x7c   :  { %446 = vrot.lane.b32.xlu1 %v439_v2, %s2578_s14 }
  0x7e   :  { %495 = vrot.lane.b32.xlu0 %v489_v3, %s2572_s6  ;;  %448 = vrot.lane.b32.xlu2 %v440_v5, %s2578_s14 }
  0x84   :  { %497 = vrot.lane.b32.xlu1 %v490_v4, %s2572_s6 }
  0x86   :  { %517 = vrot.lane.b32.xlu0 %v511_v8, %s2573_s7  ;;  %499 = vrot.lane.b32.xlu2 %v491_v11, %s2572_s6 }
  0x88   :  { %v2724_v14 = vpop.permute.xlu2 %213 }
  0x8c   :  { %519 = vrot.lane.b32.xlu1 %v512_v13, %s2573_s7 }
  0x8d   :  { %v2728_v17 = vpop.permute.xlu0 %188 }
  0x8e   :  { %539 = vrot.lane.b32.xlu0 %v533_v15, %s2575_s9  ;;  %521 = vrot.lane.b32.xlu2 %v513_v16, %s2573_s7  ;;  %v2735_v21 = vpop.permute.xlu1 %211 }
  0x8f   :  { %v218_v3 = vsel %vm217_vm4, %v2735_v21, %v2724_v14  ;;  %v319_v21 = vstv %s2353_s0  ;;  %s2389_s0 = sld [smem:[#allocation3 + $0xa]] }
  0x90   :  { %v2737_v10 = vpop.permute.xlu2 %215 }
  0x94   :  { %541 = vrot.lane.b32.xlu1 %v534_v18, %s2575_s9 }
  0x95   :  { %v2740_v22 = vpop.permute.xlu0 %234 }
  0x96   :  { %561 = vrot.lane.b32.xlu0 %v555_v19, %s2574_s8  ;;  %543 = vrot.lane.b32.xlu2 %v535_v20, %s2575_s9 }
  0x98   :  { %v2749_v28 = vpop.permute.xlu2 %238 }
  0x9c   :  { %563 = vrot.lane.b32.xlu1 %v556_v24, %s2574_s8 }
  0x9e   :  { %v2747_v27 = vpop.permute.xlu1 %192  ;;  %583 = vrot.lane.b32.xlu0 %v577_v25, %s2577_s12  ;;  %565 = vrot.lane.b32.xlu2 %v557_v26, %s2574_s8 }
  0x9f   :  { %v202_v5 = vadd.f32 %v2747_v27, %v179_v0 }
  0xa0   :  { %v191_v30 = vpop.permute.xlu0 %190  ;;  %v285_v37 = vpop.permute.xlu2 %284 }
  0xa1   :  { %v195_v61 = vsel %vm194_vm3, %v2728_v17, %v191_v30  ;;  %v225_v13 = vadd.f32 %v2737_v10, %v202_v5  ;;  %v196_v17 = vsel %vm194_vm3, %v191_v30, %v2747_v27 }
  0xa2   :  { %v200_v2 = vadd.f32 %v195_v61, %v177_v60  ;;  %v201_v19 = vadd.f32 %v196_v17, %v178_v12 }
  0xa3   :  { %v248_v20 = vadd.f32 %v2749_v28, %v225_v13 }
  0xa4   :  { %585 = vrot.lane.b32.xlu1 %v578_v31, %s2577_s12  ;;  %v223_v4 = vadd.f32 %v218_v3, %v200_v2 }
  0xa6   :  { %v2756_v34 = vpop.permute.xlu1 %236  ;;  %605 = vrot.lane.b32.xlu0 %v599_v32, %s2578_s14  ;;  %587 = vrot.lane.b32.xlu2 %v579_v33, %s2577_s12 }
  0xa7   :  { %v241_v6 = vsel %vm240_vm5, %v2740_v22, %v2756_v34  ;;  %v219_v22 = vsel %vm217_vm4, %v2724_v14, %v2737_v10  ;;  %v242_v27 = vsel %vm240_vm5, %v2756_v34, %v2749_v28 }
  0xa8   :  { %v2760_v36 = vpop.permute.xlu0 %257  ;;  %v308_v49 = vpop.permute.xlu2 %307  ;;  %v246_v11 = vadd.f32 %v241_v6, %v223_v4  ;;  %v224_v31 = vadd.f32 %v219_v22, %v201_v19  ;;  %v672_v19 = vstv %s2370_s29  ;;  %s2581_s29 = smov 49  }
  0xaa   :  { %v269_v9 = vadd.f32 %v2760_v36, %v246_v11  ;;  %v247_v10 = vadd.f32 %v242_v27, %v224_v31  ;;  %v694_v27 = vstv %s2371_s3  ;;  %v716_v31 = vstv %s2372_s30  ;;  %s2391_s3 = sld [smem:[#allocation3 + $0x18]] }
  0xab   :  { %s2392_s30 = sld [smem:[#allocation3 + $0x1f]] }
  0xac   :  { %607 = vrot.lane.b32.xlu1 %v600_v38, %s2578_s14 }
  0xae   :  { %v2764_v43 = vpop.permute.xlu1 %259  ;;  %635 = vrot.lane.b32.xlu0 %v629_v39, %s2572_s6  ;;  %609 = vrot.lane.b32.xlu2 %v601_v40, %s2578_s14 }
  0xaf   :  { %v265_v18 = vsel %vm263_vm6, %v2764_v43, %v2716_v7  ;;  %v320_v7 = vmul.f32 0.0, %v319_v21  ;;  %v264_v14 = vsel %vm263_vm6, %v2760_v36, %v2764_v43 }
  0xb0   :  { %v2768_v47 = vpop.permute.xlu0 %280  ;;  %v2779_v56 = vpop.permute.xlu2 %338  ;;  %v271_v25 = vadd.f32 %v265_v18, %v248_v20  ;;  %v270_v40 = vadd.f32 %v264_v14, %v247_v10  ;;  %v738_v14 = vstv %s2373_s5  ;;  %v718_v10 = vmul.f32 %v716_v31, %v2684_v45  ;;  %s2393_s5 = sld [smem:[#allocation3 + $0x26]] }
  0xb1   :  { %v292_v23 = vadd.f32 %v2768_v47, %v269_v9 }
  0xb4   :  { %637 = vrot.lane.b32.xlu1 %v630_v48, %s2572_s6 }
  0xb6   :  { %v283_v52 = vpop.permute.xlu1 %282  ;;  %657 = vrot.lane.b32.xlu0 %v651_v50, %s2573_s7  ;;  %639 = vrot.lane.b32.xlu2 %v631_v51, %s2572_s6 }
  0xb7   :  { %v288_v24 = vsel %vm286_vm7, %v283_v52, %v285_v37  ;;  %v322_v37 = vmul.f32 %v319_v21, %v2684_v45  ;;  %v287_v28 = vsel %vm286_vm7, %v2768_v47, %v283_v52 }
  0xb8   :  { %v2775_v53 = vpop.permute.xlu0 %303  ;;  %v2785_v62 = vpop.permute.xlu2 %360  ;;  %v294_v32 = vadd.f32 %v288_v24, %v271_v25  ;;  %v293_v50 = vadd.f32 %v287_v28, %v270_v40  ;;  %v740_v28 = vmul.f32 %v738_v14, %v2684_v45 }
  0xb9   :  { %v315_v29 = vadd.f32 %v2775_v53, %v292_v23 }
  0xbb   :  { %v323_v34 = vadd.f32 %v320_v7, %v315_v29  ;;  %v675_v7 = vmul.f32 %v672_v19, %v2684_v45  ;;  %v674_v29 = vmul.f32 %v672_v19, %v2679_v42 }
  0xbc   :  { %659 = vrot.lane.b32.xlu1 %v652_v54, %s2573_s7 }
  0xbe   :  { %v306_v57 = vpop.permute.xlu1 %305  ;;  %661 = vrot.lane.b32.xlu2 %v653_v55, %s2573_s7 }
  0xbf   :  { %v311_v30 = vsel %vm309_vm8, %v306_v57, %v308_v49  ;;  %v310_v48 = vsel %vm309_vm8, %v2775_v53, %v306_v57 }
  0xc0   :  { %v335_v58 = vpop.permute.xlu0 %334  ;;  %v383_v15 = vpop.permute.xlu2 %382  ;;  %v317_v38 = vadd.f32 %v311_v30, %v294_v32  ;;  %v316_v55 = vadd.f32 %v310_v48, %v293_v50  ;;  %v695_v30 = vmul.f32 %v694_v27, %v2679_v42  ;;  %v696_v32 = vmul.f32 %v694_v27, %v2684_v45 }
  0xc2   :  { %v325_v51 = vadd.f32 %v322_v37, %v317_v38  ;;  %v719_v37 = vmul.f32 0.0, %v716_v31  ;;  %v739_v38 = vmul.f32 %v738_v14, %v2679_v42 }
  0xc4   :  { %v347_v47 = vadd.f32 %v2779_v56, %v325_v51 }
  0xc6   :  { %v337_v63 = vpop.permute.xlu1 %336 }
  0xc7   :  { %v340_v39 = vsel %vm194_vm3, %v335_v58, %v337_v63  ;;  %v321_v58 = vmul.f32 %v319_v21, %v2679_v42  ;;  %v341_v61 = vsel %vm194_vm3, %v337_v63, %v2779_v56 }
  0xc8   :  { %v357_v1 = vpop.permute.xlu0 %356  ;;  %v405_v35 = vpop.permute.xlu2 %404  ;;  %v345_v49 = vadd.f32 %v340_v39, %v323_v34  ;;  %v741_v34 = vmul.f32 0.0, %v738_v14 }
  0xc9   :  { %v324_v0 = vadd.f32 %v321_v58, %v316_v55 }
  0xcb   :  { %v346_v2 = vadd.f32 %v341_v61, %v324_v0 }
  0xce   :  { %v359_v8 = vpop.permute.xlu1 %358 }
  0xcf   :  { %v362_v46 = vsel %vm217_vm4, %v357_v1, %v359_v8  ;;  %v363_v53 = vsel %vm217_vm4, %v359_v8, %v2785_v62  ;;  %v369_v1 = vadd.f32 %v2785_v62, %v347_v47 }
  0xd0   :  { %v379_v16 = vpop.permute.xlu0 %378  ;;  %v367_v54 = vadd.f32 %v362_v46, %v345_v49  ;;  %v427_v52 = vpop.permute.xlu2 %426  ;;  %v368_v4 = vadd.f32 %v363_v53, %v346_v2 }
  0xd1   :  { %v391_v63 = vadd.f32 %v383_v15, %v369_v1  ;;  %v483_v1 = vstv %s2360_s10  ;;  %s2394_s10 = sld [smem:[#allocation3 + $0x2d]] }
  0xd2   :  { %v484_v2 = vmul.f32 0.0, %v483_v1 }
  0xd6   :  { %v381_v26 = vpop.permute.xlu1 %380 }
  0xd7   :  { %v384_v36 = vsel %vm240_vm5, %v379_v16, %v381_v26  ;;  %v385_v5 = vsel %vm240_vm5, %v381_v26, %v383_v15  ;;  %v673_v15 = vmul.f32 0.0, %v672_v19 }
  0xd8   :  { %v401_v33 = vpop.permute.xlu0 %400  ;;  %v389_v60 = vadd.f32 %v384_v36, %v367_v54  ;;  %v390_v16 = vadd.f32 %v385_v5, %v368_v4  ;;  %v449_v18 = vpop.permute.xlu2 %448 }
  0xda   :  { %v411_v57 = vadd.f32 %v401_v33, %v389_v60 }
  0xde   :  { %v403_v43 = vpop.permute.xlu1 %402 }
  0xdf   :  { %v406_v12 = vsel %vm263_vm6, %v401_v33, %v403_v43  ;;  %v407_v13 = vsel %vm263_vm6, %v403_v43, %v405_v35  ;;  %v697_v33 = vmul.f32 0.0, %v694_v27  ;;  %v717_v35 = vmul.f32 %v716_v31, %v2679_v42 }
  0xe0   :  { %v423_v59 = vpop.permute.xlu0 %422  ;;  %v412_v62 = vadd.f32 %v406_v12, %v390_v16  ;;  %v413_v9 = vadd.f32 %v407_v13, %v391_v63  ;;  %v500_v39 = vpop.permute.xlu2 %499  ;;  %v485_v63 = vmul.f32 %v483_v1, %v2642_v44  ;;  %v486_v16 = vmul.f32 %v483_v1, %v2638_v41 }
  0xe1   :  { %v433_v6 = vadd.f32 %v423_v59, %v411_v57  ;;  %v620_v27 = vstv %s2367_s11  ;;  %s2396_s11 = sld [smem:[#allocation3 + $0x3b]] }
  0xe2   :  { %v621_v14 = vmul.f32 0.0, %v620_v27 }
  0xe6   :  { %v425_v3 = vpop.permute.xlu1 %424 }
  0xe7   :  { %v428_v17 = vsel %vm286_vm7, %v423_v59, %v425_v3  ;;  %v429_v8 = vsel %vm286_vm7, %v425_v3, %v427_v52 }
  0xe8   :  { %v445_v11 = vpop.permute.xlu0 %444  ;;  %v434_v20 = vadd.f32 %v428_v17, %v412_v62  ;;  %v435_v21 = vadd.f32 %v429_v8, %v413_v9  ;;  %v522_v48 = vpop.permute.xlu2 %521 }
  0xe9   :  { %v455_v56 = vadd.f32 %v445_v11, %v433_v6 }
  0xeb   :  { %467 = vrot.lane.b32.xlu0 %v455_v56, %s2579_s2 }
  0xee   :  { %v447_v22 = vpop.permute.xlu1 %446 }
  0xef   :  { %v450_v23 = vsel %vm309_vm8, %v445_v11, %v447_v22  ;;  %v451_v24 = vsel %vm309_vm8, %v447_v22, %v449_v18 }
  0xf0   :  { %v457_v25 = vadd.f32 %v451_v24, %v435_v21  ;;  %v456_v26 = vadd.f32 %v450_v23, %v434_v20  ;;  %v496_v40 = vpop.permute.xlu0 %495  ;;  %v544_v51 = vpop.permute.xlu2 %543  ;;  %v508_v20 = vadd.f32 %v500_v39, %v486_v16 }
  0xf2   :  { %471 = vrot.lane.b32.xlu2 %v457_v25, %s2579_s2  ;;  %469 = vrot.lane.b32.xlu1 %v456_v26, %s2579_s2  ;;  %v530_v24 = vadd.f32 %v522_v48, %v508_v20  ;;  %s2390_s2 = sld [smem:[#allocation3 + $0x11]] }
  0xf3   :  { %679 = vrot.lane.b32.xlu0 %v673_v15, %s2575_s9 }
  0xf6   :  { %v498_v46 = vpop.permute.xlu1 %497 }
  0xf7   :  { %v501_v3 = vsel %vm194_vm3, %v496_v40, %v498_v46  ;;  %v502_v17 = vsel %vm194_vm3, %v498_v46, %v500_v39 }
  0xf8   :  { %v518_v49 = vpop.permute.xlu0 %517  ;;  %v566_v54 = vpop.permute.xlu2 %565  ;;  %v506_v6 = vadd.f32 %v501_v3, %v484_v2  ;;  %v507_v19 = vadd.f32 %v502_v17, %v485_v63 }
  0xfa   :  { %683 = vrot.lane.b32.xlu2 %v675_v7, %s2575_s9  ;;  %681 = vrot.lane.b32.xlu1 %v674_v29, %s2575_s9 }
  0xfb   :  { %701 = vrot.lane.b32.xlu0 %v695_v30, %s2574_s8  ;;  %v552_v30 = vadd.f32 %v544_v51, %v530_v24 }
  0xfe   :  { %v520_v50 = vpop.permute.xlu1 %519 }
  0xff   :  { %v523_v11 = vsel %vm217_vm4, %v518_v49, %v520_v50  ;;  %v524_v21 = vsel %vm217_vm4, %v520_v50, %v522_v48 }
 0x100   :  { %v540_v36 = vpop.permute.xlu0 %539  ;;  %v588_v59 = vpop.permute.xlu2 %587  ;;  %v528_v13 = vadd.f32 %v523_v11, %v506_v6  ;;  %v529_v23 = vadd.f32 %v524_v21, %v507_v19 }
 0x102   :  { %703 = vrot.lane.b32.xlu1 %v696_v32, %s2574_s8  ;;  %705 = vrot.lane.b32.xlu2 %v697_v33, %s2574_s8 }
 0x103   :  { %723 = vrot.lane.b32.xlu0 %v717_v35, %s2577_s12 }
 0x106   :  { %v542_v43 = vpop.permute.xlu1 %541 }
 0x107   :  { %v545_v56 = vsel %vm240_vm5, %v540_v36, %v542_v43  ;;  %v546_v15 = vsel %vm240_vm5, %v542_v43, %v544_v51 }
 0x108   :  { %v562_v55 = vpop.permute.xlu0 %561  ;;  %v610_v52 = vpop.permute.xlu2 %609  ;;  %v550_v8 = vadd.f32 %v545_v56, %v528_v13  ;;  %v551_v29 = vadd.f32 %v546_v15, %v529_v23  ;;  %v790_v15 = vstv %s2375_s13  ;;  %s2397_s13 = sld [smem:[#allocation3 + $0x42]] }
 0x10a   :  { %725 = vrot.lane.b32.xlu1 %v718_v10, %s2577_s12  ;;  %727 = vrot.lane.b32.xlu2 %v719_v37, %s2577_s12  ;;  %v572_v22 = vadd.f32 %v562_v55, %v550_v8 }
 0x10b   :  { %745 = vrot.lane.b32.xlu0 %v739_v38, %s2578_s14 }
 0x10e   :  { %v564_v58 = vpop.permute.xlu1 %563 }
 0x10f   :  { %v568_v32 = vsel %vm263_vm6, %v564_v58, %v566_v54  ;;  %v567_v33 = vsel %vm263_vm6, %v562_v55, %v564_v58  ;;  %v623_v55 = vmul.f32 %v620_v27, %v2684_v45 }
 0x110   :  { %v584_v60 = vpop.permute.xlu0 %583  ;;  %v2859_v53 = vpop.permute.xlu2 %639  ;;  %v574_v10 = vadd.f32 %v568_v32, %v552_v30  ;;  %v573_v37 = vadd.f32 %v567_v33, %v551_v29  ;;  %v791_v32 = vmul.f32 0.0, %v790_v15 }
 0x111   :  { %v594_v25 = vadd.f32 %v584_v60, %v572_v22 }
 0x112   :  { %747 = vrot.lane.b32.xlu1 %v740_v28, %s2578_s14  ;;  %749 = vrot.lane.b32.xlu2 %v741_v34, %s2578_s14 }
 0x116   :  { %v586_v47 = vpop.permute.xlu1 %585 }
 0x117   :  { %v590_v38 = vsel %vm286_vm7, %v586_v47, %v588_v59  ;;  %v589_v39 = vsel %vm286_vm7, %v584_v60, %v586_v47  ;;  %v622_v60 = vmul.f32 %v620_v27, %v2679_v42 }
 0x118   :  { %v606_v61 = vpop.permute.xlu0 %605  ;;  %v2862_v4 = vpop.permute.xlu2 %661  ;;  %v596_v48 = vadd.f32 %v590_v38, %v574_v10  ;;  %v595_v49 = vadd.f32 %v589_v39, %v573_v37  ;;  %v812_v10 = vstv %s2376_s16  ;;  %v793_v38 = vmul.f32 %v790_v15, %v2638_v41  ;;  %s2399_s16 = sld [smem:[#allocation3 + $0x50]] }
 0x119   :  { %v616_v35 = vadd.f32 %v606_v61, %v594_v25  ;;  %v813_v37 = vmul.f32 0.0, %v812_v10  ;;  %v792_v39 = vmul.f32 %v790_v15, %v2642_v44 }
 0x11b   :  { %v624_v28 = vadd.f32 %v621_v14, %v616_v35 }
 0x11e   :  { %v608_v0 = vpop.permute.xlu1 %607 }
 0x11f   :  { %v612_v51 = vsel %vm309_vm8, %v608_v0, %v610_v52  ;;  %v611_v36 = vsel %vm309_vm8, %v606_v61, %v608_v0 }
 0x120   :  { %v636_v57 = vpop.permute.xlu0 %635  ;;  %v618_v58 = vadd.f32 %v612_v51, %v596_v48  ;;  %v617_v59 = vadd.f32 %v611_v36, %v595_v49  ;;  %v856_v48 = vstv %s2378_s18  ;;  %v878_v36 = vstv %s2379_s19  ;;  %s2401_s18 = sld [smem:[#allocation3 + $0x5e]] }
 0x121   :  { %v857_v49 = vmul.f32 %v856_v48, %v2642_v44  ;;  %s2388_s19 = sld [smem:[#allocation3 + $0x3]] }
 0x122   :  { %v626_v3 = vadd.f32 %v623_v55, %v618_v58  ;;  %v625_v6 = vadd.f32 %v622_v60, %v617_v59  ;;  %v858_v55 = vmul.f32 %v856_v48, %v2638_v41  ;;  %v900_v58 = vstv %s2380_s20  ;;  %s2395_s20 = sld [smem:[#allocation3 + $0x34]] }
 0x123   :  { %v901_v59 = vmul.f32 %v900_v58, %v2642_v44  ;;  %v881_v60 = vmul.f32 0.0, %v878_v36 }
 0x126   :  { %v638_v5 = vpop.permute.xlu1 %637 }
 0x127   :  { %v641_v40 = vsel %vm194_vm3, %v636_v57, %v638_v5  ;;  %v642_v52 = vsel %vm194_vm3, %v638_v5, %v2859_v53 }
 0x128   :  { %v658_v12 = vpop.permute.xlu0 %657  ;;  %v646_v43 = vadd.f32 %v641_v40, %v624_v28  ;;  %v647_v0 = vadd.f32 %v642_v52, %v625_v6  ;;  %v834_v28 = vstv %s2377_s17  ;;  %v815_v40 = vmul.f32 %v812_v10, %v2638_v41  ;;  %s2400_s17 = sld [smem:[#allocation3 + $0x57]] }
 0x129   :  { %v836_v51 = vmul.f32 %v834_v28, %v2642_v44  ;;  %v952_v6 = vstv %s2383_s22  ;;  %s2404_s22 = sld [smem:[#allocation3 + $0x12]] }
 0x12e   :  { %v660_v62 = vpop.permute.xlu1 %659 }
 0x12f   :  { %v663_v54 = vsel %vm217_vm4, %v658_v12, %v660_v62  ;;  %v648_v12 = vadd.f32 %v2859_v53, %v626_v3  ;;  %v664_v56 = vsel %vm217_vm4, %v660_v62, %v2862_v4  ;;  %v902_v3 = vmul.f32 %v900_v58, %v2638_v41 }
 0x130   :  { %v668_v57 = vadd.f32 %v663_v54, %v646_v43  ;;  %v669_v19 = vadd.f32 %v664_v56, %v647_v0  ;;  %v879_v43 = vmul.f32 %v878_v36, %v2642_v44  ;;  %v859_v54 = vmul.f32 0.0, %v856_v48 }
 0x131   :  { %v670_v20 = vadd.f32 %v2862_v4, %v648_v12  ;;  %v974_v0 = vstv %s2384_s23  ;;  %v954_v56 = vmul.f32 %v952_v6, %v2679_v42  ;;  %s2405_s23 = sld [smem:[#allocation3 + $0x19]] }
 0x132   :  { %v975_v12 = vmul.f32 0.0, %v974_v0 }
 0x14c   :  { %v2869_v9 = vpop.permute.xlu2 %471 }
 0x154   :  { %v684_v31 = vpop.permute.xlu2 %683 }
 0x155   :  { %v692_v23 = vadd.f32 %v684_v31, %v670_v20 }
 0x15c   :  { %v706_v50 = vpop.permute.xlu2 %705 }
 0x15d   :  { %v2871_v18 = vpop.permute.xlu0 %467 }
 0x164   :  { %v2875_v26 = vpop.permute.xlu1 %469  ;;  %v728_v61 = vpop.permute.xlu2 %727 }
 0x165   :  { %v680_v7 = vpop.permute.xlu0 %679 }
 0x16c   :  { %v682_v34 = vpop.permute.xlu1 %681 }
 0x16d   :  { %v702_v46 = vpop.permute.xlu0 %701  ;;  %v685_v47 = vsel %vm240_vm5, %v680_v7, %v682_v34  ;;  %v686_v17 = vsel %vm240_vm5, %v682_v34, %v684_v31  ;;  %v750_v7 = vpop.permute.xlu2 %749  ;;  %v835_v34 = vmul.f32 0.0, %v834_v28 }
 0x16e   :  { %v690_v11 = vadd.f32 %v685_v47, %v668_v57  ;;  %v691_v24 = vadd.f32 %v686_v17, %v669_v19  ;;  %v880_v47 = vmul.f32 %v878_v36, %v2638_v41  ;;  %v930_v57 = vstv %s2382_s21  ;;  %s2403_s21 = sld [smem:[#allocation3 + $0xb]] }
 0x16f   :  { %v933_v52 = vmul.f32 %v930_v57, %v2684_v45  ;;  %v977_v17 = vmul.f32 %v974_v0, %v2684_v45  ;;  %v1018_v19 = vstv %s2386_s25  ;;  %s2407_s25 = sld [smem:[#allocation3 + $0x27]] }
 0x170   :  { %v712_v13 = vadd.f32 %v702_v46, %v690_v11  ;;  %v953_v11 = vmul.f32 0.0, %v952_v6  ;;  %v1019_v20 = vmul.f32 %v1018_v19, %v2679_v42 }
 0x174   :  { %v704_v1 = vpop.permute.xlu1 %703 }
 0x175   :  { %v724_v2 = vpop.permute.xlu0 %723  ;;  %v707_v5 = vsel %vm263_vm6, %v702_v46, %v704_v1  ;;  %v708_v22 = vsel %vm263_vm6, %v704_v1, %v706_v50  ;;  %v814_v46 = vmul.f32 %v812_v10, %v2642_v44  ;;  %v837_v50 = vmul.f32 %v834_v28, %v2638_v41 }
 0x176   :  { %v734_v63 = vadd.f32 %v724_v2, %v712_v13  ;;  %v713_v25 = vadd.f32 %v707_v5, %v691_v24  ;;  %v714_v27 = vadd.f32 %v708_v22, %v692_v23  ;;  %v931_v1 = vmul.f32 0.0, %v930_v57 }
 0x177   :  { %v955_v13 = vmul.f32 %v952_v6, %v2684_v45  ;;  %v1040_v22 = vstv %s2387_s26  ;;  %v1021_v24 = vmul.f32 0.0, %v1018_v19  ;;  %s2408_s26 = sld [smem:[#allocation3 + $0x2e]] }
 0x178   :  { %v1041_v23 = vmul.f32 %v1040_v22, %v2679_v42 }
 0x17c   :  { %v726_v16 = vpop.permute.xlu1 %725 }
 0x17d   :  { %v746_v8 = vpop.permute.xlu0 %745  ;;  %v729_v53 = vsel %vm286_vm7, %v724_v2, %v726_v16  ;;  %v730_v62 = vsel %vm286_vm7, %v726_v16, %v728_v61  ;;  %v903_v2 = vmul.f32 0.0, %v900_v58  ;;  %v932_v61 = vmul.f32 %v930_v57, %v2679_v42 }
 0x17e   :  { %v756_v21 = vadd.f32 %v746_v8, %v734_v63  ;;  %v735_v29 = vadd.f32 %v729_v53, %v713_v25  ;;  %v736_v4 = vadd.f32 %v730_v62, %v714_v27  ;;  %v996_v63 = vstv %s2385_s24  ;;  %s2406_s24 = sld [smem:[#allocation3 + $0x20]] }
 0x17f   :  { %v997_v16 = vmul.f32 %v996_v63, %v2679_v42  ;;  %v998_v5 = vmul.f32 %v996_v63, %v2684_v45  ;;  %v1020_v53 = vmul.f32 %v1018_v19, %v2684_v45  ;;  %v1043_v62 = vmul.f32 0.0, %v1040_v22 }
 0x180   :  { %769 = vrot.lane.b32.xlu0 %v756_v21, %s2580_s15  ;;  %v999_v21 = vmul.f32 0.0, %v996_v63  ;;  %v1042_v25 = vmul.f32 %v1040_v22, %v2684_v45 }
 0x184   :  { %v748_v30 = vpop.permute.xlu1 %747 }
 0x185   :  { %v751_v33 = vsel %vm309_vm8, %v746_v8, %v748_v30  ;;  %v752_v31 = vsel %vm309_vm8, %v748_v30, %v750_v7  ;;  %v976_v8 = vmul.f32 %v974_v0, %v2679_v42 }
 0x186   :  { %v758_v35 = vadd.f32 %v752_v31, %v736_v4  ;;  %v757_v14 = vadd.f32 %v751_v33, %v735_v29 }
 0x188   :  { %797 = vrot.lane.b32.xlu0 %v791_v32, %s2572_s6  ;;  %773 = vrot.lane.b32.xlu2 %v758_v35, %s2580_s15 }
 0x189   :  { %771 = vrot.lane.b32.xlu1 %v757_v14, %s2580_s15  ;;  %s2398_s15 = sld [smem:[#allocation3 + $0x49]] }
 0x190   :  { %819 = vrot.lane.b32.xlu0 %v813_v37, %s2573_s7  ;;  %801 = vrot.lane.b32.xlu2 %v793_v38, %s2572_s6 }
 0x191   :  { %799 = vrot.lane.b32.xlu1 %v792_v39, %s2572_s6 }
 0x198   :  { %841 = vrot.lane.b32.xlu0 %v835_v34, %s2575_s9  ;;  %823 = vrot.lane.b32.xlu2 %v815_v40, %s2573_s7 }
 0x199   :  { %821 = vrot.lane.b32.xlu1 %v814_v46, %s2573_s7 }
 0x1a0   :  { %863 = vrot.lane.b32.xlu0 %v857_v49, %s2574_s8  ;;  %845 = vrot.lane.b32.xlu2 %v837_v50, %s2575_s9  ;;  %v785_v50 = vstv %s2374_s27  ;;  %s2410_s27 = sld [smem:[#allocation3 + $0x3c]] }
 0x1a1   :  { %843 = vrot.lane.b32.xlu1 %v836_v51, %s2575_s9  ;;  %v787_v63 = vmul.f32 %v785_v50, %v2642_v44 }
 0x1a8   :  { %885 = vrot.lane.b32.xlu0 %v879_v43, %s2577_s12  ;;  %867 = vrot.lane.b32.xlu2 %v859_v54, %s2574_s8  ;;  %v786_v43 = vmul.f32 0.0, %v785_v50 }
 0x1a9   :  { %865 = vrot.lane.b32.xlu1 %v858_v55, %s2574_s8 }
 0x1b0   :  { %907 = vrot.lane.b32.xlu0 %v901_v59, %s2578_s14  ;;  %889 = vrot.lane.b32.xlu2 %v881_v60, %s2577_s12 }
 0x1b1   :  { %887 = vrot.lane.b32.xlu1 %v880_v47, %s2577_s12  ;;  %v788_v47 = vmul.f32 %v785_v50, %v2638_v41 }
 0x1b8   :  { %937 = vrot.lane.b32.xlu0 %v931_v1, %s2572_s6  ;;  %911 = vrot.lane.b32.xlu2 %v903_v2, %s2578_s14 }
 0x1b9   :  { %909 = vrot.lane.b32.xlu1 %v902_v3, %s2578_s14 }
 0x1c0   :  { %959 = vrot.lane.b32.xlu0 %v953_v11, %s2573_s7  ;;  %941 = vrot.lane.b32.xlu2 %v933_v52, %s2572_s6 }
 0x1c1   :  { %939 = vrot.lane.b32.xlu1 %v932_v61, %s2572_s6 }
 0x1c8   :  { %981 = vrot.lane.b32.xlu0 %v975_v12, %s2575_s9  ;;  %963 = vrot.lane.b32.xlu2 %v955_v13, %s2573_s7  ;;  %v922_v12 = vstv %s2381_s28  ;;  %s2411_s28 = sld [smem:[#allocation3 + $0x43]] }
 0x1c9   :  { %961 = vrot.lane.b32.xlu1 %v954_v56, %s2573_s7 }
 0x1d0   :  { %1003 = vrot.lane.b32.xlu0 %v997_v16, %s2574_s8  ;;  %985 = vrot.lane.b32.xlu2 %v977_v17, %s2575_s9  ;;  %v923_v17 = vmul.f32 0.0, %v922_v12 }
 0x1d1   :  { %983 = vrot.lane.b32.xlu1 %v976_v8, %s2575_s9 }
 0x1d8   :  { %1025 = vrot.lane.b32.xlu0 %v1019_v20, %s2577_s12  ;;  %1007 = vrot.lane.b32.xlu2 %v999_v21, %s2574_s8 }
 0x1d9   :  { %1005 = vrot.lane.b32.xlu1 %v998_v5, %s2574_s8 }
 0x1e0   :  { %1047 = vrot.lane.b32.xlu0 %v1041_v23, %s2578_s14  ;;  %1029 = vrot.lane.b32.xlu2 %v1021_v24, %s2577_s12 }
 0x1e1   :  { %1027 = vrot.lane.b32.xlu1 %v1020_v53, %s2577_s12 }
 0x1e2   :  { %v2958_v15 = vpop.permute.xlu2 %773 }
 0x1e8   :  { %1051 = vrot.lane.b32.xlu2 %v1043_v62, %s2578_s14 }
 0x1e9   :  { %1049 = vrot.lane.b32.xlu1 %v1042_v25, %s2578_s14 }
 0x1ea   :  { %v802_v27 = vpop.permute.xlu2 %801 }
 0x1eb   :  { %v810_v6 = vadd.f32 %v802_v27, %v788_v47 }
 0x1f2   :  { %v2963_v7 = vpop.permute.xlu0 %769  ;;  %v824_v29 = vpop.permute.xlu2 %823 }
 0x1f3   :  { %v832_v61 = vadd.f32 %v824_v29, %v810_v6 }
 0x1fa   :  { %v798_v4 = vpop.permute.xlu0 %797  ;;  %v846_v32 = vpop.permute.xlu2 %845 }
 0x1fb   :  { %v2965_v30 = vpop.permute.xlu1 %771  ;;  %v854_v16 = vadd.f32 %v846_v32, %v832_v61 }
 0x202   :  { %v820_v33 = vpop.permute.xlu0 %819  ;;  %v868_v10 = vpop.permute.xlu2 %867 }
 0x203   :  { %v800_v31 = vpop.permute.xlu1 %799 }
 0x204   :  { %v803_v54 = vsel %vm194_vm3, %v798_v4, %v800_v31  ;;  %v804_v19 = vsel %vm194_vm3, %v800_v31, %v802_v27 }
 0x205   :  { %v808_v58 = vadd.f32 %v803_v54, %v786_v43  ;;  %v809_v24 = vadd.f32 %v804_v19, %v787_v63  ;;  %v1092_v19 = vstv %s2389_s0  ;;  %s2412_s0 = sld [smem:[#allocation3 + $0x4a]] }
 0x20a   :  { %v842_v35 = vpop.permute.xlu0 %841  ;;  %v890_v39 = vpop.permute.xlu2 %889 }
 0x20b   :  { %v822_v14 = vpop.permute.xlu1 %821 }
 0x20c   :  { %v825_v55 = vsel %vm217_vm4, %v820_v33, %v822_v14  ;;  %v826_v21 = vsel %vm217_vm4, %v822_v14, %v824_v29 }
 0x20d   :  { %v830_v57 = vadd.f32 %v825_v55, %v808_v58  ;;  %v831_v27 = vadd.f32 %v826_v21, %v809_v24 }
 0x212   :  { %v864_v37 = vpop.permute.xlu0 %863  ;;  %v912_v40 = vpop.permute.xlu2 %911 }
 0x213   :  { %v844_v38 = vpop.permute.xlu1 %843 }
 0x214   :  { %v847_v59 = vsel %vm240_vm5, %v842_v35, %v844_v38  ;;  %v848_v4 = vsel %vm240_vm5, %v844_v38, %v846_v32 }
 0x215   :  { %v852_v3 = vadd.f32 %v847_v59, %v830_v57 }
 0x217   :  { %v874_v11 = vadd.f32 %v864_v37, %v852_v3 }
 0x21a   :  { %v886_v28 = vpop.permute.xlu0 %885  ;;  %v2967_v49 = vpop.permute.xlu2 %941 }
 0x21b   :  { %v866_v34 = vpop.permute.xlu1 %865  ;;  %v896_v13 = vadd.f32 %v886_v28, %v874_v11 }
 0x21c   :  { %v870_v20 = vsel %vm263_vm6, %v866_v34, %v868_v10  ;;  %v869_v29 = vsel %vm263_vm6, %v864_v37, %v866_v34  ;;  %v924_v37 = vmul.f32 %v922_v12, %v2679_v42 }
 0x21d   :  { %v876_v53 = vadd.f32 %v870_v20, %v854_v16 }
 0x222   :  { %v908_v46 = vpop.permute.xlu0 %907  ;;  %v964_v1 = vpop.permute.xlu2 %963 }
 0x223   :  { %v888_v48 = vpop.permute.xlu1 %887  ;;  %v918_v8 = vadd.f32 %v908_v46, %v896_v13 }
 0x224   :  { %v892_v5 = vsel %vm286_vm7, %v888_v48, %v890_v39  ;;  %v853_v39 = vadd.f32 %v848_v4, %v831_v27  ;;  %v891_v55 = vsel %vm286_vm7, %v886_v28, %v888_v48  ;;  %v1094_v27 = vmul.f32 %v1092_v19, %v2642_v44 }
 0x225   :  { %v926_v62 = vadd.f32 %v923_v17, %v918_v8  ;;  %v898_v31 = vadd.f32 %v892_v5, %v876_v53 }
 0x226   :  { %v875_v32 = vadd.f32 %v869_v29, %v853_v39  ;;  %v1153_v39 = vstv %s2392_s30  ;;  %s2402_s30 = sld [smem:[#allocation3 + $0x4]] }
 0x228   :  { %v897_v59 = vadd.f32 %v891_v55, %v875_v32  ;;  %v1175_v55 = vstv %s2393_s5  ;;  %s2409_s5 = sld [smem:[#allocation3 + $0x35]] }
 0x229   :  { %v1177_v32 = vmul.f32 %v1175_v55, %v2638_v41 }
 0x22a   :  { %v938_v51 = vpop.permute.xlu0 %937  ;;  %v986_v56 = vpop.permute.xlu2 %985 }
 0x22b   :  { %v910_v36 = vpop.permute.xlu1 %909 }
 0x22c   :  { %v914_v33 = vsel %vm309_vm8, %v910_v36, %v912_v40  ;;  %v913_v40 = vsel %vm309_vm8, %v908_v46, %v910_v36 }
 0x22d   :  { %v920_v43 = vadd.f32 %v914_v33, %v898_v31  ;;  %v919_v57 = vadd.f32 %v913_v40, %v897_v59  ;;  %v1114_v33 = vstv %s2390_s2  ;;  %v1095_v31 = vmul.f32 %v1092_v19, %v2638_v41  ;;  %s2414_s2 = sld [smem:[#allocation3 + $0x58]] }
 0x22e   :  { %v1116_v29 = vmul.f32 %v1114_v33, %v2642_v44  ;;  %v1176_v40 = vmul.f32 %v1175_v55, %v2642_v44 }
 0x22f   :  { %v927_v28 = vadd.f32 %v924_v37, %v919_v57  ;;  %v1227_v57 = vstv %s2396_s11  ;;  %s2582_s11 = smov 47  }
 0x230   :  { %v1229_v37 = vmul.f32 %v1227_v57, %v2679_v42 }
 0x232   :  { %v960_v60 = vpop.permute.xlu0 %959  ;;  %v1008_v50 = vpop.permute.xlu2 %1007 }
 0x233   :  { %v940_v2 = vpop.permute.xlu1 %939 }
 0x234   :  { %v943_v22 = vsel %vm194_vm3, %v938_v51, %v940_v2  ;;  %v925_v51 = vmul.f32 %v922_v12, %v2684_v45  ;;  %v944_v11 = vsel %vm194_vm3, %v940_v2, %v2967_v49 }
 0x235   :  { %v948_v10 = vadd.f32 %v943_v22, %v926_v62  ;;  %v949_v61 = vadd.f32 %v944_v11, %v927_v28  ;;  %v1093_v22 = vmul.f32 0.0, %v1092_v19  ;;  %v1230_v28 = vmul.f32 %v1227_v57, %v2684_v45 }
 0x23a   :  { %v982_v52 = vpop.permute.xlu0 %981  ;;  %v1030_v6 = vpop.permute.xlu2 %1029 }
 0x23b   :  { %v962_v0 = vpop.permute.xlu1 %961 }
 0x23c   :  { %v965_v35 = vsel %vm217_vm4, %v960_v60, %v962_v0  ;;  %v928_v60 = vadd.f32 %v925_v51, %v920_v43  ;;  %v1155_v51 = vmul.f32 %v1153_v39, %v2638_v41 }
 0x23d   :  { %v970_v54 = vadd.f32 %v965_v35, %v948_v10  ;;  %v1115_v35 = vmul.f32 0.0, %v1114_v33  ;;  %v1136_v10 = vstv %s2391_s3  ;;  %s2415_s3 = sld [smem:[#allocation3 + $0x5f]] }
 0x23e   :  { %v950_v3 = vadd.f32 %v2967_v49, %v928_v60  ;;  %v1138_v43 = vmul.f32 %v1136_v10, %v2638_v41  ;;  %v1178_v60 = vmul.f32 0.0, %v1175_v55 }
 0x240   :  { %v972_v36 = vadd.f32 %v964_v1, %v950_v3  ;;  %v1228_v3 = vmul.f32 0.0, %v1227_v57 }
 0x242   :  { %v1004_v23 = vpop.permute.xlu0 %1003  ;;  %v994_v49 = vadd.f32 %v986_v56, %v972_v36  ;;  %v1052_v5 = vpop.permute.xlu2 %1051 }
 0x243   :  { %v984_v25 = vpop.permute.xlu1 %983 }
 0x244   :  { %v987_v14 = vsel %vm240_vm5, %v982_v52, %v984_v25  ;;  %v966_v52 = vsel %vm217_vm4, %v962_v0, %v964_v1  ;;  %v988_v16 = vsel %vm240_vm5, %v984_v25, %v986_v56 }
 0x245   :  { %v992_v38 = vadd.f32 %v987_v14, %v970_v54  ;;  %v971_v12 = vadd.f32 %v966_v52, %v949_v61  ;;  %v1117_v14 = vmul.f32 %v1114_v33, %v2638_v41  ;;  %v1154_v54 = vmul.f32 %v1153_v39, %v2642_v44 }
 0x246   :  { %v1271_v52 = vstv %s2398_s15  ;;  %s2419_s15 = sld [smem:[#allocation3 + $0x1a]] }
 0x247   :  { %v1014_v34 = vadd.f32 %v1004_v23, %v992_v38  ;;  %v993_v2 = vadd.f32 %v988_v16, %v971_v12  ;;  %v1156_v38 = vmul.f32 0.0, %v1153_v39  ;;  %v1272_v61 = vmul.f32 %v1271_v52, %v2679_v42 }
 0x24a   :  { %v1026_v58 = vpop.permute.xlu0 %1025 }
 0x24b   :  { %v1006_v47 = vpop.permute.xlu1 %1005  ;;  %v1036_v48 = vadd.f32 %v1026_v58, %v1014_v34 }
 0x24c   :  { %v1009_v17 = vsel %vm263_vm6, %v1004_v23, %v1006_v47  ;;  %v1010_v8 = vsel %vm263_vm6, %v1006_v47, %v1008_v50  ;;  %v1137_v50 = vmul.f32 %v1136_v10, %v2642_v44 }
 0x24d   :  { %v1015_v20 = vadd.f32 %v1009_v17, %v993_v2  ;;  %v1016_v21 = vadd.f32 %v1010_v8, %v994_v49  ;;  %v1310_v17 = vstv %s2400_s17  ;;  %v1332_v2 = vstv %s2401_s18  ;;  %s2421_s17 = sld [smem:[#allocation3 + $0x28]] }
 0x24e   :  { %v1313_v8 = vmul.f32 0.0, %v1310_v17  ;;  %v1311_v19 = vmul.f32 %v1310_v17, %v2679_v42  ;;  %v1312_v49 = vmul.f32 %v1310_v17, %v2684_v45  ;;  %s2422_s18 = sld [smem:[#allocation3 + $0x2f]] }
 0x252   :  { %v1048_v46 = vpop.permute.xlu0 %1047 }
 0x253   :  { %v1058_v13 = vadd.f32 %v1048_v46, %v1036_v48  ;;  %v1028_v63 = vpop.permute.xlu1 %1027 }
 0x254   :  { %v1031_v0 = vsel %vm286_vm7, %v1026_v58, %v1028_v63  ;;  %v1032_v1 = vsel %vm286_vm7, %v1028_v63, %v1030_v6  ;;  %v1197_v58 = vstv %s2394_s10  ;;  %v1249_v6 = vstv %s2397_s13  ;;  %s2417_s10 = sld [smem:[#allocation3 + $0xc]] }
 0x255   :  { %1071 = vrot.lane.b32.xlu0 %v1058_v13, %s2581_s29  ;;  %v1037_v24 = vadd.f32 %v1031_v0, %v1015_v20  ;;  %v1038_v53 = vadd.f32 %v1032_v1, %v1016_v21  ;;  %v1199_v59 = vmul.f32 %v1197_v58, %v2638_v41  ;;  %v1198_v47 = vmul.f32 %v1197_v58, %v2642_v44  ;;  %s2418_s13 = sld [smem:[#allocation3 + $0x13]] }
 0x256   :  { %v1200_v34 = vmul.f32 0.0, %v1197_v58  ;;  %v1251_v11 = vmul.f32 %v1249_v6, %v2679_v42  ;;  %v1250_v48 = vmul.f32 0.0, %v1249_v6  ;;  %v1252_v36 = vmul.f32 %v1249_v6, %v2684_v45 }
 0x257   :  { %v1288_v13 = vstv %s2399_s16  ;;  %v1335_v0 = vmul.f32 0.0, %v1332_v2  ;;  %v1333_v1 = vmul.f32 %v1332_v2, %v2679_v42  ;;  %v1334_v20 = vmul.f32 %v1332_v2, %v2684_v45  ;;  %s2420_s16 = sld [smem:[#allocation3 + $0x21]] }
 0x258   :  { %v1291_v63 = vmul.f32 0.0, %v1288_v13  ;;  %v1289_v16 = vmul.f32 %v1288_v13, %v2679_v42  ;;  %v1290_v12 = vmul.f32 %v1288_v13, %v2684_v45 }
 0x25b   :  { %v1050_v62 = vpop.permute.xlu1 %1049 }
 0x25c   :  { %v1053_v25 = vsel %vm309_vm8, %v1048_v46, %v1050_v62  ;;  %v1054_v23 = vsel %vm309_vm8, %v1050_v62, %v1052_v5  ;;  %v1273_v46 = vmul.f32 %v1271_v52, %v2684_v45 }
 0x25d   :  { %1099 = vrot.lane.b32.xlu0 %v1093_v22, %s2572_s6  ;;  %v1060_v4 = vadd.f32 %v1054_v23, %v1038_v53  ;;  %v1059_v56 = vadd.f32 %v1053_v25, %v1037_v24 }
 0x25f   :  { %1075 = vrot.lane.b32.xlu2 %v1060_v4, %s2581_s29  ;;  %1073 = vrot.lane.b32.xlu1 %v1059_v56, %s2581_s29  ;;  %s2413_s29 = sld [smem:[#allocation3 + $0x51]] }
 0x265   :  { %1121 = vrot.lane.b32.xlu0 %v1115_v35, %s2573_s7 }
 0x267   :  { %1101 = vrot.lane.b32.xlu1 %v1094_v27, %s2572_s6  ;;  %1103 = vrot.lane.b32.xlu2 %v1095_v31, %s2572_s6 }
 0x26d   :  { %1141 = vrot.lane.b32.xlu0 %v1137_v50, %s2575_s9 }
 0x26f   :  { %1123 = vrot.lane.b32.xlu1 %v1116_v29, %s2573_s7  ;;  %1125 = vrot.lane.b32.xlu2 %v1117_v14, %s2573_s7 }
 0x275   :  { %1162 = vrot.lane.b32.xlu0 %v1155_v51, %s2574_s8 }
 0x277   :  { %1143 = vrot.lane.b32.xlu1 %v1138_v43, %s2575_s9  ;;  %1160 = vrot.lane.b32.xlu2 %v1154_v54, %s2574_s8  ;;  %v1087_v43 = vstv %s2388_s19  ;;  %s2424_s19 = sld [smem:[#allocation3 + $0x3d]] }
 0x278   :  { %v1090_v58 = vmul.f32 %v1087_v43, %v2638_v41 }
 0x27d   :  { %1184 = vrot.lane.b32.xlu0 %v1177_v32, %s2577_s12 }
 0x27f   :  { %1164 = vrot.lane.b32.xlu1 %v1156_v38, %s2574_s8  ;;  %1182 = vrot.lane.b32.xlu2 %v1176_v40, %s2577_s12  ;;  %v1088_v38 = vmul.f32 0.0, %v1087_v43 }
 0x285   :  { %1206 = vrot.lane.b32.xlu0 %v1199_v59, %s2578_s14 }
 0x287   :  { %1186 = vrot.lane.b32.xlu1 %v1178_v60, %s2577_s12  ;;  %1204 = vrot.lane.b32.xlu2 %v1198_v47, %s2578_s14  ;;  %v1089_v47 = vmul.f32 %v1087_v43, %v2642_v44 }
 0x28d   :  { %1236 = vrot.lane.b32.xlu0 %v1229_v37, %s2572_s6 }
 0x28f   :  { %1208 = vrot.lane.b32.xlu1 %v1200_v34, %s2578_s14  ;;  %1234 = vrot.lane.b32.xlu2 %v1228_v3, %s2572_s6 }
 0x295   :  { %1258 = vrot.lane.b32.xlu0 %v1251_v11, %s2573_s7 }
 0x297   :  { %1238 = vrot.lane.b32.xlu1 %v1230_v28, %s2572_s6  ;;  %1256 = vrot.lane.b32.xlu2 %v1250_v48, %s2573_s7 }
 0x29d   :  { %1278 = vrot.lane.b32.xlu0 %v1273_v46, %s2575_s9 }
 0x29f   :  { %1260 = vrot.lane.b32.xlu1 %v1252_v36, %s2573_s7  ;;  %1276 = vrot.lane.b32.xlu2 %v1272_v61, %s2575_s9 }
 0x2a5   :  { %1299 = vrot.lane.b32.xlu0 %v1291_v63, %s2574_s8 }
 0x2a7   :  { %1295 = vrot.lane.b32.xlu1 %v1289_v16, %s2574_s8  ;;  %1297 = vrot.lane.b32.xlu2 %v1290_v12, %s2574_s8 }
 0x2ad   :  { %1321 = vrot.lane.b32.xlu0 %v1313_v8, %s2577_s12 }
 0x2af   :  { %1317 = vrot.lane.b32.xlu1 %v1311_v19, %s2577_s12  ;;  %1319 = vrot.lane.b32.xlu2 %v1312_v49, %s2577_s12 }
 0x2b5   :  { %1343 = vrot.lane.b32.xlu0 %v1335_v0, %s2578_s14 }
 0x2b7   :  { %1339 = vrot.lane.b32.xlu1 %v1333_v1, %s2578_s14  ;;  %1341 = vrot.lane.b32.xlu2 %v1334_v20, %s2578_s14 }
 0x2b9   :  { %v3057_v21 = vpop.permute.xlu2 %1075 }
 0x2c1   :  { %v1104_v5 = vpop.permute.xlu2 %1103 }
 0x2c2   :  { %v1112_v3 = vadd.f32 %v1104_v5, %v1090_v58 }
 0x2c7   :  { %v3059_v22 = vpop.permute.xlu0 %1071 }
 0x2c9   :  { %v1126_v53 = vpop.permute.xlu2 %1125 }
 0x2ca   :  { %v1134_v36 = vadd.f32 %v1126_v53, %v1112_v3 }
 0x2cf   :  { %v1100_v24 = vpop.permute.xlu0 %1099 }
 0x2d1   :  { %v3061_v62 = vpop.permute.xlu1 %1073  ;;  %v1161_v4 = vpop.permute.xlu2 %1160 }
 0x2d7   :  { %v1122_v25 = vpop.permute.xlu0 %1121 }
 0x2d9   :  { %v1102_v23 = vpop.permute.xlu1 %1101  ;;  %v1183_v35 = vpop.permute.xlu2 %1182 }
 0x2da   :  { %v1105_v40 = vsel %vm194_vm3, %v1100_v24, %v1102_v23  ;;  %v1106_v37 = vsel %vm194_vm3, %v1102_v23, %v1104_v5 }
 0x2db   :  { %v1110_v60 = vadd.f32 %v1105_v40, %v1088_v38  ;;  %v1111_v48 = vadd.f32 %v1106_v37, %v1089_v47 }
 0x2df   :  { %v1142_v56 = vpop.permute.xlu0 %1141 }
 0x2e1   :  { %v1124_v33 = vpop.permute.xlu1 %1123  ;;  %v1205_v10 = vpop.permute.xlu2 %1204 }
 0x2e2   :  { %v1127_v59 = vsel %vm217_vm4, %v1122_v25, %v1124_v33  ;;  %v1128_v28 = vsel %vm217_vm4, %v1124_v33, %v1126_v53  ;;  %v1219_v53 = vstv %s2395_s20  ;;  %s2425_s20 = sld [smem:[#allocation3 + $0x44]] }
 0x2e3   :  { %v1132_v34 = vadd.f32 %v1127_v59, %v1110_v60  ;;  %v1133_v61 = vadd.f32 %v1128_v28, %v1111_v48  ;;  %v1222_v33 = vmul.f32 %v1219_v53, %v2684_v45 }
 0x2e5   :  { %v1149_v52 = vadd.f32 %v1142_v56, %v1132_v34 }
 0x2e7   :  { %v1163_v27 = vpop.permute.xlu0 %1162  ;;  %v1171_v16 = vadd.f32 %v1161_v4, %v1149_v52 }
 0x2e8   :  { %v1166_v12 = vsel %vm263_vm6, %v1161_v4, %v1163_v27 }
 0x2e9   :  { %v1144_v31 = vpop.permute.xlu1 %1143  ;;  %v1235_v14 = vpop.permute.xlu2 %1234  ;;  %v1193_v20 = vadd.f32 %v1183_v35, %v1171_v16 }
 0x2ea   :  { %v1145_v46 = vsel %vm240_vm5, %v1142_v56, %v1144_v31  ;;  %v1151_v8 = vadd.f32 %v1144_v31, %v1134_v36  ;;  %v1220_v31 = vmul.f32 0.0, %v1219_v53 }
 0x2eb   :  { %v1150_v13 = vadd.f32 %v1145_v46, %v1133_v61 }
 0x2ed   :  { %v1172_v0 = vadd.f32 %v1166_v12, %v1150_v13 }
 0x2ef   :  { %v1185_v50 = vpop.permute.xlu0 %1184 }
 0x2f0   :  { %v1188_v5 = vsel %vm286_vm7, %v1183_v35, %v1185_v50 }
 0x2f1   :  { %v1165_v29 = vpop.permute.xlu1 %1164  ;;  %v1257_v55 = vpop.permute.xlu2 %1256  ;;  %v1194_v56 = vadd.f32 %v1188_v5, %v1172_v0 }
 0x2f2   :  { %v1167_v17 = vsel %vm263_vm6, %v1163_v27, %v1165_v29  ;;  %v1215_v29 = vadd.f32 %v1205_v10, %v1193_v20 }
 0x2f3   :  { %v1173_v1 = vadd.f32 %v1167_v17, %v1151_v8 }
 0x2f7   :  { %v1207_v39 = vpop.permute.xlu0 %1206 }
 0x2f8   :  { %v1210_v23 = vsel %vm309_vm8, %v1205_v10, %v1207_v39 }
 0x2f9   :  { %v1187_v51 = vpop.permute.xlu1 %1186  ;;  %v1277_v6 = vpop.permute.xlu2 %1276  ;;  %v1216_v43 = vadd.f32 %v1210_v23, %v1194_v56  ;;  %v1405_v56 = vstv %s2404_s22  ;;  %s2427_s22 = sld [smem:[#allocation3 + $0x52]] }
 0x2fa   :  { %v1189_v2 = vsel %vm286_vm7, %v1185_v50, %v1187_v51  ;;  %v1221_v51 = vmul.f32 %v1219_v53, %v2679_v42 }
 0x2fb   :  { %v1195_v25 = vadd.f32 %v1189_v2, %v1173_v1 }
 0x2fc   :  { %v1224_v59 = vadd.f32 %v1221_v51, %v1216_v43 }
 0x2ff   :  { %v1237_v54 = vpop.permute.xlu0 %1236 }
 0x300   :  { %v1240_v40 = vsel %vm194_vm3, %v1235_v14, %v1237_v54 }
 0x301   :  { %v1209_v32 = vpop.permute.xlu1 %1208  ;;  %v1298_v49 = vpop.permute.xlu2 %1297 }
 0x302   :  { %v1211_v24 = vsel %vm309_vm8, %v1207_v39, %v1209_v32  ;;  %v1223_v32 = vadd.f32 %v1220_v31, %v1215_v29  ;;  %v1427_v31 = vstv %s2405_s23  ;;  %s2431_s23 = sld [smem:[#allocation3 + $0xd]] }
 0x303   :  { %v1217_v4 = vadd.f32 %v1211_v24, %v1195_v25  ;;  %v1383_v24 = vstv %s2403_s21  ;;  %v1430_v29 = vmul.f32 0.0, %v1427_v31  ;;  %v1428_v43 = vmul.f32 %v1427_v31, %v2642_v44  ;;  %s2426_s21 = sld [smem:[#allocation3 + $0x4b]] }
 0x304   :  { %v1245_v47 = vadd.f32 %v1240_v40, %v1223_v32  ;;  %v1386_v53 = vmul.f32 %v1383_v24, %v2638_v41  ;;  %v1384_v25 = vmul.f32 0.0, %v1383_v24  ;;  %v1385_v23 = vmul.f32 %v1383_v24, %v2642_v44 }
 0x305   :  { %v1225_v35 = vadd.f32 %v1222_v33, %v1217_v4  ;;  %v1408_v4 = vmul.f32 %v1405_v56, %v2638_v41  ;;  %v1406_v33 = vmul.f32 0.0, %v1405_v56  ;;  %v1429_v51 = vmul.f32 %v1427_v31, %v2638_v41 }
 0x306   :  { %v1471_v32 = vstv %s2407_s25  ;;  %s2432_s25 = sld [smem:[#allocation3 + $0x14]] }
 0x307   :  { %v1259_v57 = vpop.permute.xlu0 %1258 }
 0x308   :  { %v1262_v39 = vsel %vm217_vm4, %v1257_v55, %v1259_v57 }
 0x309   :  { %v1239_v11 = vpop.permute.xlu1 %1238  ;;  %v1320_v50 = vpop.permute.xlu2 %1319  ;;  %v1267_v28 = vadd.f32 %v1262_v39, %v1245_v47  ;;  %v1472_v39 = vmul.f32 %v1471_v32, %v2642_v44 }
 0x30a   :  { %v1241_v58 = vsel %vm194_vm3, %v1237_v54, %v1239_v11  ;;  %v1247_v60 = vadd.f32 %v1239_v11, %v1225_v35 }
 0x30b   :  { %v1246_v34 = vadd.f32 %v1241_v58, %v1224_v59  ;;  %v1284_v61 = vadd.f32 %v1277_v6, %v1267_v28  ;;  %v1474_v58 = vmul.f32 0.0, %v1471_v32  ;;  %v1473_v59 = vmul.f32 %v1471_v32, %v2638_v41 }
 0x30f   :  { %v1279_v63 = vpop.permute.xlu0 %1278 }
 0x310   :  { %v1280_v14 = vsel %vm240_vm5, %v1277_v6, %v1279_v63 }
 0x311   :  { %v1261_v19 = vpop.permute.xlu1 %1260 }
 0x312   :  { %v1263_v37 = vsel %vm217_vm4, %v1259_v57, %v1261_v19  ;;  %v1269_v10 = vadd.f32 %v1261_v19, %v1247_v60  ;;  %v1342_v57 = vpop.permute.xlu2 %1341  ;;  %v1493_v60 = vstv %s2408_s26  ;;  %s2433_s26 = sld [smem:[#allocation3 + $0x1b]] }
 0x313   :  { %v1268_v48 = vadd.f32 %v1263_v37, %v1246_v34  ;;  %v1496_v47 = vmul.f32 0.0, %v1493_v60  ;;  %v1494_v37 = vmul.f32 %v1493_v60, %v2642_v44  ;;  %v1495_v34 = vmul.f32 %v1493_v60, %v2638_v41 }
 0x314   :  { %v1286_v36 = vadd.f32 %v1279_v63, %v1269_v10  ;;  %v1523_v10 = vstv %s2410_s27  ;;  %s2434_s27 = sld [smem:[#allocation3 + $0x22]] }
 0x315   :  { %v1285_v13 = vadd.f32 %v1280_v14, %v1268_v48  ;;  %v1524_v28 = vmul.f32 0.0, %v1523_v10  ;;  %v1525_v48 = vmul.f32 %v1523_v10, %v2679_v42 }
 0x317   :  { %v1300_v27 = vpop.permute.xlu0 %1299 }
 0x318   :  { %v1302_v46 = vsel %vm263_vm6, %v1298_v49, %v1300_v27  ;;  %v1407_v27 = vmul.f32 %v1405_v56, %v2642_v44 }
 0x319   :  { %v1296_v38 = vpop.permute.xlu1 %1295  ;;  %v1308_v11 = vadd.f32 %v1302_v46, %v1286_v36 }
 0x31a   :  { %v1301_v54 = vsel %vm263_vm6, %v1296_v38, %v1298_v49  ;;  %v1306_v16 = vadd.f32 %v1296_v38, %v1284_v61  ;;  %v1449_v38 = vstv %s2406_s24  ;;  %v1567_v61 = vstv %s2412_s0  ;;  %s2428_s24 = sld [smem:[#allocation3 + $0x59]] }
 0x31b   :  { %v1307_v17 = vadd.f32 %v1301_v54, %v1285_v13  ;;  %v1452_v40 = vmul.f32 0.0, %v1449_v38  ;;  %v1450_v35 = vmul.f32 %v1449_v38, %v2642_v44  ;;  %v1570_v54 = vmul.f32 0.0, %v1567_v61 }
 0x31c   :  { %v1589_v13 = vstv %s2413_s29  ;;  %s2435_s29 = sld [smem:[#allocation3 + $0x29]] }
 0x31f   :  { %v1322_v3 = vpop.permute.xlu0 %1321 }
 0x320   :  { %v1324_v55 = vsel %vm286_vm7, %v1320_v50, %v1322_v3  ;;  %v1526_v3 = vmul.f32 %v1523_v10, %v2684_v45 }
 0x321   :  { %v1318_v52 = vpop.permute.xlu1 %1317  ;;  %v1330_v8 = vadd.f32 %v1324_v55, %v1308_v11  ;;  %v1568_v55 = vmul.f32 %v1567_v61, %v2679_v42  ;;  %v1569_v11 = vmul.f32 %v1567_v61, %v2684_v45 }
 0x322   :  { %v1323_v12 = vsel %vm286_vm7, %v1318_v52, %v1320_v50  ;;  %v1328_v2 = vadd.f32 %v1318_v52, %v1306_v16  ;;  %v1451_v50 = vmul.f32 %v1449_v38, %v2638_v41  ;;  %v1545_v52 = vstv %s2411_s28 }
 0x323   :  { %v1329_v1 = vadd.f32 %v1323_v12, %v1307_v17  ;;  %v1548_v14 = vmul.f32 %v1545_v52, %v2684_v45  ;;  %v1546_v46 = vmul.f32 0.0, %v1545_v52  ;;  %v1547_v36 = vmul.f32 %v1545_v52, %v2679_v42 }
 0x324   :  { %v1590_v16 = vmul.f32 %v1589_v13, %v2679_v42  ;;  %v1591_v12 = vmul.f32 %v1589_v13, %v2684_v45  ;;  %v1611_v17 = vstv %s2414_s2  ;;  %s2416_s2 = sld [smem:[#allocation3 + $0x5]] }
 0x327   :  { %v1344_v19 = vpop.permute.xlu0 %1343 }
 0x328   :  { %v1346_v0 = vsel %vm309_vm8, %v1342_v57, %v1344_v19  ;;  %v1612_v19 = vmul.f32 %v1611_v17, %v2679_v42 }
 0x329   :  { %v1352_v63 = vadd.f32 %v1346_v0, %v1330_v8  ;;  %v1340_v6 = vpop.permute.xlu1 %1339  ;;  %v1614_v8 = vmul.f32 0.0, %v1611_v17  ;;  %v1633_v0 = vstv %s2415_s3  ;;  %s2438_s3 = sld [smem:[#allocation3 + $0x3e]] }
 0x32a   :  { %v1345_v49 = vsel %vm309_vm8, %v1340_v6, %v1342_v57  ;;  %v1350_v20 = vadd.f32 %v1340_v6, %v1328_v2  ;;  %v1592_v57 = vmul.f32 0.0, %v1589_v13  ;;  %v1613_v2 = vmul.f32 %v1611_v17, %v2684_v45 }
 0x32b   :  { %v1351_v5 = vadd.f32 %v1345_v49, %v1329_v1  ;;  %1367 = vrot.lane.b32.xlu0 %v1352_v63, %s2577_s12  ;;  %v1636_v63 = vmul.f32 0.0, %v1633_v0  ;;  %v1634_v6 = vmul.f32 %v1633_v0, %v2679_v42  ;;  %v1635_v49 = vmul.f32 %v1633_v0, %v2684_v45 }
 0x32c   :  { %1363 = vrot.lane.b32.xlu1 %v1350_v20, %s2577_s12 }
 0x32d   :  { %1365 = vrot.lane.b32.xlu2 %v1351_v5, %s2577_s12 }
 0x333   :  { %1394 = vrot.lane.b32.xlu0 %v1386_v53, %s2572_s6 }
 0x334   :  { %1390 = vrot.lane.b32.xlu1 %v1384_v25, %s2572_s6 }
 0x335   :  { %1392 = vrot.lane.b32.xlu2 %v1385_v23, %s2572_s6 }
 0x33b   :  { %1416 = vrot.lane.b32.xlu0 %v1408_v4, %s2573_s7 }
 0x33c   :  { %1412 = vrot.lane.b32.xlu1 %v1406_v33, %s2573_s7 }
 0x33d   :  { %1414 = vrot.lane.b32.xlu2 %v1407_v27, %s2573_s7 }
 0x343   :  { %1438 = vrot.lane.b32.xlu0 %v1430_v29, %s2575_s9 }
 0x344   :  { %1434 = vrot.lane.b32.xlu1 %v1428_v43, %s2575_s9 }
 0x345   :  { %1436 = vrot.lane.b32.xlu2 %v1429_v51, %s2575_s9 }
 0x34b   :  { %1460 = vrot.lane.b32.xlu0 %v1452_v40, %s2574_s8 }
 0x34c   :  { %1456 = vrot.lane.b32.xlu1 %v1450_v35, %s2574_s8 }
 0x34d   :  { %1458 = vrot.lane.b32.xlu2 %v1451_v50, %s2574_s8 }
 0x353   :  { %1482 = vrot.lane.b32.xlu0 %v1474_v58, %s2577_s12 }
 0x354   :  { %1478 = vrot.lane.b32.xlu1 %v1472_v39, %s2577_s12 }
 0x355   :  { %1480 = vrot.lane.b32.xlu2 %v1473_v59, %s2577_s12 }
 0x35b   :  { %1504 = vrot.lane.b32.xlu0 %v1496_v47, %s2578_s14 }
 0x35c   :  { %1500 = vrot.lane.b32.xlu1 %v1494_v37, %s2578_s14 }
 0x35d   :  { %1502 = vrot.lane.b32.xlu2 %v1495_v34, %s2578_s14 }
 0x363   :  { %1534 = vrot.lane.b32.xlu0 %v1526_v3, %s2572_s6  ;;  %v1378_v3 = vstv %s2402_s30  ;;  %s2439_s30 = sld [smem:[#allocation3 + $0x45]] }
 0x364   :  { %1530 = vrot.lane.b32.xlu1 %v1524_v28, %s2572_s6  ;;  %v1381_v28 = vmul.f32 %v1378_v3, %v2638_v41  ;;  %v1379_v61 = vmul.f32 0.0, %v1378_v3 }
 0x365   :  { %1532 = vrot.lane.b32.xlu2 %v1525_v48, %s2572_s6 }
 0x36b   :  { %1556 = vrot.lane.b32.xlu0 %v1548_v14, %s2573_s7 }
 0x36c   :  { %1552 = vrot.lane.b32.xlu1 %v1546_v46, %s2573_s7  ;;  %v1380_v46 = vmul.f32 %v1378_v3, %v2642_v44 }
 0x36d   :  { %1554 = vrot.lane.b32.xlu2 %v1547_v36, %s2573_s7 }
 0x373   :  { %1578 = vrot.lane.b32.xlu0 %v1570_v54, %s2575_s9 }
 0x374   :  { %1574 = vrot.lane.b32.xlu1 %v1568_v55, %s2575_s9 }
 0x375   :  { %1576 = vrot.lane.b32.xlu2 %v1569_v11, %s2575_s9 }
 0x37b   :  { %1600 = vrot.lane.b32.xlu0 %v1592_v57, %s2574_s8 }
 0x37c   :  { %1596 = vrot.lane.b32.xlu1 %v1590_v16, %s2574_s8 }
 0x37d   :  { %1598 = vrot.lane.b32.xlu2 %v1591_v12, %s2574_s8 }
 0x383   :  { %1622 = vrot.lane.b32.xlu0 %v1614_v8, %s2577_s12 }
 0x384   :  { %1618 = vrot.lane.b32.xlu1 %v1612_v19, %s2577_s12 }
 0x385   :  { %1620 = vrot.lane.b32.xlu2 %v1613_v2, %s2577_s12 }
 0x387   :  { %v1366_v1 = vpop.permute.xlu2 %1365 }
 0x38b   :  { %1644 = vrot.lane.b32.xlu0 %v1636_v63, %s2578_s14 }
 0x38c   :  { %1640 = vrot.lane.b32.xlu1 %v1634_v6, %s2578_s14 }
 0x38d   :  { %1642 = vrot.lane.b32.xlu2 %v1635_v49, %s2578_s14 }
 0x38f   :  { %v1393_v20 = vpop.permute.xlu2 %1392 }
 0x397   :  { %v1415_v5 = vpop.permute.xlu2 %1414 }
 0x39d   :  { %v1368_v24 = vpop.permute.xlu0 %1367 }
 0x39e   :  { %v3153_v53 = vsel %vm286_vm7, %v1366_v1, %v1368_v24  ;;  %v1364_v25 = vpop.permute.xlu1 %1363 }
 0x39f   :  { %v3156_v23 = vsel %vm286_vm7, %v1364_v25, %v1366_v1  ;;  %v1437_v56 = vpop.permute.xlu2 %1436 }
 0x3a5   :  { %v1395_v4 = vpop.permute.xlu0 %1394 }
 0x3a6   :  { %v1397_v33 = vsel %vm194_vm3, %v1393_v20, %v1395_v4  ;;  %v1391_v27 = vpop.permute.xlu1 %1390  ;;  %v1403_v48 = vadd.f32 %v1395_v4, %v1381_v28 }
 0x3a7   :  { %v1459_v31 = vpop.permute.xlu2 %1458  ;;  %v1402_v55 = vadd.f32 %v1397_v33, %v1380_v46  ;;  %v1396_v11 = vsel %vm194_vm3, %v1391_v27, %v1393_v20 }
 0x3a8   :  { %v1401_v12 = vadd.f32 %v1396_v11, %v1379_v61 }
 0x3ad   :  { %v1417_v29 = vpop.permute.xlu0 %1416 }
 0x3ae   :  { %v1413_v43 = vpop.permute.xlu1 %1412  ;;  %v1425_v54 = vadd.f32 %v1417_v29, %v1403_v48  ;;  %v1419_v57 = vsel %vm217_vm4, %v1415_v5, %v1417_v29 }
 0x3af   :  { %v1481_v38 = vpop.permute.xlu2 %1480  ;;  %v1418_v16 = vsel %vm217_vm4, %v1413_v43, %v1415_v5  ;;  %v1424_v19 = vadd.f32 %v1419_v57, %v1402_v55  ;;  %v1515_v43 = vstv %s2409_s5  ;;  %s2440_s5 = sld [smem:[#allocation3 + $0x4c]] }
 0x3b0   :  { %v1423_v1 = vadd.f32 %v1418_v16, %v1401_v12  ;;  %v1516_v46 = vmul.f32 0.0, %v1515_v43  ;;  %v1518_v61 = vmul.f32 %v1515_v43, %v2684_v45 }
 0x3b5   :  { %v1439_v51 = vpop.permute.xlu0 %1438 }
 0x3b6   :  { %v1435_v40 = vpop.permute.xlu1 %1434  ;;  %v1441_v13 = vsel %vm240_vm5, %v1437_v56, %v1439_v51 }
 0x3b7   :  { %v1503_v32 = vpop.permute.xlu2 %1502  ;;  %v1447_v17 = vadd.f32 %v1441_v13, %v1425_v54  ;;  %v1440_v63 = vsel %vm240_vm5, %v1435_v40, %v1437_v56  ;;  %v1445_v49 = vadd.f32 %v1435_v40, %v1423_v1 }
 0x3b8   :  { %v1446_v25 = vadd.f32 %v1440_v63, %v1424_v19 }
 0x3bd   :  { %v1461_v35 = vpop.permute.xlu0 %1460 }
 0x3be   :  { %v1457_v50 = vpop.permute.xlu1 %1456  ;;  %v1463_v2 = vsel %vm263_vm6, %v1459_v31, %v1461_v35 }
 0x3bf   :  { %v1533_v59 = vpop.permute.xlu2 %1532  ;;  %v1469_v20 = vadd.f32 %v1463_v2, %v1447_v17  ;;  %v1462_v24 = vsel %vm263_vm6, %v1457_v50, %v1459_v31  ;;  %v1467_v5 = vadd.f32 %v1457_v50, %v1445_v49  ;;  %v1517_v50 = vmul.f32 %v1515_v43, %v2679_v42 }
 0x3c0   :  { %v1468_v27 = vadd.f32 %v1462_v24, %v1446_v25 }
 0x3c5   :  { %v1483_v58 = vpop.permute.xlu0 %1482 }
 0x3c6   :  { %v1479_v39 = vpop.permute.xlu1 %1478  ;;  %v1485_v4 = vsel %vm286_vm7, %v1481_v38, %v1483_v58 }
 0x3c7   :  { %v1555_v37 = vpop.permute.xlu2 %1554  ;;  %v1484_v33 = vsel %vm286_vm7, %v1479_v39, %v1481_v38  ;;  %v1491_v51 = vadd.f32 %v1485_v4, %v1469_v20  ;;  %v1489_v35 = vadd.f32 %v1479_v39, %v1467_v5 }
 0x3c8   :  { %v1490_v28 = vadd.f32 %v1484_v33, %v1468_v27 }
 0x3cd   :  { %v1505_v60 = vpop.permute.xlu0 %1504 }
 0x3ce   :  { %v1501_v47 = vpop.permute.xlu1 %1500  ;;  %v1507_v29 = vsel %vm309_vm8, %v1503_v32, %v1505_v60 }
 0x3cf   :  { %v1577_v14 = vpop.permute.xlu2 %1576  ;;  %v1506_v3 = vsel %vm309_vm8, %v1501_v47, %v1503_v32  ;;  %v1513_v48 = vadd.f32 %v1507_v29, %v1491_v51  ;;  %v1511_v31 = vadd.f32 %v1501_v47, %v1489_v35 }
 0x3d0   :  { %v1512_v58 = vadd.f32 %v1506_v3, %v1490_v28  ;;  %v1685_v3 = vstv %s2417_s10  ;;  %s2423_s10 = sld [smem:[#allocation3 + $0x36]] }
 0x3d1   :  { %v1519_v60 = vadd.f32 %v1516_v46, %v1511_v31  ;;  %v1521_v55 = vadd.f32 %v1518_v61, %v1513_v48  ;;  %v1686_v28 = vmul.f32 0.0, %v1685_v3  ;;  %v1707_v48 = vstv %s2418_s13  ;;  %s2584_s13 = smov 45  }
 0x3d2   :  { %v1520_v11 = vadd.f32 %v1517_v50, %v1512_v58  ;;  %v1710_v46 = vmul.f32 %v1707_v48, %v2638_v41  ;;  %v1708_v31 = vmul.f32 0.0, %v1707_v48  ;;  %v1709_v61 = vmul.f32 %v1707_v48, %v2642_v44 }
 0x3d3   :  { %v1729_v58 = vstv %s2419_s15  ;;  %s2585_s15 = smov [#allocation10]  }
 0x3d4   :  { %v1732_v50 = vmul.f32 0.0, %v1729_v58 }
 0x3d5   :  { %v1535_v34 = vpop.permute.xlu0 %1534 }
 0x3d6   :  { %v1531_v10 = vpop.permute.xlu1 %1530  ;;  %v1537_v39 = vsel %vm194_vm3, %v1533_v59, %v1535_v34  ;;  %v1543_v13 = vadd.f32 %v1535_v34, %v1521_v55 }
 0x3d7   :  { %v1599_v6 = vpop.permute.xlu2 %1598  ;;  %v1536_v54 = vsel %vm194_vm3, %v1531_v10, %v1533_v59  ;;  %v1542_v12 = vadd.f32 %v1537_v39, %v1520_v11 }
 0x3d8   :  { %v1541_v57 = vadd.f32 %v1536_v54, %v1519_v60  ;;  %v1731_v54 = vmul.f32 %v1729_v58, %v2638_v41  ;;  %v1751_v60 = vstv %s2420_s16  ;;  %s2333_s16 = sshll.u32 %s2585_s15, 4  ;;  %s2334_s16 = int_to_ptr.vmem [resolvable:$true] %s2333_s16 }
 0x3d9   :  { %v1754_v55 = vmul.f32 0.0, %v1751_v60  ;;  %v1752_v39 = vmul.f32 %v1751_v60, %v2642_v44  ;;  %v1753_v11 = vmul.f32 %v1751_v60, %v2638_v41  ;;  %v1062_v60 = vld [vmem:[#allocation7 + $0x2] ss:$8 sm:$0x3] }
 0x3dd   :  { %v1557_v52 = vpop.permute.xlu0 %1556 }
 0x3de   :  { %v1553_v36 = vpop.permute.xlu1 %1552  ;;  %v1559_v16 = vsel %vm217_vm4, %v1555_v37, %v1557_v52  ;;  %v1565_v2 = vadd.f32 %v1557_v52, %v1543_v13 }
 0x3df   :  { %v1621_v38 = vpop.permute.xlu2 %1620  ;;  %v1558_v32 = vsel %vm217_vm4, %v1553_v36, %v1555_v37  ;;  %v1564_v63 = vadd.f32 %v1559_v16, %v1542_v12 }
 0x3e0   :  { %v1563_v1 = vadd.f32 %v1558_v32, %v1541_v57  ;;  %v1773_v32 = vstv %s2421_s17 }
 0x3e1   :  { %v1776_v13 = vmul.f32 0.0, %v1773_v32  ;;  %v1774_v57 = vmul.f32 %v1773_v32, %v2642_v44  ;;  %v1775_v16 = vmul.f32 %v1773_v32, %v2638_v41 }
 0x3e5   :  { %v1579_v8 = vpop.permute.xlu0 %1578 }
 0x3e6   :  { %v1575_v0 = vpop.permute.xlu1 %1574  ;;  %v1581_v17 = vsel %vm240_vm5, %v1577_v14, %v1579_v8 }
 0x3e7   :  { %v1580_v10 = vsel %vm240_vm5, %v1575_v0, %v1577_v14  ;;  %v1587_v59 = vadd.f32 %v1581_v17, %v1565_v2  ;;  %v1585_v20 = vadd.f32 %v1575_v0, %v1563_v1  ;;  %v1643_v4 = vpop.permute.xlu2 %1642  ;;  %v1825_v2 = vstv %s2424_s19  ;;  %s2335_s19 = sshll.u32 %s3425_s4, 4  ;;  %s2336_s19 = int_to_ptr.hbm [resolvable:$true] %s2335_s19 }
 0x3e8   :  { %v1586_v34 = vadd.f32 %v1580_v10, %v1564_v63  ;;  %v1828_v1 = vmul.f32 %v1825_v2, %v2684_v45  ;;  %v1826_v10 = vmul.f32 0.0, %v1825_v2  ;;  %v1827_v63 = vmul.f32 %v1825_v2, %v2679_v42 }
 0x3ed   :  { %v1601_v56 = vpop.permute.xlu0 %1600 }
 0x3ee   :  { %v1597_v40 = vpop.permute.xlu1 %1596  ;;  %v1603_v49 = vsel %vm263_vm6, %v1599_v6, %v1601_v56  ;;  %v1688_v56 = vmul.f32 %v1685_v3, %v2638_v41 }
 0x3ef   :  { %v1602_v36 = vsel %vm263_vm6, %v1597_v40, %v1599_v6  ;;  %v1609_v37 = vadd.f32 %v1603_v49, %v1587_v59  ;;  %v1607_v25 = vadd.f32 %v1597_v40, %v1585_v20  ;;  %v1687_v40 = vmul.f32 %v1685_v3, %v2642_v44 }
 0x3f0   :  { %v1608_v52 = vadd.f32 %v1602_v36, %v1586_v34  ;;  %v1847_v49 = vstv %s2425_s20  ;;  %v1869_v34 = vstv %s2426_s21 }
 0x3f1   :  { %v1850_v59 = vmul.f32 %v1847_v49, %v2684_v45  ;;  %v1848_v20 = vmul.f32 0.0, %v1847_v49  ;;  %v1849_v36 = vmul.f32 %v1847_v49, %v2679_v42 }
 0x3f5   :  { %v1623_v47 = vpop.permute.xlu0 %1622 }
 0x3f6   :  { %v1619_v19 = vpop.permute.xlu1 %1618  ;;  %v1625_v24 = vsel %vm286_vm7, %v1621_v38, %v1623_v47  ;;  %v1795_v47 = vstv %s2422_s18 }
 0x3f7   :  { %v1624_v8 = vsel %vm286_vm7, %v1619_v19, %v1621_v38  ;;  %v1631_v5 = vadd.f32 %v1625_v24, %v1609_v37  ;;  %v1629_v33 = vadd.f32 %v1619_v19, %v1607_v25  ;;  %v1730_v38 = vmul.f32 %v1729_v58, %v2642_v44 }
 0x3f8   :  { %v1630_v27 = vadd.f32 %v1624_v8, %v1608_v52  ;;  %v1798_v12 = vmul.f32 0.0, %v1795_v47  ;;  %v1796_v17 = vmul.f32 %v1795_v47, %v2642_v44  ;;  %v1797_v19 = vmul.f32 %v1795_v47, %v2638_v41 }
 0x3f9   :  { %v1872_v24 = vmul.f32 0.0, %v1869_v34  ;;  %v1870_v37 = vmul.f32 %v1869_v34, %v2679_v42  ;;  %v1871_v25 = vmul.f32 %v1869_v34, %v2684_v45  ;;  %v1891_v8 = vstv %s2427_s22 }
 0x3fa   :  { %v1892_v52 = vmul.f32 %v1891_v8, %v2679_v42  ;;  %v2053_v47 = vstv %s2434_s27 }
 0x3fb   :  { %v2054_v34 = vmul.f32 %v2053_v47, %v2642_v44 }
 0x3fd   :  { %v1645_v14 = vpop.permute.xlu0 %1644 }
 0x3fe   :  { %v1647_v29 = vsel %vm309_vm8, %v1643_v4, %v1645_v14  ;;  %v1641_v43 = vpop.permute.xlu1 %1640  ;;  %v3236_v14 = vstv %s2428_s24 }
 0x3ff   :  { %v1653_v0 = vadd.f32 %v1647_v29, %v1631_v5  ;;  %v1646_v6 = vsel %vm309_vm8, %v1641_v43, %v1643_v4  ;;  %v1651_v51 = vadd.f32 %v1641_v43, %v1629_v33  ;;  %v1894_v4 = vmul.f32 0.0, %v1891_v8 }
 0x400   :  { %v1652_v35 = vadd.f32 %v1646_v6, %v1630_v27  ;;  %v1893_v5 = vmul.f32 %v1891_v8, %v2684_v45  ;;  %v1987_v33 = vstv %s2431_s23  ;;  %v1914_v29 = vmul.f32 %v3236_v14, %v2679_v42 }
 0x401   :  { %1668 = vrot.lane.b32.xlu0 %v1653_v0, %s2582_s11  ;;  %1664 = vrot.lane.b32.xlu1 %v1651_v51, %s2582_s11  ;;  %v1990_v27 = vmul.f32 %v1987_v33, %v2638_v41  ;;  %v1989_v43 = vmul.f32 %v1987_v33, %v2642_v44  ;;  %v2009_v0 = vstv %s2432_s25 }
 0x402   :  { %1666 = vrot.lane.b32.xlu2 %v1652_v35, %s2582_s11  ;;  %v2012_v51 = vmul.f32 %v2009_v0, %v2638_v41  ;;  %v1988_v35 = vmul.f32 0.0, %v1987_v33  ;;  %v2011_v3 = vmul.f32 %v2009_v0, %v2642_v44  ;;  %s2583_s11 = smov 46  }
 0x409   :  { %1696 = vrot.lane.b32.xlu0 %v1688_v56, %s2572_s6  ;;  %1692 = vrot.lane.b32.xlu1 %v1686_v28, %s2572_s6  ;;  %v458_v56 = vld [vmem:[#allocation7] ss:$8 sm:$0x3]  ;;  %v2031_v28 = vstv %s2433_s26 }
 0x40a   :  { %1694 = vrot.lane.b32.xlu2 %v1687_v40, %s2572_s6  ;;  %v460_v48 = vperm.slane %v458_v56, 0  ;;  %v461_v58 = vperm.slane %v458_v56, 1 }
 0x411   :  { %1718 = vrot.lane.b32.xlu0 %v1710_v46, %s2573_s7  ;;  %1714 = vrot.lane.b32.xlu1 %v1708_v31, %s2573_s7  ;;  %v760_v46 = vld [vmem:[#allocation7 + $0x1] ss:$8 sm:$0x3]  ;;  %v2033_v31 = vmul.f32 %v2031_v28, %v2638_v41 }
 0x412   :  { %1716 = vrot.lane.b32.xlu2 %v1709_v61, %s2573_s7  ;;  %v2010_v61 = vmul.f32 0.0, %v2009_v0 }
 0x419   :  { %1740 = vrot.lane.b32.xlu0 %v1732_v50, %s2575_s9  ;;  %1736 = vrot.lane.b32.xlu1 %v1730_v38, %s2575_s9  ;;  %v474_v50 = vsel %vm473_vm9, %v2871_v18, %v2875_v26  ;;  %v2032_v38 = vmul.f32 %v2031_v28, %v2642_v44  ;;  %v777_v18 = vsel %vm775_vm10, %v2965_v30, %v2958_v15 }
 0x41a   :  { %1738 = vrot.lane.b32.xlu2 %v1731_v54, %s2575_s9  ;;  %v475_v54 = vsel %vm473_vm9, %v2875_v26, %v2869_v9  ;;  %v478_v32 = vmul.f32 %v474_v50, %v460_v48  ;;  %v1064_v26 = vperm.slane %v1062_v60, 0 }
 0x41b   :  { %v479_v9 = vmul.f32 %v475_v54, %v461_v58 }
 0x421   :  { %1762 = vrot.lane.b32.xlu0 %v1754_v55, %s2574_s8  ;;  %1758 = vrot.lane.b32.xlu1 %v1752_v39, %s2574_s8  ;;  %v762_v55 = vperm.slane %v760_v46, 0  ;;  %v763_v39 = vperm.slane %v760_v46, 1 }
 0x422   :  { %1760 = vrot.lane.b32.xlu2 %v1753_v11, %s2574_s8  ;;  %v174_v11 = vstv %s3422_s1  ;;  %s2436_s1 = sld [smem:[#allocation3 + $0x30]] }
 0x423   :  { %v781_v15 = vmul.f32 %v777_v18, %v763_v39  ;;  %v481_v49 = vadd.f32 %v479_v9, %v174_v11  ;;  %v2127_v18 = vstv %s2438_s3 }
 0x428   :  { %v2097_v46 = vstv %s2436_s1 }
 0x429   :  { %1784 = vrot.lane.b32.xlu0 %v1776_v13, %s2577_s12  ;;  %1780 = vrot.lane.b32.xlu1 %v1774_v57, %s2577_s12  ;;  %v776_v13 = vsel %vm775_vm10, %v2963_v7, %v2965_v30  ;;  %v1354_v57 = vld [vmem:[#allocation7 + $0x3] ss:$8 sm:$0x3]  ;;  %v1079_v7 = vsel %vm1077_vm11, %v3061_v62, %v3057_v21  ;;  %v2098_v39 = vmul.f32 %v2097_v46, %v2642_v44 }
 0x42a   :  { %1782 = vrot.lane.b32.xlu2 %v1775_v16, %s2577_s12  ;;  %v1065_v16 = vperm.slane %v1062_v60, 1  ;;  %v1357_v30 = vperm.slane %v1354_v57, 1  ;;  %v2099_v60 = vmul.f32 %v2097_v46, %v2638_v41 }
 0x42c   :  { %v1374_v21 = vmul.f32 %v3153_v53, %v1357_v30  ;;  %v2130_v30 = vmul.f32 %v2127_v18, %v2684_v45 }
 0x431   :  { %1806 = vrot.lane.b32.xlu0 %v1798_v12, %s2578_s14  ;;  %1802 = vrot.lane.b32.xlu1 %v1796_v17, %s2578_s14  ;;  %v1078_v12 = vsel %vm1077_vm11, %v3059_v22, %v3061_v62  ;;  %v780_v17 = vmul.f32 %v776_v13, %v762_v55 }
 0x432   :  { %1804 = vrot.lane.b32.xlu2 %v1797_v19, %s2578_s14  ;;  %v1356_v19 = vperm.slane %v1354_v57, 0 }
 0x434   :  { %v1373_v62 = vmul.f32 %v3156_v23, %v1356_v19  ;;  %v2100_v19 = vmul.f32 0.0, %v2097_v46 }
 0x439   :  { %1836 = vrot.lane.b32.xlu0 %v1828_v1, %s2572_s6  ;;  %1832 = vrot.lane.b32.xlu1 %v1826_v10, %s2572_s6  ;;  %v480_v1 = vadd.f32 %v478_v32, %v174_v11  ;;  %v2055_v10 = vmul.f32 %v2053_v47, %v2638_v41 }
 0x43a   :  { %1834 = vrot.lane.b32.xlu2 %v1827_v63, %s2572_s6  ;;  %v2034_v63 = vmul.f32 0.0, %v2031_v28 }
 0x43b   :  { %v782_v22 = vadd.f32 %v780_v17, %v480_v1  ;;  %v2129_v1 = vmul.f32 %v2127_v18, %v2679_v42 }
 0x441   :  { %1858 = vrot.lane.b32.xlu0 %v1850_v59, %s2573_s7  ;;  %1854 = vrot.lane.b32.xlu1 %v1848_v20, %s2573_s7  ;;  %v1082_v59 = vmul.f32 %v1078_v12, %v1064_v26  ;;  %v1083_v20 = vmul.f32 %v1079_v7, %v1065_v16 }
 0x442   :  { %1856 = vrot.lane.b32.xlu2 %v1849_v36, %s2573_s7  ;;  %v1655_v36 = vld [vmem:[#allocation7 + $0x4] ss:$8 sm:$0x3] }
 0x443   :  { %v1084_v8 = vadd.f32 %v1082_v59, %v782_v22 }
 0x445   :  { %v1375_v53 = vadd.f32 %v1373_v62, %v1084_v8 }
 0x449   :  { %1880 = vrot.lane.b32.xlu0 %v1872_v24, %s2575_s9  ;;  %1876 = vrot.lane.b32.xlu1 %v1870_v37, %s2575_s9  ;;  %v783_v24 = vadd.f32 %v781_v15, %v481_v49  ;;  %v1658_v37 = vperm.slane %v1655_v36, 1 }
 0x44a   :  { %1878 = vrot.lane.b32.xlu2 %v1871_v25, %s2575_s9  ;;  %v1657_v25 = vperm.slane %v1655_v36, 0 }
 0x451   :  { %1902 = vrot.lane.b32.xlu0 %v1894_v4, %s2574_s8  ;;  %1898 = vrot.lane.b32.xlu1 %v1892_v52, %s2574_s8  ;;  %v1085_v4 = vadd.f32 %v1083_v20, %v783_v24  ;;  %v2075_v52 = vstv %s2435_s29 }
 0x452   :  { %1900 = vrot.lane.b32.xlu2 %v1893_v5, %s2574_s8  ;;  %v2076_v56 = vmul.f32 %v2075_v52, %v2642_v44  ;;  %v2078_v55 = vmul.f32 0.0, %v2075_v52 }
 0x459   :  { %1998 = vrot.lane.b32.xlu0 %v1990_v27, %s2572_s6  ;;  %1920 = vrot.lane.b32.xlu1 %v1914_v29, %s2577_s12  ;;  %v1376_v27 = vadd.f32 %v1374_v21, %v1085_v4  ;;  %v2128_v21 = vmul.f32 0.0, %v2127_v18 }
 0x45a   :  { %1996 = vrot.lane.b32.xlu2 %v1989_v43, %s2572_s6 }
 0x45c   :  { %v3245_v6 = vpop.permute.xlu2 %1666 }
 0x461   :  { %2020 = vrot.lane.b32.xlu0 %v2012_v51, %s2573_s7  ;;  %1994 = vrot.lane.b32.xlu1 %v1988_v35, %s2572_s6  ;;  %v2077_v35 = vmul.f32 %v2075_v52, %v2638_v41 }
 0x462   :  { %2018 = vrot.lane.b32.xlu2 %v2011_v3, %s2573_s7  ;;  %v2056_v3 = vmul.f32 0.0, %v2053_v47 }
 0x464   :  { %v3252_v40 = vpop.permute.xlu2 %1694 }
 0x469   :  { %2040 = vrot.lane.b32.xlu0 %v2033_v31, %s2575_s9  ;;  %2016 = vrot.lane.b32.xlu1 %v2010_v61, %s2573_s7 }
 0x46a   :  { %2038 = vrot.lane.b32.xlu2 %v2032_v38, %s2575_s9 }
 0x46c   :  { %v3274_v2 = vpop.permute.xlu2 %1716 }
 0x471   :  { %2062 = vrot.lane.b32.xlu0 %v2055_v10, %s2574_s8  ;;  %2042 = vrot.lane.b32.xlu1 %v2034_v63, %s2575_s9  ;;  %v2149_v10 = vstv %s2439_s30 }
 0x472   :  { %2060 = vrot.lane.b32.xlu2 %v2054_v34, %s2574_s8  ;;  %v2152_v24 = vmul.f32 %v2149_v10, %v2684_v45  ;;  %v2151_v62 = vmul.f32 %v2149_v10, %v2679_v42 }
 0x473   :  { %v1669_v5 = vpop.permute.xlu0 %1668  ;;  %v1665_v33 = vpop.permute.xlu1 %1664 }
 0x474   :  { %v1672_v23 = vsel %vm1670_vm12, %v3245_v6, %v1669_v5  ;;  %v1671_v29 = vsel %vm1670_vm12, %v1665_v33, %v3245_v6  ;;  %v1739_v43 = vpop.permute.xlu2 %1738  ;;  %v1680_v6 = vstv %s2416_s2 }
 0x475   :  { %v1676_v0 = vmul.f32 %v1672_v23, %v1658_v37  ;;  %v1675_v51 = vmul.f32 %v1671_v29, %v1657_v25  ;;  %v1683_v58 = vmul.f32 %v1680_v6, %v2638_v41  ;;  %v1682_v11 = vmul.f32 %v1680_v6, %v2642_v44 }
 0x476   :  { %v1681_v32 = vmul.f32 0.0, %v1680_v6  ;;  %v2171_v37 = vstv %s2440_s5  ;;  %v2150_v29 = vmul.f32 0.0, %v2149_v10 }
 0x477   :  { %v3287_v28 = vadd.f32 %v1676_v0, %v1376_v27  ;;  %v3289_v48 = vadd.f32 %v1675_v51, %v1375_v53  ;;  %v2173_v23 = vmul.f32 %v2171_v37, %v2684_v45 }
 0x479   :  { %2084 = vrot.lane.b32.xlu0 %v2077_v35, %s2577_s12  ;;  %2064 = vrot.lane.b32.xlu1 %v2056_v3, %s2574_s8 }
 0x47a   :  { %2082 = vrot.lane.b32.xlu2 %v2076_v56, %s2577_s12 }
 0x47b   :  { %v1697_v31 = vpop.permute.xlu0 %1696  ;;  %v1693_v61 = vpop.permute.xlu1 %1692 }
 0x47c   :  { %v1699_v50 = vsel %vm194_vm3, %v3252_v40, %v1697_v31  ;;  %v1698_v38 = vsel %vm194_vm3, %v1693_v61, %v3252_v40  ;;  %v1761_v54 = vpop.permute.xlu2 %1760  ;;  %v1705_v13 = vadd.f32 %v1697_v31, %v1683_v58  ;;  %v1916_v61 = vmul.f32 0.0, %v3236_v14 }
 0x47d   :  { %v1704_v57 = vadd.f32 %v1699_v50, %v1682_v11  ;;  %v1703_v40 = vadd.f32 %v1698_v38, %v1681_v32  ;;  %v2174_v58 = vmul.f32 0.0, %v2171_v37  ;;  %v1915_v50 = vmul.f32 %v3236_v14, %v2684_v45 }
 0x481   :  { %2106 = vrot.lane.b32.xlu0 %v2099_v60, %s2578_s14  ;;  %2086 = vrot.lane.b32.xlu1 %v2078_v55, %s2577_s12  ;;  %v1817_v60 = vstv %s2423_s10 }
 0x482   :  { %2104 = vrot.lane.b32.xlu2 %v2098_v39, %s2578_s14 }
 0x483   :  { %v1719_v9 = vpop.permute.xlu0 %1718  ;;  %v1715_v26 = vpop.permute.xlu1 %1714 }
 0x484   :  { %v1721_v16 = vsel %vm217_vm4, %v3274_v2, %v1719_v9  ;;  %v1727_v47 = vadd.f32 %v1719_v9, %v1705_v13  ;;  %v1720_v12 = vsel %vm217_vm4, %v1715_v26, %v3274_v2  ;;  %v1783_v7 = vpop.permute.xlu2 %1782  ;;  %v1820_v9 = vmul.f32 %v1817_v60, %v2684_v45 }
 0x485   :  { %v1726_v17 = vadd.f32 %v1721_v16, %v1704_v57  ;;  %v1725_v15 = vadd.f32 %v1720_v12, %v1703_v40  ;;  %v1818_v16 = vmul.f32 0.0, %v1817_v60 }
 0x489   :  { %2138 = vrot.lane.b32.xlu0 %v2130_v30, %s2572_s6  ;;  %2108 = vrot.lane.b32.xlu1 %v2100_v19, %s2578_s14 }
 0x48a   :  { %2136 = vrot.lane.b32.xlu2 %v2129_v1, %s2572_s6 }
 0x48b   :  { %v1741_v63 = vpop.permute.xlu0 %1740  ;;  %v1737_v49 = vpop.permute.xlu1 %1736 }
 0x48c   :  { %v1743_v2 = vsel %vm240_vm5, %v1739_v43, %v1741_v63  ;;  %v1742_v59 = vsel %vm240_vm5, %v1737_v49, %v1739_v43  ;;  %v1747_v20 = vadd.f32 %v1737_v49, %v1725_v15  ;;  %v1805_v36 = vpop.permute.xlu2 %1804  ;;  %v2172_v43 = vmul.f32 %v2171_v37, %v2679_v42 }
 0x48d   :  { %v1749_v34 = vadd.f32 %v1743_v2, %v1727_v47  ;;  %v1748_v22 = vadd.f32 %v1742_v59, %v1726_v17  ;;  %v1819_v47 = vmul.f32 %v1817_v60, %v2679_v42 }
 0x491   :  { %2160 = vrot.lane.b32.xlu0 %v2152_v24, %s2573_s7  ;;  %2134 = vrot.lane.b32.xlu1 %v2128_v21, %s2572_s6  ;;  %s2441_s6 = sld [smem:[#allocation3 + $0x53]] }
 0x492   :  { %2158 = vrot.lane.b32.xlu2 %v2151_v62, %s2573_s7 }
 0x493   :  { %v1763_v25 = vpop.permute.xlu0 %1762  ;;  %v1759_v8 = vpop.permute.xlu1 %1758 }
 0x494   :  { %v1765_v4 = vsel %vm263_vm6, %v1761_v54, %v1763_v25  ;;  %v1764_v52 = vsel %vm263_vm6, %v1759_v8, %v1761_v54  ;;  %v1769_v5 = vadd.f32 %v1759_v8, %v1747_v20  ;;  %v1835_v33 = vpop.permute.xlu2 %1834 }
 0x495   :  { %v1771_v27 = vadd.f32 %v1765_v4, %v1749_v34  ;;  %v1770_v53 = vadd.f32 %v1764_v52, %v1748_v22 }
 0x497   :  { %v2193_v38 = vstv %s2441_s6 }
 0x498   :  { %v2196_v14 = vmul.f32 0.0, %v2193_v38  ;;  %v2194_v40 = vmul.f32 %v2193_v38, %v2679_v42  ;;  %v2195_v26 = vmul.f32 %v2193_v38, %v2684_v45 }
 0x499   :  { %2180 = vrot.lane.b32.xlu0 %v2173_v23, %s2575_s9  ;;  %2156 = vrot.lane.b32.xlu1 %v2150_v29, %s2573_s7  ;;  %s2429_s7 = sld [smem:[#allocation3 + $0x60]] }
 0x49a   :  { %2178 = vrot.lane.b32.xlu2 %v2172_v43, %s2575_s9 }
 0x49b   :  { %v1785_v0 = vpop.permute.xlu0 %1784  ;;  %v1781_v51 = vpop.permute.xlu1 %1780 }
 0x49c   :  { %v1787_v35 = vsel %vm286_vm7, %v1783_v7, %v1785_v0  ;;  %v1786_v3 = vsel %vm286_vm7, %v1781_v51, %v1783_v7  ;;  %v1791_v56 = vadd.f32 %v1781_v51, %v1769_v5  ;;  %v1857_v46 = vpop.permute.xlu2 %1856 }
 0x49d   :  { %v1793_v6 = vadd.f32 %v1787_v35, %v1771_v27  ;;  %v1792_v31 = vadd.f32 %v1786_v3, %v1770_v53 }
 0x49f   :  { %v1935_v7 = vstv %s2429_s7 }
 0x4a0   :  { %v1938_v20 = vmul.f32 0.0, %v1935_v7  ;;  %v1937_v34 = vmul.f32 %v1935_v7, %v2684_v45 }
 0x4a1   :  { %1924 = vrot.lane.b32.xlu0 %v1916_v61, %s2577_s12  ;;  %2182 = vrot.lane.b32.xlu1 %v2174_v58, %s2575_s9  ;;  %s2442_s9 = sld [smem:[#allocation3 + $0x5a]] }
 0x4a2   :  { %1922 = vrot.lane.b32.xlu2 %v1915_v50, %s2577_s12 }
 0x4a3   :  { %v1807_v54 = vpop.permute.xlu0 %1806  ;;  %v1803_v55 = vpop.permute.xlu1 %1802 }
 0x4a4   :  { %v1809_v39 = vsel %vm309_vm8, %v1805_v36, %v1807_v54  ;;  %v1808_v11 = vsel %vm309_vm8, %v1803_v55, %v1805_v36  ;;  %v1813_v32 = vadd.f32 %v1803_v55, %v1791_v56  ;;  %v1879_v13 = vpop.permute.xlu2 %1878  ;;  %v1936_v36 = vmul.f32 %v1935_v7, %v2679_v42 }
 0x4a5   :  { %v1815_v18 = vadd.f32 %v1809_v39, %v1793_v6  ;;  %v1814_v57 = vadd.f32 %v1808_v11, %v1792_v31 }
 0x4a6   :  { %v1821_v17 = vadd.f32 %v1818_v16, %v1813_v32 }
 0x4a7   :  { %v1823_v12 = vadd.f32 %v1820_v9, %v1815_v18  ;;  %v1822_v30 = vadd.f32 %v1819_v47, %v1814_v57  ;;  %v2215_v22 = vstv %s2442_s9 }
 0x4a8   :  { %v2218_v5 = vmul.f32 0.0, %v2215_v22  ;;  %v2217_v27 = vmul.f32 %v2215_v22, %v2684_v45 }
 0x4a9   :  { %2204 = vrot.lane.b32.xlu0 %v2196_v14, %s2574_s8  ;;  %2200 = vrot.lane.b32.xlu1 %v2194_v40, %s2574_s8 }
 0x4aa   :  { %2202 = vrot.lane.b32.xlu2 %v2195_v26, %s2574_s8  ;;  %s2443_s8 = sld [smem:[#allocation3 + $0x61]] }
 0x4ab   :  { %v1837_v15 = vpop.permute.xlu0 %1836  ;;  %v1833_v19 = vpop.permute.xlu1 %1832 }
 0x4ac   :  { %v1839_v1 = vsel %vm194_vm3, %v1835_v33, %v1837_v15  ;;  %v1845_v10 = vadd.f32 %v1837_v15, %v1823_v12  ;;  %v1838_v63 = vsel %vm194_vm3, %v1833_v19, %v1835_v33  ;;  %v1901_v49 = vpop.permute.xlu2 %1900  ;;  %v2216_v33 = vmul.f32 %v2215_v22, %v2679_v42 }
 0x4ad   :  { %v1844_v2 = vadd.f32 %v1839_v1, %v1822_v30  ;;  %v1843_v59 = vadd.f32 %v1838_v63, %v1821_v17 }
 0x4b0   :  { %v2237_v53 = vstv %s2443_s8 }
 0x4b1   :  { %1946 = vrot.lane.b32.xlu0 %v1938_v20, %s2578_s14  ;;  %1942 = vrot.lane.b32.xlu1 %v1936_v36, %s2578_s14  ;;  %v2238_v6 = vmul.f32 %v2237_v53, %v2679_v42  ;;  %v2239_v31 = vmul.f32 %v2237_v53, %v2684_v45 }
 0x4b2   :  { %1944 = vrot.lane.b32.xlu2 %v1937_v34, %s2578_s14 }
 0x4b3   :  { %v1859_v24 = vpop.permute.xlu0 %1858  ;;  %v1855_v21 = vpop.permute.xlu1 %1854 }
 0x4b4   :  { %v1861_v62 = vsel %vm217_vm4, %v1857_v46, %v1859_v24  ;;  %v1867_v37 = vadd.f32 %v1859_v24, %v1845_v10  ;;  %v1860_v25 = vsel %vm217_vm4, %v1855_v21, %v1857_v46  ;;  %v1997_v8 = vpop.permute.xlu2 %1996  ;;  %v2240_v46 = vmul.f32 0.0, %v2237_v53 }
 0x4b5   :  { %v1866_v4 = vadd.f32 %v1861_v62, %v1844_v2  ;;  %v1865_v52 = vadd.f32 %v1860_v25, %v1843_v59 }
 0x4b9   :  { %2226 = vrot.lane.b32.xlu0 %v2218_v5, %s2577_s12  ;;  %2222 = vrot.lane.b32.xlu1 %v2216_v33, %s2577_s12 }
 0x4ba   :  { %2224 = vrot.lane.b32.xlu2 %v2217_v27, %s2577_s12  ;;  %s2430_s12 = sld [smem:[#allocation3 + $0x6]] }
 0x4bb   :  { %v1881_v23 = vpop.permute.xlu0 %1880  ;;  %v1877_v29 = vpop.permute.xlu1 %1876 }
 0x4bc   :  { %v1883_v43 = vsel %vm240_vm5, %v1879_v13, %v1881_v23  ;;  %v1882_v0 = vsel %vm240_vm5, %v1877_v29, %v1879_v13  ;;  %v1887_v51 = vadd.f32 %v1877_v29, %v1865_v52  ;;  %v2019_v35 = vpop.permute.xlu2 %2018 }
 0x4bd   :  { %v1889_v3 = vadd.f32 %v1883_v43, %v1867_v37  ;;  %v1888_v56 = vadd.f32 %v1882_v0, %v1866_v4 }
 0x4c0   :  { %v1982_v11 = vstv %s2430_s12 }
 0x4c1   :  { %2248 = vrot.lane.b32.xlu0 %v2240_v46, %s2578_s14  ;;  %2244 = vrot.lane.b32.xlu1 %v2238_v6, %s2578_s14  ;;  %v1985_v18 = vmul.f32 %v1982_v11, %v2638_v41  ;;  %v1984_v9 = vmul.f32 %v1982_v11, %v2642_v44  ;;  %v1983_v1 = vmul.f32 0.0, %v1982_v11 }
 0x4c2   :  { %2246 = vrot.lane.b32.xlu2 %v2239_v31, %s2578_s14  ;;  %s2437_s14 = sld [smem:[#allocation3 + $0x37]] }
 0x4c3   :  { %v1903_v61 = vpop.permute.xlu0 %1902  ;;  %v1899_v58 = vpop.permute.xlu1 %1898 }
 0x4c4   :  { %v1905_v50 = vsel %vm263_vm6, %v1901_v49, %v1903_v61  ;;  %v1904_v38 = vsel %vm263_vm6, %v1899_v58, %v1901_v49  ;;  %v1909_v54 = vadd.f32 %v1899_v58, %v1887_v51  ;;  %v2039_v60 = vpop.permute.xlu2 %2038 }
 0x4c5   :  { %v3368_v55 = vadd.f32 %v1905_v50, %v1889_v3  ;;  %v1910_v39 = vadd.f32 %v1904_v38, %v1888_v56 }
 0x4cb   :  { %v1999_v32 = vpop.permute.xlu0 %1998  ;;  %v1921_v13 = vpop.permute.xlu1 %1920 }
 0x4cc   :  { %v2001_v57 = vsel %vm194_vm3, %v1997_v8, %v1999_v32  ;;  %v3372_v14 = vadd.f32 %v1921_v13, %v1909_v54  ;;  %v2061_v40 = vpop.permute.xlu2 %2060  ;;  %v2007_v26 = vadd.f32 %v1999_v32, %v1985_v18  ;;  %v2119_v32 = vstv %s2437_s14 }
 0x4cd   :  { %v2006_v16 = vadd.f32 %v2001_v57, %v1984_v9 }
 0x4d3   :  { %v2021_v47 = vpop.permute.xlu0 %2020  ;;  %v1995_v12 = vpop.permute.xlu1 %1994 }
 0x4d4   :  { %v2023_v7 = vsel %vm217_vm4, %v2019_v35, %v2021_v47  ;;  %v2029_v17 = vadd.f32 %v2021_v47, %v2007_v26  ;;  %v2000_v15 = vsel %vm194_vm3, %v1995_v12, %v1997_v8  ;;  %v2083_v30 = vpop.permute.xlu2 %2082  ;;  %v2120_v12 = vmul.f32 0.0, %v2119_v32 }
 0x4d5   :  { %v2028_v19 = vadd.f32 %v2023_v7, %v2006_v16  ;;  %v2005_v41 = vadd.f32 %v2000_v15, %v1983_v1  ;;  %v2122_v16 = vmul.f32 %v2119_v32, %v2684_v45 }
 0x4db   :  { %v2041_v10 = vpop.permute.xlu0 %2040  ;;  %v2017_v63 = vpop.permute.xlu1 %2016 }
 0x4dc   :  { %v2044_v49 = vsel %vm240_vm5, %v2039_v60, %v2041_v10  ;;  %v2022_v2 = vsel %vm217_vm4, %v2017_v63, %v2019_v35  ;;  %v2105_v44 = vpop.permute.xlu2 %2104 }
 0x4dd   :  { %v2050_v59 = vadd.f32 %v2044_v49, %v2028_v19  ;;  %v2027_v20 = vadd.f32 %v2022_v2, %v2005_v41 }
 0x4df   :  { %v2049_v36 = vadd.f32 %v2039_v60, %v2027_v20 }
 0x4e1   :  { %v2071_v6 = vadd.f32 %v2061_v40, %v2049_v36 }
 0x4e3   :  { %v2063_v34 = vpop.permute.xlu0 %2062  ;;  %v2043_v22 = vpop.permute.xlu1 %2042 }
 0x4e4   :  { %v2045_v24 = vsel %vm240_vm5, %v2041_v10, %v2043_v22  ;;  %v2137_v21 = vpop.permute.xlu2 %2136  ;;  %v2066_v38 = vsel %vm263_vm6, %v2061_v40, %v2063_v34 }
 0x4e5   :  { %v2051_v62 = vadd.f32 %v2045_v24, %v2029_v17  ;;  %v2072_v57 = vadd.f32 %v2066_v38, %v2050_v59  ;;  %v2121_v17 = vmul.f32 %v2119_v32, %v2679_v42 }
 0x4eb   :  { %v2085_v37 = vpop.permute.xlu0 %2084  ;;  %v2065_v25 = vpop.permute.xlu1 %2064 }
 0x4ec   :  { %v2159_v8 = vpop.permute.xlu2 %2158  ;;  %v2067_v31 = vsel %vm263_vm6, %v2063_v34, %v2065_v25 }
 0x4ed   :  { %v2073_v54 = vadd.f32 %v2067_v31, %v2051_v62 }
 0x4f3   :  { %v2107_v4 = vpop.permute.xlu0 %2106  ;;  %v2087_v52 = vpop.permute.xlu1 %2086 }
 0x4f4   :  { %v3380_v5 = vpop.permute.xlu2 %2178  ;;  %v2089_v50 = vsel %vm286_vm7, %v2085_v37, %v2087_v52  ;;  %v2110_v26 = vsel %vm309_vm8, %v2105_v44, %v2107_v4 }
 0x4f5   :  { %v2095_v18 = vadd.f32 %v2089_v50, %v2073_v54 }
 0x4fb   :  { %v2139_v33 = vpop.permute.xlu0 %2138  ;;  %v2109_v27 = vpop.permute.xlu1 %2108 }
 0x4fc   :  { %v1923_v53 = vpop.permute.xlu2 %1922  ;;  %v2111_v11 = vsel %vm309_vm8, %v2107_v4, %v2109_v27  ;;  %v2141_v20 = vsel %vm194_vm3, %v2137_v21, %v2139_v33 }
 0x4fd   :  { %v1926_v23 = vsel %vm286_vm7, %v1921_v13, %v1923_v53  ;;  %v2088_v13 = vsel %vm286_vm7, %v2083_v30, %v2085_v37  ;;  %v2117_v47 = vadd.f32 %v2111_v11, %v2095_v18  ;;  %v1957_v11 = vld [vmem:[#allocation7 + $0x5] ss:$8 sm:$0x3] }
 0x4fe   :  { %v1932_v29 = vadd.f32 %v1926_v23, %v1910_v39  ;;  %v2093_v39 = vadd.f32 %v2083_v30, %v2071_v6  ;;  %v2094_v40 = vadd.f32 %v2088_v13, %v2072_v57  ;;  %v1959_v18 = vperm.slane %v1957_v11, 0 }
 0x4ff   :  { %v2125_v49 = vadd.f32 %v2122_v16, %v2117_v47  ;;  %v1960_v57 = vperm.slane %v1957_v11, 1  ;;  %v2259_v16 = vld [vmem:[#allocation7 + $0x6] ss:$8 sm:$0x3] }
 0x500   :  { %v2115_v7 = vadd.f32 %v2105_v44, %v2093_v39  ;;  %v2116_v41 = vadd.f32 %v2110_v26, %v2094_v40  ;;  %v2262_v40 = vperm.slane %v2259_v16, 1 }
 0x501   :  { %v2147_v22 = vadd.f32 %v2139_v33, %v2125_v49 }
 0x502   :  { %v2123_v44 = vadd.f32 %v2120_v12, %v2115_v7  ;;  %v2124_v34 = vadd.f32 %v2121_v17, %v2116_v41  ;;  %v2261_v7 = vperm.slane %v2259_v16, 0 }
 0x503   :  { %v2161_v43 = vpop.permute.xlu0 %2160  ;;  %v2135_v0 = vpop.permute.xlu1 %2134 }
 0x504   :  { %v2203_v3 = vpop.permute.xlu2 %2202  ;;  %v2140_v45 = vsel %vm194_vm3, %v2135_v0, %v2137_v21  ;;  %v2146_v62 = vadd.f32 %v2141_v20, %v2124_v34 }
 0x505   :  { %v2145_v36 = vadd.f32 %v2140_v45, %v2123_v44 }
 0x50b   :  { %v2181_v51 = vpop.permute.xlu0 %2180  ;;  %v2157_v35 = vpop.permute.xlu1 %2156 }
 0x50c   :  { %v1945_v60 = vpop.permute.xlu2 %1944  ;;  %v2162_v42 = vsel %vm217_vm4, %v2157_v35, %v2159_v8  ;;  %v2184_v4 = vsel %vm240_vm5, %v3380_v5, %v2181_v51 }
 0x50d   :  { %v2167_v24 = vadd.f32 %v2162_v42, %v2145_v36 }
 0x50f   :  { %v2189_v21 = vadd.f32 %v3380_v5, %v2167_v24 }
 0x513   :  { %v1925_v56 = vpop.permute.xlu0 %1924  ;;  %v2183_v46 = vpop.permute.xlu1 %2182 }
 0x514   :  { %v1927_v9 = vsel %vm286_vm7, %v1923_v53, %v1925_v56  ;;  %v2185_v52 = vsel %vm240_vm5, %v2181_v51, %v2183_v46  ;;  %v2169_v53 = vadd.f32 %v2161_v43, %v2147_v22 }
 0x515   :  { %v1933_v15 = vadd.f32 %v1927_v9, %v3368_v55  ;;  %v2225_v55 = vpop.permute.xlu2 %2224 }
 0x516   :  { %v2191_v0 = vadd.f32 %v2185_v52, %v2169_v53 }
 0x51b   :  { %v2205_v61 = vpop.permute.xlu0 %2204  ;;  %v2201_v58 = vpop.permute.xlu1 %2200 }
 0x51c   :  { %v2207_v23 = vsel %vm263_vm6, %v2203_v3, %v2205_v61 }
 0x51d   :  { %v2213_v6 = vadd.f32 %v2207_v23, %v2191_v0  ;;  %v2247_v50 = vpop.permute.xlu2 %2246 }
 0x523   :  { %v1947_v19 = vpop.permute.xlu0 %1946  ;;  %v1943_v1 = vpop.permute.xlu1 %1942 }
 0x524   :  { %v1949_v30 = vsel %vm309_vm8, %v1945_v60, %v1947_v19  ;;  %v1948_v10 = vsel %vm309_vm8, %v1943_v1, %v1945_v60  ;;  %v1953_v63 = vadd.f32 %v1943_v1, %v3372_v14  ;;  %v2163_v14 = vsel %vm217_vm4, %v2159_v8, %v2161_v43 }
 0x525   :  { %v1955_v2 = vadd.f32 %v1949_v30, %v1933_v15  ;;  %v1954_v59 = vadd.f32 %v1948_v10, %v1932_v29  ;;  %v2168_v27 = vadd.f32 %v2163_v14, %v2146_v62  ;;  %v2206_v29 = vsel %vm263_vm6, %v2201_v58, %v2203_v3 }
 0x526   :  { %1966 = vrot.lane.b32.xlu0 %v1953_v63, %s2583_s11  ;;  %v2211_v8 = vadd.f32 %v2201_v58, %v2189_v21  ;;  %vm2324_vm6 = vcmask 1041408  }
 0x527   :  { %1970 = vrot.lane.b32.xlu2 %v1955_v2, %s2583_s11  ;;  %1968 = vrot.lane.b32.xlu1 %v1954_v59, %s2583_s11  ;;  %v2190_v33 = vadd.f32 %v2184_v4, %v2168_v27 }
 0x529   :  { %v2212_v31 = vadd.f32 %v2206_v29, %v2190_v33 }
 0x52b   :  { %v2227_v37 = vpop.permute.xlu0 %2226  ;;  %v2223_v25 = vpop.permute.xlu1 %2222 }
 0x52c   :  { %v2229_v35 = vsel %vm286_vm7, %v2225_v55, %v2227_v37  ;;  %v2228_v56 = vsel %vm286_vm7, %v2223_v25, %v2225_v55  ;;  %v2233_v38 = vadd.f32 %v2223_v25, %v2211_v8 }
 0x52d   :  { %v2235_v51 = vadd.f32 %v2229_v35, %v2213_v6  ;;  %v2234_v46 = vadd.f32 %v2228_v56, %v2212_v31 }
 0x533   :  { %v2249_v43 = vpop.permute.xlu0 %2248  ;;  %v2245_v54 = vpop.permute.xlu1 %2244 }
 0x534   :  { %v2251_v61 = vsel %vm309_vm8, %v2247_v50, %v2249_v43  ;;  %v2250_v5 = vsel %vm309_vm8, %v2245_v54, %v2247_v50  ;;  %v2255_v3 = vadd.f32 %v2245_v54, %v2233_v38 }
 0x535   :  { %v2257_v60 = vadd.f32 %v2251_v61, %v2235_v51  ;;  %v2256_v39 = vadd.f32 %v2250_v5, %v2234_v46 }
 0x536   :  { %2268 = vrot.lane.b32.xlu0 %v2255_v3, %s2584_s13 }
 0x537   :  { %2272 = vrot.lane.b32.xlu2 %v2257_v60, %s2584_s13  ;;  %2270 = vrot.lane.b32.xlu1 %v2256_v39, %s2584_s13 }
 0x581   :  { %v1971_v32 = vpop.permute.xlu2 %1970 }
 0x591   :  { %v2273_v15 = vpop.permute.xlu2 %2272 }
 0x598   :  { %v1967_v58 = vpop.permute.xlu0 %1966 }
 0x599   :  { %v1969_v13 = vpop.permute.xlu1 %1968 }
 0x59a   :  { %v1973_v9 = vsel %vm1972_vm13, %v1967_v58, %v1969_v13  ;;  %v1974_v26 = vsel %vm1972_vm13, %v1969_v13, %v1971_v32 }
 0x59b   :  { %v1977_v47 = vmul.f32 %v1973_v9, %v1959_v18  ;;  %v1978_v12 = vmul.f32 %v1974_v26, %v1960_v57 }
 0x59d   :  { %v1979_v30 = vadd.f32 %v1977_v47, %v3289_v48  ;;  %v1980_v10 = vadd.f32 %v1978_v12, %v3287_v28 }
 0x5a8   :  { %v2269_v17 = vpop.permute.xlu0 %2268 }
 0x5a9   :  { %v2271_v19 = vpop.permute.xlu1 %2270 }
 0x5aa   :  { %v2275_v1 = vsel %vm2274_vm14, %v2269_v17, %v2271_v19  ;;  %v2276_v41 = vsel %vm2274_vm14, %v2271_v19, %v2273_v15 }
 0x5ab   :  { %v2279_v63 = vmul.f32 %v2275_v1, %v2261_v7  ;;  %v2280_v49 = vmul.f32 %v2276_v41, %v2262_v40 }
 0x5ad   :  { %v2281_v45 = vadd.f32 %v2279_v63, %v1979_v30  ;;  %v2282_v2 = vadd.f32 %v2280_v49, %v1980_v10 }
 0x5af   :  { %v2444_v59 = vmul.f32 -1.442695, %v2281_v45  ;;  %v2445_v44 = vmul.f32 -1.442695, %v2282_v2 }
 0x5b1   :  { %2467 = vpow2.f32 %v2444_v59 }
 0x5b2   :  { %2469 = vpow2.f32 %v2445_v44 }
 0x5b7   :  { %v2468_v42 = vpop.eup %2467 }
 0x5b8   :  { %v2470_v55 = vpop.eup %2469  ;;  %v2289_v20 = vadd.f32 1.0, %v2468_v42 }
 0x5b9   :  { %v2290_v36 = vadd.f32 1.0, %v2470_v55 }
 0x5ba   :  { %2471 = vrcp.f32 %v2289_v20  ;;  %vm2296_vm1 = vweird.f32 %v2289_v20  ;;  %v2302_v27 = vand.u32 2147483648, %v2289_v20  ;;  %v2300_v23 = vand.u32 2147483647, %v2289_v20 }
 0x5bb   :  { %2473 = vrcp.f32 %v2290_v36  ;;  %v2317_v37 = vand.u32 2147483648, %v2290_v36  ;;  %v2315_v4 = vand.u32 2147483647, %v2290_v36  ;;  %vm2311_vm3 = vweird.f32 %v2290_v36 }
 0x5bc   :  { %v2303_v8 = vor.u32 1.1754944e-38, %v2302_v27  ;;  %vm2301_vm7 = vcmp.eq.f32.partialorder %v2300_v23, 8.507059e+37 }
 0x5bd   :  { %v2318_v29 = vor.u32 1.1754944e-38, %v2317_v37  ;;  %vm2316_vm5 = vcmp.eq.f32.partialorder %v2315_v4, 8.507059e+37 }
 0x5c0   :  { %v2472_v34 = vpop.eup %2471 }
 0x5c1   :  { %v2474_v22 = vpop.eup %2473  ;;  %v2292_v14 = vmul.f32 %v2472_v34, %v2289_v20  ;;  %vm2297_vm15 = vweird.f32 %v2472_v34 }
 0x5c2   :  { %v2307_v48 = vmul.f32 %v2474_v22, %v2290_v36  ;;  %vm2312_vm0 = vweird.f32 %v2474_v22  ;;  %vm3412_vm2 = vmor %vm2296_vm1, %vm2297_vm15 }
 0x5c3   :  { %v2293_v24 = vsub.f32 1.0, %v2292_v14  ;;  %vm2313_vm4 = vmor %vm2311_vm3, %vm2312_vm0 }
 0x5c4   :  { %v2308_v28 = vsub.f32 1.0, %v2307_v48 }
 0x5c5   :  { %v2294_v62 = vmul.f32 %v2472_v34, %v2293_v24 }
 0x5c6   :  { %v2309_v25 = vmul.f32 %v2474_v22, %v2308_v28 }
 0x5c7   :  { %v2295_v52 = vadd.f32 %v2472_v34, %v2294_v62 }
 0x5c8   :  { %v2310_v21 = vadd.f32 %v2474_v22, %v2309_v25 }
 0x5c9   :  { %v2299_v33 = vsel %vm3412_vm2, %v2472_v34, %v2295_v52 }
 0x5ca   :  { %v2314_v0 = vsel %vm2313_vm4, %v2474_v22, %v2310_v21  ;;  %v2304_v6 = vsel %vm2301_vm7, %v2303_v8, %v2299_v33 }
 0x5cb   :  { %v2319_v35 = vsel %vm2316_vm5, %v2318_v29, %v2314_v0 }
 0x5cc   :  { %v2323_v56 = vrot.slane %v2319_v35, 6 }
 0x5ce   :  { %v2325_v31 = vsel %vm2324_vm6, %v2304_v6, %v2323_v56 }
 0x5cf   :  { %2327 = vst [vmem:[#allocation10] sm:$0xf] %v2325_v31 }
 0x5d0   :  { %2338 = dma.vmem_to_hbm [thread:$0]  %s2334_s16, 64, %s2336_s19, [#allocation5]  }
 0x5d1   :  { %2565 = dma.done.wait [#allocation5], 64  }
 0x5d2   :  { %2566 = vsyncadd [#allocation5], 4294967232 }
 0x5d3   :  { %2343 = vsyncpa [#allocation4], 1 }
 0x5d4   :  { %2344 = vsyncpa [#allocation9], 1 }
 0x5d5   :  { %2345 = vsyncpa [#allocation5], 1 }
 0x5d6   :  { %2346 = vsyncpa [#allocation6], 1 }

</bundles_post_ra>
